<compile_context>
chip_gen: v7x
topology: tpu7x:2x2x1
jax: 0.10.0
libtpu: 0.0.40
codegen_flags: <defaults>
</compile_context>

<pallas_src>
import functools

import jax
import jax.numpy as jnp
from jax.experimental import pallas as pl
from jax.experimental.pallas import tpu as pltpu

EPS = 1e-5
LAYER_CFG = ((64, 3, 1), (128, 4, 2), (256, 23, 2), (512, 3, 2))  # resnet101
VMEM_LIMIT = 32 * 1024 * 1024


def _round_up(x, m):
    return ((x + m - 1) // m) * m


def _pick_bm(m, lo=8):
    """Row tile: <=512 rows, multiple of 8, minimal padding, at least `lo`."""
    nb = pl.cdiv(m, 512)
    return max(_round_up(pl.cdiv(m, nb), 8), _round_up(lo, 8))


# ----------------------------------------------------------------------------
# Pallas kernels
# ----------------------------------------------------------------------------
def _mm_kernel(a_ref, b_ref, bias_ref, *rest, relu, has_res):
    """K-tiled matmul, f32 accumulator; finalize = +bias [+res] [+ReLU]."""
    if has_res:
        res_ref, o_ref, acc_ref = rest
    else:
        o_ref, acc_ref = rest
    kk = pl.program_id(2)

    @pl.when(kk == 0)
    def _():
        acc_ref[...] = jnp.zeros_like(acc_ref)

    acc_ref[...] += jnp.dot(a_ref[...], b_ref[...],
                            preferred_element_type=jnp.float32)

    @pl.when(kk == pl.num_programs(2) - 1)
    def _():
        y = acc_ref[...] + bias_ref[...]
        if has_res:
            y = y + res_ref[...].astype(jnp.float32)
        if relu:
            y = jnp.maximum(y, 0.0)
        o_ref[...] = y.astype(o_ref.dtype)


def _conv3x3_kernel(a0_ref, a1_ref, w_ref, bias_ref, o_ref, *, cp, offs, relu):
    """Stride-1 3x3 conv: 9-tap reduction done entirely in VMEM.

    a0_ref holds rows [i*bm, (i+1)*bm) of the zero-padded flat activation,
    a1_ref the next bm rows (halo).  Tap t needs rows shifted by the static
    offset offs[t] (< bm), i.e. a constant-offset slice of concat(a0, a1).
    """
    bm = a0_ref.shape[0]
    s = jnp.concatenate([a0_ref[...], a1_ref[...]], axis=0)        # (2bm, cp)
    acc = jnp.zeros((bm, o_ref.shape[1]), jnp.float32)
    for t, off in enumerate(offs):
        a_t = a0_ref[...] if off == 0 else s[off:off + bm]
        acc = acc + jnp.dot(a_t, w_ref[t * cp:(t + 1) * cp, :],
                            preferred_element_type=jnp.float32)
    y = acc + bias_ref[...]
    if relu:
        y = jnp.maximum(y, 0.0)
    o_ref[...] = y.astype(o_ref.dtype)


def _maxpool_kernel(x_ref, o_ref):
    # x_ref: (9, bm, C) stacked shifted windows -> max over the 9 taps.
    o_ref[...] = jnp.max(x_ref[...], axis=0)


# ----------------------------------------------------------------------------
# Conv / pool wrappers (glue runs inside the per-block jit)
# ----------------------------------------------------------------------------
def _matmul_bias_act(a, wmat, bias, relu, residual=None):
    """a: (m, k) bf16; wmat: (kp, coutp) bf16 pre-folded; bias: (1, coutp) f32."""
    m, k = a.shape
    kp, coutp = wmat.shape
    a = a.astype(jnp.bfloat16)
    if kp != k:
        a = jnp.pad(a, ((0, 0), (0, kp - k)))

    bm = _pick_bm(m)
    mp = _round_up(m, bm)
    if mp != m:
        a = jnp.pad(a, ((0, mp - m), (0, 0)))
    m_grid = mp // bm

    if m_grid >= 2 or coutp <= 128:
        bn = min(coutp, 512)
    else:                                  # keep >=2 N-blocks for megacore
        bn = min(max(coutp // 2, 128), 512)
    n_grid = coutp // bn

    bk = next(c for c in (2048, 1536, 1152, 1024, 768, 512, 384, 256, 128)
              if kp % c == 0)
    k_grid = kp // bk

    has_res = residual is not None
    swap = n_grid > m_grid                 # biggest parallel axis leads (v7x)
    if swap:
        grid = (n_grid, m_grid, k_grid)
        a_map = lambda j, i, kk: (i, kk)
        w_map = lambda j, i, kk: (kk, j)
        v_map = lambda j, i, kk: (0, j)
        o_map = lambda j, i, kk: (i, j)
    else:
        grid = (m_grid, n_grid, k_grid)
        a_map = lambda i, j, kk: (i, kk)
        w_map = lambda i, j, kk: (kk, j)
        v_map = lambda i, j, kk: (0, j)
        o_map = lambda i, j, kk: (i, j)

    args = [a, wmat, bias]
    in_specs = [
        pl.BlockSpec((bm, bk), a_map),
        pl.BlockSpec((bk, bn), w_map),
        pl.BlockSpec((1, bn), v_map),
    ]
    if has_res:
        res = residual.astype(jnp.bfloat16)
        if mp != m:
            res = jnp.pad(res, ((0, mp - m), (0, 0)))
        args.append(res)
        in_specs.append(pl.BlockSpec((bm, bn), o_map))

    out = pl.pallas_call(
        functools.partial(_mm_kernel, relu=relu, has_res=has_res),
        out_shape=jax.ShapeDtypeStruct((mp, coutp), jnp.bfloat16),
        grid_spec=pltpu.PrefetchScalarGridSpec(
            num_scalar_prefetch=0,
            grid=grid,
            in_specs=in_specs,
            out_specs=pl.BlockSpec((bm, bn), o_map),
            scratch_shapes=[pltpu.VMEM((bm, bn), jnp.float32)],
        ),
        compiler_params=pltpu.CompilerParams(
            dimension_semantics=("parallel", "parallel", "arbitrary"),
            vmem_limit_bytes=VMEM_LIMIT),
    )(*args)
    return out[:m] if mp != m else out


def conv1x1_bn_act(x, p, stride=1, relu=True, residual=None):
    if stride != 1:
        x = x[:, ::stride, ::stride, :]
    n, h, w, c = x.shape
    m = n * h * w
    res = None if residual is None else residual.reshape(m, residual.shape[-1])
    out = _matmul_bias_act(x.reshape(m, c), p["wmat"], p["bias"],
                           relu=relu, residual=res)
    return out.reshape(n, h, w, -1)


def conv3x3_s1_bn_act(x, p, relu=True):
    """Stride-1 3x3 conv with in-kernel 9-tap reduction (no HBM im2col)."""
    n, h, w, c = x.shape
    hp, wp = h + 2, w + 2
    coutp = p["wmat"].shape[1]
    assert p["wmat"].shape[0] == 9 * c
    xp = jnp.pad(x, ((0, 0), (1, 1), (1, 1), (0, 0)))
    mq = n * hp * wp

    bm = _pick_bm(mq, lo=2 * wp + 2)           # halo must fit in one block
    mp = _round_up(mq, bm)
    x_ext = jnp.pad(xp.reshape(mq, c), ((0, mp + bm - mq), (0, 0)))
    m_grid = mp // bm

    if m_grid >= 2 or coutp <= 128:
        bn = min(coutp, 512)
    else:
        bn = min(max(coutp // 2, 128), 512)
    n_grid = coutp // bn

    offs = tuple(di * wp + dj for di in range(3) for dj in range(3))
    swap = n_grid > m_grid
    if swap:
        grid = (n_grid, m_grid)
        a0_map = lambda j, i: (i, 0)
        a1_map = lambda j, i: (i + 1, 0)
        w_map = lambda j, i: (0, j)
        o_map = lambda j, i: (i, j)
    else:
        grid = (m_grid, n_grid)
        a0_map = lambda i, j: (i, 0)
        a1_map = lambda i, j: (i + 1, 0)
        w_map = lambda i, j: (0, j)
        o_map = lambda i, j: (i, j)

    out = pl.pallas_call(
        functools.partial(_conv3x3_kernel, cp=c, offs=offs, relu=relu),
        out_shape=jax.ShapeDtypeStruct((mp, coutp), jnp.bfloat16),
        grid_spec=pltpu.PrefetchScalarGridSpec(
            num_scalar_prefetch=0,
            grid=grid,
            in_specs=[
                pl.BlockSpec((bm, c), a0_map),        # current row block
                pl.BlockSpec((bm, c), a1_map),        # halo (next block)
                pl.BlockSpec((9 * c, bn), w_map),     # 9 folded tap matrices
                pl.BlockSpec((1, bn), w_map),         # bias row
            ],
            out_specs=pl.BlockSpec((bm, bn), o_map),
        ),
        compiler_params=pltpu.CompilerParams(
            dimension_semantics=("parallel", "parallel"),
            vmem_limit_bytes=VMEM_LIMIT),
    )(x_ext, x_ext, p["wmat"], p["bias"])
    return out[:mq].reshape(n, hp, wp, coutp)[:, :h, :w, :]


def conv3x3_s2_bn_act(x, p, stride, relu=True):
    # TODO(synk): the 3 stride-2 3x3 convs (block 0 of layers 2/3/4) still use
    # an HBM im2col patch tensor; all stride-1 3x3 convs use the tap kernel.
    n, h, w, c = x.shape
    xp = jnp.pad(x, ((0, 0), (1, 1), (1, 1), (0, 0)))
    oh = (h + 2 - 3) // stride + 1
    ow = (w + 2 - 3) // stride + 1
    cols = [xp[:, i:i + stride * (oh - 1) + 1:stride,
               j:j + stride * (ow - 1) + 1:stride, :]
            for i in range(3) for j in range(3)]
    patches = jnp.concatenate(cols, axis=-1).reshape(n * oh * ow, 9 * c)
    out = _matmul_bias_act(patches, p["wmat"], p["bias"], relu=relu)
    return out.reshape(n, oh, ow, -1)


def maxpool_3x3_s2_p1(x):
    # TODO(synk): taps are still stacked in HBM; small cost relative to convs.
    n, h, w, c = x.shape
    xp = jnp.pad(x, ((0, 0), (1, 1), (1, 1), (0, 0)),
                 constant_values=-jnp.inf)
    oh = (h + 2 - 3) // 2 + 1
    ow = (w + 2 - 3) // 2 + 1
    cols = [xp[:, i:i + 2 * (oh - 1) + 1:2, j:j + 2 * (ow - 1) + 1:2, :]
            for i in range(3) for j in range(3)]
    stacked = jnp.stack(cols, axis=0).reshape(9, n * oh * ow, c)
    m = n * oh * ow
    bm = 512 if m >= 512 else _round_up(m, 8)
    mp = _round_up(m, bm)
    if mp != m:
        stacked = jnp.pad(stacked, ((0, 0), (0, mp - m), (0, 0)))
    out = pl.pallas_call(
        _maxpool_kernel,
        out_shape=jax.ShapeDtypeStruct((mp, c), x.dtype),
        grid=(mp // bm,),
        in_specs=[pl.BlockSpec((9, bm, c), lambda i: (0, i, 0))],
        out_specs=pl.BlockSpec((bm, c), lambda i: (i, 0)),
        compiler_params=pltpu.CompilerParams(
            dimension_semantics=("parallel",),
            vmem_limit_bytes=VMEM_LIMIT),
    )(stacked)
    return out[:m].reshape(n, oh, ow, c)


# ----------------------------------------------------------------------------
# ResNet-101 parameters: raw (torch layout) + one-time folding pass
# ----------------------------------------------------------------------------
def _conv_bn_params(key, cout, cin, kh, kw):
    k = jax.random.split(key, 5)
    fan_in = cin * kh * kw
    w = jax.random.normal(k[0], (cout, cin, kh, kw), jnp.float32) * jnp.sqrt(
        2.0 / fan_in)
    gamma = 1.0 + 0.1 * jax.random.normal(k[1], (cout,), jnp.float32)
    beta = 0.1 * jax.random.normal(k[2], (cout,), jnp.float32)
    mean = 0.1 * jax.random.normal(k[3], (cout,), jnp.float32)
    var = 1.0 + 0.1 * jax.random.uniform(k[4], (cout,), jnp.float32)
    scale = gamma * jax.lax.rsqrt(var + EPS)     # folded eval-mode BN
    bias = beta - mean * scale
    return {"w": w, "scale": scale, "bias": bias}


def init_resnet101_params(key):
    # TODO(synk): pretrained ResNet101_Weights.DEFAULT cannot be loaded
    # in-script; parameters are randomly initialized with the same shapes.
    keys = iter(jax.random.split(key, 256))
    params = {"stem": _conv_bn_params(next(keys), 64, 3, 7, 7), "layers": []}
    inplanes = 64
    for planes, blocks, stride in LAYER_CFG:
        layer = []
        for b in range(blocks):
            s = stride if b == 0 else 1
            cin = inplanes if b == 0 else planes * 4
            blk = {
                "conv1": _conv_bn_params(next(keys), planes, cin, 1, 1),
                "conv2": _conv_bn_params(next(keys), planes, planes, 3, 3),
                "conv3": _conv_bn_params(next(keys), planes * 4, planes, 1, 1),
            }
            if b == 0 and (s != 1 or inplanes != planes * 4):
                blk["downsample"] = _conv_bn_params(next(keys), planes * 4,
                                                    cin, 1, 1)
            layer.append(blk)
        inplanes = planes * 4
        params["layers"].append(layer)
    return params


def _fold_conv(raw, cin_pad=None):
    """One-time fold: torch-layout conv+BN -> lane-padded bf16 matmul weights."""
    w, scale, bias = raw["w"], raw["scale"], raw["bias"]
    cout, cin, kh, kw = w.shape
    if cin_pad is None:
        cin_pad = _round_up(cin, 128)          # match lane-padded activations
    coutp = _round_up(cout, 128)
    w = jnp.pad(w, ((0, 0), (0, cin_pad - cin), (0, 0), (0, 0)))
    k = kh * kw * cin_pad
    kp = _round_up(k, 128)
    wmat = jnp.transpose(w, (2, 3, 1, 0)).reshape(k, cout) * scale[None, :]
    wmat = jnp.pad(wmat, ((0, kp - k), (0, coutp - cout))).astype(jnp.bfloat16)
    bvec = jnp.pad(bias, (0, coutp - cout)).astype(jnp.float32).reshape(1, coutp)
    return {"wmat": wmat, "bias": bvec}


def prepare_resnet101_params(raw):
    prep = {"stem": _fold_conv(raw["stem"], cin_pad=3), "layers": []}
    for layer_raw in raw["layers"]:
        prep["layers"].append(
            [{name: _fold_conv(c) for name, c in blk.items()}
             for blk in layer_raw])
    return prep


# ----------------------------------------------------------------------------
# Forward pass (grid_rep_extractor = everything except avgpool & fc)
# ----------------------------------------------------------------------------
def _stem_impl(images_nchw, p):
    x = jnp.transpose(images_nchw, (0, 2, 3, 1)).astype(jnp.bfloat16)  # NHWC
    n, h, w, c = x.shape
    xp = jnp.pad(x, ((0, 0), (3, 3), (3, 3), (0, 0)))
    oh = (h + 6 - 7) // 2 + 1
    ow = (w + 6 - 7) // 2 + 1
    cols = [xp[:, i:i + 2 * (oh - 1) + 1:2, j:j + 2 * (ow - 1) + 1:2, :]
            for i in range(7) for j in range(7)]
    patches = jnp.concatenate(cols, axis=-1).reshape(n * oh * ow, 49 * c)
    out = _matmul_bias_act(patches, p["wmat"], p["bias"], relu=True)
    return maxpool_3x3_s2_p1(out.reshape(n, oh, ow, -1))


_stem = jax.jit(_stem_impl)


def _bottleneck_impl(x, blk, stride):
    identity = x
    out = conv1x1_bn_act(x, blk["conv1"], relu=True)
    if stride == 1:
        out = conv3x3_s1_bn_act(out, blk["conv2"], relu=True)
    else:
        out = conv3x3_s2_bn_act(out, blk["conv2"], stride, relu=True)
    if "downsample" in blk:
        identity = conv1x1_bn_act(x, blk["downsample"], stride=stride,
                                  relu=False)
    # conv3 + BN bias + residual add + ReLU fused in one Pallas kernel.
    return conv1x1_bn_act(out, blk["conv3"], relu=True, residual=identity)


# Shape-keyed jit cache: all identically-shaped bottleneck blocks (e.g. the 22
# trailing blocks of layer3) share a single compiled executable.
_bottleneck = jax.jit(_bottleneck_impl, static_argnames=("stride",))


def res_image_encoder_forward(params, images_nchw):
    # `finetuned` only toggles requires_grad in PyTorch; no forward effect.
    x = _stem(images_nchw, params["stem"])
    for layer_p, (_, _, stride) in zip(params["layers"], LAYER_CFG):
        for b, blk in enumerate(layer_p):
            x = _bottleneck(x, blk, stride=stride if b == 0 else 1)
    return jnp.transpose(x, (0, 3, 1, 2)).astype(jnp.float32)  # NHWC -> NCHW


# ----------------------------------------------------------------------------
if __name__ == "__main__":
    key = jax.random.PRNGKey(0)
    pkey, xkey = jax.random.split(key)

    raw_params = init_resnet101_params(pkey)
    params = prepare_resnet101_params(raw_params)     # one-time weight folding
    images = jax.random.normal(xkey, (2, 3, 64, 64), jnp.float32)  # NCHW

    out = res_image_encoder_forward(params, images)
    out = jax.block_until_ready(out)

    assert out.shape == (2, 2048, 2, 2), out.shape     # (N, 2048, H/32, W/32)
    assert bool(jnp.all(jnp.isfinite(out)))
    print("KERNEL_OK")
</pallas_src>

<mosaic_0001>
module attributes {stable_mosaic.version = 11 : i64} {
  func.func @_mm_kernel(%arg0: i32, %arg1: i32, %arg2: i32, %arg3: memref<512x256xbf16, #tpu.memory_space<vmem>>, %arg4: memref<256x128xbf16, #tpu.memory_space<vmem>>, %arg5: memref<1x128xf32, #tpu.memory_space<vmem>>, %arg6: memref<512x128xbf16, #tpu.memory_space<vmem>>, %arg7: memref<512x128xf32, #tpu.memory_space<vmem>>) attributes {dimension_semantics = [#tpu.dimension_semantics<parallel>, #tpu.dimension_semantics<parallel>, #tpu.dimension_semantics<arbitrary>], iteration_bounds = array<i64: 4, 1, 1>, scalar_prefetch = 0 : i64, scratch_operands = 1 : i64, tpu.core_type = #tpu.core_type<tc>, window_params = [{transform_indices = @transform_0, window_bounds = array<i64: 512, 256>}, {transform_indices = @transform_1, window_bounds = array<i64: 256, 128>}, {transform_indices = @transform_2, window_bounds = array<i64: 1, 128>}, {transform_indices = @transform_3, window_bounds = array<i64: 512, 128>}]} {
    %c0_i32 = arith.constant 0 : i32
    %0 = arith.cmpi eq, %arg2, %c0_i32 : i32
    %1 = arith.extui %0 : i1 to i32
    %c0_i32_0 = arith.constant 0 : i32
    %2 = arith.cmpi ne, %1, %c0_i32_0 : i32
    scf.if %2 {
      %cst_10 = arith.constant 0.000000e+00 : f32
      %12 = vector.broadcast %cst_10 : f32 to vector<512x128xf32>
      %c0_11 = arith.constant 0 : index
      %c0_12 = arith.constant 0 : index
      %13 = vector.load %arg7[%c0_11, %c0_12] : memref<512x128xf32, #tpu.memory_space<vmem>>, vector<512x128xf32>
      tpu.vector_store %arg7[%c0_11, %c0_12], %12 {strides = array<i32>} : memref<512x128xf32, #tpu.memory_space<vmem>>, vector<512x128xf32>,
    } else {
    }
    %c0 = arith.constant 0 : index
    %c0_1 = arith.constant 0 : index
    %3 = vector.load %arg7[%c0, %c0_1] : memref<512x128xf32, #tpu.memory_space<vmem>>, vector<512x128xf32>
    %c0_2 = arith.constant 0 : index
    %c0_3 = arith.constant 0 : index
    %4 = vector.load %arg3[%c0_2, %c0_3] : memref<512x256xbf16, #tpu.memory_space<vmem>>, vector<512x256xbf16>
    %c0_4 = arith.constant 0 : index
    %c0_5 = arith.constant 0 : index
    %5 = vector.load %arg4[%c0_4, %c0_5] : memref<256x128xbf16, #tpu.memory_space<vmem>>, vector<256x128xbf16>
    %cst = arith.constant dense<0.000000e+00> : vector<512x128xf32>
    %6 = tpu.matmul %4, %5, %cst {dimension_numbers = #tpu.dot_dimension_numbers<[1], [0], [0], [1], [0, 0, 1, 1], [], []>} : vector<512x256xbf16>, vector<256x128xbf16>, vector<512x128xf32> -> vector<512x128xf32>
    %7 = arith.addf %3, %6 : vector<512x128xf32>
    %c0_6 = arith.constant 0 : index
    %c0_7 = arith.constant 0 : index
    %8 = vector.load %arg7[%c0_6, %c0_7] : memref<512x128xf32, #tpu.memory_space<vmem>>, vector<512x128xf32>
    tpu.vector_store %arg7[%c0_6, %c0_7], %7 {strides = array<i32>} : memref<512x128xf32, #tpu.memory_space<vmem>>, vector<512x128xf32>,
    %c0_i32_8 = arith.constant 0 : i32
    %9 = arith.cmpi eq, %arg2, %c0_i32_8 : i32
    %10 = arith.extui %9 : i1 to i32
    %c0_i32_9 = arith.constant 0 : i32
    %11 = arith.cmpi ne, %10, %c0_i32_9 : i32
    scf.if %11 {
      %c0_10 = arith.constant 0 : index
      %c0_11 = arith.constant 0 : index
      %12 = vector.load %arg7[%c0_10, %c0_11] : memref<512x128xf32, #tpu.memory_space<vmem>>, vector<512x128xf32>
      %c0_12 = arith.constant 0 : index
      %c0_13 = arith.constant 0 : index
      %13 = vector.load %arg5[%c0_12, %c0_13] : memref<1x128xf32, #tpu.memory_space<vmem>>, vector<1x128xf32>
      %14 = vector.broadcast %13 : vector<1x128xf32> to vector<512x128xf32>
      %15 = arith.addf %12, %14 : vector<512x128xf32>
      %cst_14 = arith.constant 0.000000e+00 : f32
      %16 = vector.broadcast %cst_14 : f32 to vector<512x128xf32>
      %17 = arith.maximumf %15, %16 : vector<512x128xf32>
      %18 = arith.truncf %17 : vector<512x128xf32> to vector<512x128xbf16>
      %c0_15 = arith.constant 0 : index
      %c0_16 = arith.constant 0 : index
      %19 = vector.load %arg6[%c0_15, %c0_16] : memref<512x128xbf16, #tpu.memory_space<vmem>>, vector<512x128xbf16>
      tpu.vector_store %arg6[%c0_15, %c0_16], %18 {strides = array<i32>} : memref<512x128xbf16, #tpu.memory_space<vmem>>, vector<512x128xbf16>,
    } else {
    }
    return
  }
  func.func @transform_0(%arg0: i32, %arg1: i32, %arg2: i32) -> (i32, i32) {
    %c0_i32 = arith.constant 0 : i32
    return %arg0, %arg2 : i32, i32
  }
  func.func @transform_1(%arg0: i32, %arg1: i32, %arg2: i32) -> (i32, i32) {
    %c0_i32 = arith.constant 0 : i32
    return %arg2, %arg1 : i32, i32
  }
  func.func @transform_2(%arg0: i32, %arg1: i32, %arg2: i32) -> (i32, i32) {
    %c0_i32 = arith.constant 0 : i32
    %c0_i32_0 = arith.constant 0 : i32
    return %c0_i32, %arg1 : i32, i32
  }
  func.func @transform_3(%arg0: i32, %arg1: i32, %arg2: i32) -> (i32, i32) {
    %c0_i32 = arith.constant 0 : i32
    return %arg0, %arg1 : i32, i32
  }
}

module attributes {stable_mosaic.version = 11 : i64} {
  func.func @_maxpool_kernel(%arg0: i32, %arg1: memref<9x512x128xbf16, #tpu.memory_space<vmem>>, %arg2: memref<512x128xbf16, #tpu.memory_space<vmem>>) attributes {dimension_semantics = [#tpu.dimension_semantics<parallel>], iteration_bounds = array<i64: 1>, scalar_prefetch = 0 : i64, scratch_operands = 0 : i64, tpu.core_type = #tpu.core_type<tc>, window_params = [{transform_indices = @transform_0, window_bounds = array<i64: 9, 512, 128>}, {transform_indices = @transform_1, window_bounds = array<i64: 512, 128>}]} {
    %c0 = arith.constant 0 : index
    %c0_0 = arith.constant 0 : index
    %c0_1 = arith.constant 0 : index
    %0 = vector.load %arg1[%c0, %c0_0, %c0_1] : memref<9x512x128xbf16, #tpu.memory_space<vmem>>, vector<9x512x128xbf16>
    %cst = arith.constant dense<0xFF80> : vector<512x128xbf16>
    %1 = vector.multi_reduction <maximumf>, %0, %cst [0] : vector<9x512x128xbf16> to vector<512x128xbf16>
    %c0_2 = arith.constant 0 : index
    %c0_3 = arith.constant 0 : index
    %2 = vector.load %arg2[%c0_2, %c0_3] : memref<512x128xbf16, #tpu.memory_space<vmem>>, vector<512x128xbf16>
    tpu.vector_store %arg2[%c0_2, %c0_3], %1 {strides = array<i32>} : memref<512x128xbf16, #tpu.memory_space<vmem>>, vector<512x128xbf16>,
    return
  }
  func.func @transform_0(%arg0: i32) -> (i32, i32, i32) {
    %c0_i32 = arith.constant 0 : i32
    %c0_i32_0 = arith.constant 0 : i32
    %c0_i32_1 = arith.constant 0 : i32
    return %c0_i32, %arg0, %c0_i32_0 : i32, i32, i32
  }
  func.func @transform_1(%arg0: i32) -> (i32, i32) {
    %c0_i32 = arith.constant 0 : i32
    %c0_i32_0 = arith.constant 0 : i32
    return %arg0, %c0_i32 : i32, i32
  }
}

</mosaic_0001>

<bundles_post_ra>
// kernel: _stem_impl.2
= control target key start
LH: loop header
LB: loop body
LE: loop exit
PB: predicated region body
PF: predicated region fallthrough
CT: control target
= control target key end

     0   :  { %s2594_s12 = smov 0   ;;  %s2596_s13 = smov 0   ;;  %s2880_s0 = inlined_call_operand.vmem [shape: bf16[2048,256], index: 0, kind: input, shape index: {}]   ;;  %s2881_s1 = inlined_call_operand.vmem [shape: bf16[256,128], index: 1, kind: input, shape index: {}]   ;;  %s2882_s2 = inlined_call_operand.vmem [shape: f32[1,128], index: 2, kind: input, shape index: {}]   ;;  %s2883_s3 = inlined_call_operand.vmem [shape: bf16[2048,128], index: 3, kind: output, shape index: {}]  }
   0x1   :  { %s2598_s14 = smov 0  }
   0x2 LB: > { %s32_s15 = sadd.s32 1, %s2567_s13  ;;  %p1971_p0 = scmp.ge.s32.totalorder %s2571_s14, 1  ;;  %s2571_s14 = sphi %s2598_s14, %s13_s14   ;;  %s2567_s13 = sphi %s2596_s13, %s2885_s13   ;;  %s2563_s12 = sphi %s2594_s12, %s2884_s12  }
   0x3   : > { %p34_p1 = scmp.ge.s32.totalorder %s32_s15, 4  ;;  %p191_p2 = scmp.lt.s32.totalorder %s2571_s14, 5 }
   0x5   : > { %s2887_s15 = smov (%p34_p1, %s32_s15), 0  ;;  %p192_p3 = pnand %p1971_p0, %p191_p2 }
   0x6   : > { %v2437_v0 = vld [vmem:[%s2881_s1] sm:$0xff] (!%p192_p3)   ;;  %v2573_v1 = vmov (!%p192_p3), 0   ;;  %s1972_s18 = sshll.u32 (!%p192_p3), %s2563_s12, 6  ;;  %v2438_v2 = vld [vmem:[%s2881_s1 + $0x8] sm:$0xff] (!%p192_p3)   ;;  %v2439_v3 = vld [vmem:[%s2881_s1 + $0x10] sm:$0xff] (!%p192_p3)  }
   0x7   : > { %195 = sbr.rel (%p192_p3) target bundleno = 412 (0x19c), region = 32  ;;  %912 = vmatprep.subr.bf16.mxu0 (!%p192_p3), %v2573_v1  ;;  %2380 = vmatprep.subr.bf16.mxu1 (!%p192_p3), %v2573_v1  ;;  %p236_p4 = scmp.lt.s32.totalorder (!%p192_p3), %s1972_s18, 255  ;;  %v2440_v4 = vld [vmem:[%s2881_s1 + $0x18] sm:$0xff] (!%p192_p3)   ;;  %v2441_v5 = vld [vmem:[%s2881_s1 + $0x20] sm:$0xff] (!%p192_p3)   ;;  %v2442_v7 = vld [vmem:[%s2881_s1 + $0x28] sm:$0xff] (!%p192_p3)  }
   0x8   : > { %913 = vmatpush1.bf16.msra.mxu0 (!%p192_p3), %v2437_v0  ;;  %2396 = vmatpush1.bf16.msra.mxu1 (!%p192_p3), %v2437_v0  ;;  %v2443_v9 = vld [vmem:[%s2881_s1 + $0x30] sm:$0xff] (!%p192_p3)   ;;  %v2444_v10 = vld [vmem:[%s2881_s1 + $0x38] sm:$0xff] (!%p192_p3)   ;;  %v2445_v11 = vld [vmem:[%s2881_s1 + $0x40] sm:$0xff] (!%p192_p3)  }
   0x9   : > { %914 = vmatprep.subr.bf16.mxu0 (!%p192_p3), %v2573_v1  ;;  %2381 = vmatprep.subr.bf16.mxu1 (!%p192_p3), %v2573_v1  ;;  %v2446_v12 = vld [vmem:[%s2881_s1 + $0x48] sm:$0xff] (!%p192_p3)   ;;  %v2447_v13 = vld [vmem:[%s2881_s1 + $0x50] sm:$0xff] (!%p192_p3)   ;;  %v2448_v14 = vld [vmem:[%s2881_s1 + $0x58] sm:$0xff] (!%p192_p3)  }
   0xa   : > { %v2449_v15 = vld [vmem:[%s2881_s1 + $0x60] sm:$0xff] (!%p192_p3)   ;;  %v2450_v16 = vld [vmem:[%s2881_s1 + $0x68] sm:$0xff] (!%p192_p3)   ;;  %v2451_v17 = vld [vmem:[%s2881_s1 + $0x70] sm:$0xff] (!%p192_p3)  }
   0xb   : > { %v2452_v18 = vld [vmem:[%s2881_s1 + $0x78] sm:$0xff] (!%p192_p3)  }
   0xc   : > { %915 = vmatpush1.bf16.msra.mxu0 (!%p192_p3), %v2438_v2  ;;  %2397 = vmatpush1.bf16.msra.mxu1 (!%p192_p3), %v2438_v2 }
   0xd   : > { %916 = vmatprep.subr.bf16.mxu0 (!%p192_p3), %v2573_v1  ;;  %2382 = vmatprep.subr.bf16.mxu1 (!%p192_p3), %v2573_v1 }
   0xe   : > { %s2889_s18 = smov (!%p236_p4, %s1972_s18), 255 }
   0xf   : > { %s2124_s25 = sshll.u32 %s2889_s18, 3  ;;  %s1976_s6 = sshll.u32 %s2889_s18, 2 }
  0x10   : > { %917 = vmatpush1.bf16.msra.mxu0 %v2439_v3  ;;  %2398 = vmatpush1.bf16.msra.mxu1 %v2439_v3  ;;  %s2641_s30 = scalar_lea.vmem %s2880_s0, %s2124_s25  ;;  %s2777_s8 = scalar_lea.vmem %s2883_s3, %s1976_s6 }
  0x11   : > { %918 = vmatprep.subr.bf16.mxu0 %v2573_v1  ;;  %2383 = vmatprep.subr.bf16.mxu1 %v2573_v1  ;;  %v2455_v6 = vld [vmem:[%s2641_s30 + $0x4] ss:$8 sps:$4 sm:$0xff]   ;;  %v2453_v19 = vld [vmem:[%s2641_s30] ss:$8 sps:$4 sm:$0xff]   ;;  %v2459_v21 = vld [vmem:[%s2641_s30 + $0x14] ss:$8 sps:$4 sm:$0xff]  }
  0x12   : > { %v2458_v8 = vld [vmem:[%s2641_s30 + $0x104] ss:$8 sps:$4 sm:$0xff]   ;;  %944 = vmatprep.mubr.bf16.mxu0 %v2455_v6  ;;  %v2456_v20 = vld [vmem:[%s2641_s30 + $0x100] ss:$8 sps:$4 sm:$0xff]   ;;  %v2461_v22 = vld [vmem:[%s2641_s30 + $0x114] ss:$8 sps:$4 sm:$0xff]  }
  0x13   : > { %1072 = vmatprep.mubr.bf16.mxu1 %v2458_v8  ;;  %v2463_v23 = vld [vmem:[%s2641_s30 + $0x10] ss:$8 sps:$4 sm:$0xff]   ;;  %v2465_v25 = vld [vmem:[%s2641_s30 + $0x24] ss:$8 sps:$4 sm:$0xff]   ;;  %v2469_v27 = vld [vmem:[%s2641_s30 + $0x20] ss:$8 sps:$4 sm:$0xff]  }
  0x14   : > { %919 = vmatpush1.bf16.msra.mxu0 %v2440_v4  ;;  %2399 = vmatpush1.bf16.msra.mxu1 %v2440_v4  ;;  %v2464_v24 = vld [vmem:[%s2641_s30 + $0x110] ss:$8 sps:$4 sm:$0xff]   ;;  %v2467_v26 = vld [vmem:[%s2641_s30 + $0x124] ss:$8 sps:$4 sm:$0xff]   ;;  %v2470_v28 = vld [vmem:[%s2641_s30 + $0x120] ss:$8 sps:$4 sm:$0xff]  }
  0x15   : > { %920 = vmatprep.subr.bf16.mxu0 %v2573_v1  ;;  %2384 = vmatprep.subr.bf16.mxu1 %v2573_v1  ;;  %v2471_v29 = vld [vmem:[%s2641_s30 + $0x34] ss:$8 sps:$4 sm:$0xff]   ;;  %v2475_v31 = vld [vmem:[%s2641_s30 + $0x30] ss:$8 sps:$4 sm:$0xff]   ;;  %v2477_v33 = vld [vmem:[%s2641_s30 + $0x44] ss:$8 sps:$4 sm:$0xff]  }
  0x16   : > { %v2473_v30 = vld [vmem:[%s2641_s30 + $0x134] ss:$8 sps:$4 sm:$0xff]   ;;  %v2476_v32 = vld [vmem:[%s2641_s30 + $0x130] ss:$8 sps:$4 sm:$0xff]   ;;  %v2479_v34 = vld [vmem:[%s2641_s30 + $0x144] ss:$8 sps:$4 sm:$0xff]  }
  0x17   : > { %v2481_v35 = vld [vmem:[%s2641_s30 + $0x40] ss:$8 sps:$4 sm:$0xff]   ;;  %v2483_v37 = vld [vmem:[%s2641_s30 + $0x54] ss:$8 sps:$4 sm:$0xff]   ;;  %v2487_v39 = vld [vmem:[%s2641_s30 + $0x50] ss:$8 sps:$4 sm:$0xff]  }
  0x18   : > { %921 = vmatpush1.bf16.msra.mxu0 %v2441_v5  ;;  %2400 = vmatpush1.bf16.msra.mxu1 %v2441_v5  ;;  %v2482_v36 = vld [vmem:[%s2641_s30 + $0x140] ss:$8 sps:$4 sm:$0xff]   ;;  %v2485_v38 = vld [vmem:[%s2641_s30 + $0x154] ss:$8 sps:$4 sm:$0xff]   ;;  %v2488_v40 = vld [vmem:[%s2641_s30 + $0x150] ss:$8 sps:$4 sm:$0xff]  }
  0x19   : > { %922 = vmatprep.subr.bf16.mxu0 %v2573_v1  ;;  %2385 = vmatprep.subr.bf16.mxu1 %v2573_v1  ;;  %v2489_v41 = vld [vmem:[%s2641_s30 + $0x64] ss:$8 sps:$4 sm:$0xff]   ;;  %v2493_v43 = vld [vmem:[%s2641_s30 + $0x60] ss:$8 sps:$4 sm:$0xff]   ;;  %v2495_v45 = vld [vmem:[%s2641_s30 + $0x74] ss:$8 sps:$4 sm:$0xff]  }
  0x1a   : > { %v2491_v42 = vld [vmem:[%s2641_s30 + $0x164] ss:$8 sps:$4 sm:$0xff]   ;;  %v2494_v44 = vld [vmem:[%s2641_s30 + $0x160] ss:$8 sps:$4 sm:$0xff]   ;;  %v2497_v46 = vld [vmem:[%s2641_s30 + $0x174] ss:$8 sps:$4 sm:$0xff]  }
  0x1b   : > { %v2499_v47 = vld [vmem:[%s2641_s30 + $0x70] ss:$8 sps:$4 sm:$0xff]   ;;  %v2501_v49 = vld [vmem:[%s2641_s30 + $0x84] ss:$8 sps:$4 sm:$0xff]   ;;  %v2505_v51 = vld [vmem:[%s2641_s30 + $0x80] ss:$8 sps:$4 sm:$0xff]  }
  0x1c   : > { %923 = vmatpush1.bf16.msra.mxu0 %v2442_v7  ;;  %2401 = vmatpush1.bf16.msra.mxu1 %v2442_v7  ;;  %v2500_v48 = vld [vmem:[%s2641_s30 + $0x170] ss:$8 sps:$4 sm:$0xff]   ;;  %v2503_v50 = vld [vmem:[%s2641_s30 + $0x184] ss:$8 sps:$4 sm:$0xff]   ;;  %v2506_v52 = vld [vmem:[%s2641_s30 + $0x180] ss:$8 sps:$4 sm:$0xff]  }
  0x1d   : > { %924 = vmatprep.subr.bf16.mxu0 %v2573_v1  ;;  %2386 = vmatprep.subr.bf16.mxu1 %v2573_v1  ;;  %v2507_v53 = vld [vmem:[%s2641_s30 + $0x94] ss:$8 sps:$4 sm:$0xff]   ;;  %v2511_v55 = vld [vmem:[%s2641_s30 + $0x90] ss:$8 sps:$4 sm:$0xff]   ;;  %v2513_v57 = vld [vmem:[%s2641_s30 + $0xa4] ss:$8 sps:$4 sm:$0xff]  }
  0x1e   : > { %v2509_v54 = vld [vmem:[%s2641_s30 + $0x194] ss:$8 sps:$4 sm:$0xff]   ;;  %v2512_v56 = vld [vmem:[%s2641_s30 + $0x190] ss:$8 sps:$4 sm:$0xff]   ;;  %v2515_v58 = vld [vmem:[%s2641_s30 + $0x1a4] ss:$8 sps:$4 sm:$0xff]  }
  0x1f   : > { %v2517_v59 = vld [vmem:[%s2641_s30 + $0xa0] ss:$8 sps:$4 sm:$0xff]   ;;  %v2519_v61 = vld [vmem:[%s2641_s30 + $0xb4] ss:$8 sps:$4 sm:$0xff]   ;;  %v2523_v63 = vld [vmem:[%s2641_s30 + $0xb0] ss:$8 sps:$4 sm:$0xff]  }
  0x20   : > { %925 = vmatpush1.bf16.msra.mxu0 %v2443_v9  ;;  %2402 = vmatpush1.bf16.msra.mxu1 %v2443_v9  ;;  %v2518_v60 = vld [vmem:[%s2641_s30 + $0x1a0] ss:$8 sps:$4 sm:$0xff]   ;;  %v2521_v62 = vld [vmem:[%s2641_s30 + $0x1b4] ss:$8 sps:$4 sm:$0xff]   ;;  %v2524_v0 = vld [vmem:[%s2641_s30 + $0x1b0] ss:$8 sps:$4 sm:$0xff]  }
  0x21   : > { %926 = vmatprep.subr.bf16.mxu0 %v2573_v1  ;;  %2387 = vmatprep.subr.bf16.mxu1 %v2573_v1  ;;  %v2527_v2 = vld [vmem:[%s2641_s30 + $0x1c4] ss:$8 sps:$4 sm:$0xff]   ;;  %v2529_v3 = vld [vmem:[%s2641_s30 + $0xc0] ss:$8 sps:$4 sm:$0xff]   ;;  %v2531_v5 = vld [vmem:[%s2641_s30 + $0xd4] ss:$8 sps:$4 sm:$0xff]  }
  0x22   : > { %v2530_v4 = vld [vmem:[%s2641_s30 + $0x1c0] ss:$8 sps:$4 sm:$0xff]   ;;  %v2533_v6 = vld [vmem:[%s2641_s30 + $0x1d4] ss:$8 sps:$4 sm:$0xff]   ;;  %v2535_v7 = vld [vmem:[%s2641_s30 + $0xd0] ss:$8 sps:$4 sm:$0xff]  }
  0x23   : > { %v2536_v8 = vld [vmem:[%s2641_s30 + $0x1d0] ss:$8 sps:$4 sm:$0xff]   ;;  %v2537_v9 = vld [vmem:[%s2641_s30 + $0xe4] ss:$8 sps:$4 sm:$0xff]  }
  0x24   : > { %927 = vmatpush1.bf16.msra.mxu0 %v2444_v10  ;;  %2403 = vmatpush1.bf16.msra.mxu1 %v2444_v10  ;;  %v2539_v10 = vld [vmem:[%s2641_s30 + $0x1e4] ss:$8 sps:$4 sm:$0xff]  }
  0x25   : > { %928 = vmatprep.subr.bf16.mxu0 %v2573_v1  ;;  %2388 = vmatprep.subr.bf16.mxu1 %v2573_v1 }
  0x28   : > { %929 = vmatpush1.bf16.msra.mxu0 %v2445_v11  ;;  %2404 = vmatpush1.bf16.msra.mxu1 %v2445_v11  ;;  %v2541_v11 = vld [vmem:[%s2641_s30 + $0xe0] ss:$8 sps:$4 sm:$0xff]  }
  0x29   : > { %930 = vmatprep.subr.bf16.mxu0 %v2573_v1  ;;  %2389 = vmatprep.subr.bf16.mxu1 %v2573_v1 }
  0x2c   : > { %931 = vmatpush1.bf16.msra.mxu0 %v2446_v12  ;;  %2405 = vmatpush1.bf16.msra.mxu1 %v2446_v12  ;;  %v2542_v12 = vld [vmem:[%s2641_s30 + $0x1e0] ss:$8 sps:$4 sm:$0xff]  }
  0x2d   : > { %932 = vmatprep.subr.bf16.mxu0 %v2573_v1  ;;  %2390 = vmatprep.subr.bf16.mxu1 %v2573_v1 }
  0x30   : > { %933 = vmatpush1.bf16.msra.mxu0 %v2447_v13  ;;  %2406 = vmatpush1.bf16.msra.mxu1 %v2447_v13  ;;  %v2543_v13 = vld [vmem:[%s2641_s30 + $0xf4] ss:$8 sps:$4 sm:$0xff]  }
  0x31   : > { %934 = vmatprep.subr.bf16.mxu0 %v2573_v1  ;;  %2391 = vmatprep.subr.bf16.mxu1 %v2573_v1 }
  0x34   : > { %935 = vmatpush1.bf16.msra.mxu0 %v2448_v14  ;;  %2407 = vmatpush1.bf16.msra.mxu1 %v2448_v14  ;;  %v2545_v14 = vld [vmem:[%s2641_s30 + $0x1f4] ss:$8 sps:$4 sm:$0xff]  }
  0x35   : > { %936 = vmatprep.subr.bf16.mxu0 %v2573_v1  ;;  %2392 = vmatprep.subr.bf16.mxu1 %v2573_v1 }
  0x38   : > { %937 = vmatpush1.bf16.msra.mxu0 %v2449_v15  ;;  %2408 = vmatpush1.bf16.msra.mxu1 %v2449_v15  ;;  %v2547_v15 = vld [vmem:[%s2641_s30 + $0xf0] ss:$8 sps:$4 sm:$0xff]  }
  0x39   : > { %938 = vmatprep.subr.bf16.mxu0 %v2573_v1  ;;  %2393 = vmatprep.subr.bf16.mxu1 %v2573_v1 }
  0x3c   : > { %939 = vmatpush1.bf16.msra.mxu0 %v2450_v16  ;;  %2409 = vmatpush1.bf16.msra.mxu1 %v2450_v16  ;;  %v2548_v16 = vld [vmem:[%s2641_s30 + $0x1f0] ss:$8 sps:$4 sm:$0xff]  }
  0x3d   : > { %940 = vmatprep.subr.bf16.mxu0 %v2573_v1  ;;  %2394 = vmatprep.subr.bf16.mxu1 %v2573_v1 }
  0x40   : > { %941 = vmatpush1.bf16.msra.mxu0 %v2451_v17  ;;  %2410 = vmatpush1.bf16.msra.mxu1 %v2451_v17  ;;  %v2767_v17 = vld [vmem:[%s2882_s2] ss:$0 sm:$0xff] }
  0x41   : > { %942 = vmatprep.subr.bf16.mxu0 %v2573_v1  ;;  %2395 = vmatprep.subr.bf16.mxu1 %v2573_v1  ;;  %v2525_v1 = vld [vmem:[%s2641_s30 + $0xc4] ss:$8 sps:$4 sm:$0xff]  }
  0x44   : > { %943 = vmatpush1.bf16.msra.mxu0 %v2452_v18  ;;  %2411 = vmatpush1.bf16.msra.mxu1 %v2452_v18 }
  0x47   : > { %945 = vmatmul.mubr.bf16.vlgmr.msra.gmra.mrb[0].mxu0 %v2453_v19  ;;  %1073 = vmatmul.mubr.bf16.vlgmr.msra.gmra.mrb[0].mxu1 %v2456_v20 }
  0x48   : > { %952 = vmatprep.mubr.bf16.mxu0 %v2459_v21  ;;  %1080 = vmatprep.mubr.bf16.mxu1 %v2461_v22 }
  0x4f   : > { %953 = vmatmul.mubr.bf16.gmra.mrb[4].mxu0 %v2463_v23  ;;  %1081 = vmatmul.mubr.bf16.gmra.mrb[4].mxu1 %v2464_v24 }
  0x50   : > { %960 = vmatprep.mubr.bf16.mxu0 %v2465_v25  ;;  %1088 = vmatprep.mubr.bf16.mxu1 %v2467_v26 }
  0x57   : > { %961 = vmatmul.mubr.bf16.gmra.mrb[8].mxu0 %v2469_v27  ;;  %1089 = vmatmul.mubr.bf16.gmra.mrb[8].mxu1 %v2470_v28 }
  0x58   : > { %968 = vmatprep.mubr.bf16.mxu0 %v2471_v29  ;;  %1096 = vmatprep.mubr.bf16.mxu1 %v2473_v30 }
  0x5f   : > { %969 = vmatmul.mubr.bf16.gmra.mrb[12].mxu0 %v2475_v31  ;;  %1097 = vmatmul.mubr.bf16.gmra.mrb[12].mxu1 %v2476_v32 }
  0x60   : > { %976 = vmatprep.mubr.bf16.mxu0 %v2477_v33  ;;  %1104 = vmatprep.mubr.bf16.mxu1 %v2479_v34 }
  0x67   : > { %977 = vmatmul.mubr.bf16.gmra.mrb[16].mxu0 %v2481_v35  ;;  %1105 = vmatmul.mubr.bf16.gmra.mrb[16].mxu1 %v2482_v36 }
  0x68   : > { %984 = vmatprep.mubr.bf16.mxu0 %v2483_v37  ;;  %1112 = vmatprep.mubr.bf16.mxu1 %v2485_v38 }
  0x6f   : > { %985 = vmatmul.mubr.bf16.gmra.mrb[20].mxu0 %v2487_v39  ;;  %1113 = vmatmul.mubr.bf16.gmra.mrb[20].mxu1 %v2488_v40 }
  0x70   : > { %992 = vmatprep.mubr.bf16.mxu0 %v2489_v41  ;;  %1120 = vmatprep.mubr.bf16.mxu1 %v2491_v42 }
  0x77   : > { %993 = vmatmul.mubr.bf16.gmra.mrb[24].mxu0 %v2493_v43  ;;  %1121 = vmatmul.mubr.bf16.gmra.mrb[24].mxu1 %v2494_v44 }
  0x78   : > { %1000 = vmatprep.mubr.bf16.mxu0 %v2495_v45  ;;  %1128 = vmatprep.mubr.bf16.mxu1 %v2497_v46 }
  0x7f   : > { %1001 = vmatmul.mubr.bf16.gmra.mrb[28].mxu0 %v2499_v47  ;;  %1129 = vmatmul.mubr.bf16.gmra.mrb[28].mxu1 %v2500_v48 }
  0x80   : > { %1008 = vmatprep.mubr.bf16.mxu0 %v2501_v49  ;;  %1136 = vmatprep.mubr.bf16.mxu1 %v2503_v50 }
  0x87   : > { %1009 = vmatmul.mubr.bf16.gmra.mrb[32].mxu0 %v2505_v51  ;;  %1137 = vmatmul.mubr.bf16.gmra.mrb[32].mxu1 %v2506_v52 }
  0x88   : > { %1016 = vmatprep.mubr.bf16.mxu0 %v2507_v53  ;;  %1144 = vmatprep.mubr.bf16.mxu1 %v2509_v54 }
  0x8f   : > { %1017 = vmatmul.mubr.bf16.gmra.mrb[36].mxu0 %v2511_v55  ;;  %1145 = vmatmul.mubr.bf16.gmra.mrb[36].mxu1 %v2512_v56 }
  0x90   : > { %1024 = vmatprep.mubr.bf16.mxu0 %v2513_v57  ;;  %1152 = vmatprep.mubr.bf16.mxu1 %v2515_v58 }
  0x97   : > { %1025 = vmatmul.mubr.bf16.gmra.mrb[40].mxu0 %v2517_v59  ;;  %1153 = vmatmul.mubr.bf16.gmra.mrb[40].mxu1 %v2518_v60 }
  0x98   : > { %1032 = vmatprep.mubr.bf16.mxu0 %v2519_v61  ;;  %1160 = vmatprep.mubr.bf16.mxu1 %v2521_v62 }
  0x9f   : > { %1033 = vmatmul.mubr.bf16.gmra.mrb[44].mxu0 %v2523_v63  ;;  %1161 = vmatmul.mubr.bf16.gmra.mrb[44].mxu1 %v2524_v0 }
  0xa0   : > { %1040 = vmatprep.mubr.bf16.mxu0 %v2525_v1  ;;  %1168 = vmatprep.mubr.bf16.mxu1 %v2527_v2 }
  0xa7   : > { %1041 = vmatmul.mubr.bf16.gmra.mrb[48].mxu0 %v2529_v3  ;;  %1169 = vmatmul.mubr.bf16.gmra.mrb[48].mxu1 %v2530_v4 }
  0xa8   : > { %1048 = vmatprep.mubr.bf16.mxu0 %v2531_v5  ;;  %1176 = vmatprep.mubr.bf16.mxu1 %v2533_v6 }
  0xaf   : > { %1049 = vmatmul.mubr.bf16.gmra.mrb[52].mxu0 %v2535_v7  ;;  %1177 = vmatmul.mubr.bf16.gmra.mrb[52].mxu1 %v2536_v8 }
  0xb0   : > { %1056 = vmatprep.mubr.bf16.mxu0 %v2537_v9  ;;  %1184 = vmatprep.mubr.bf16.mxu1 %v2539_v10 }
  0xb7   : > { %1057 = vmatmul.mubr.bf16.gmra.mrb[56].mxu0 %v2541_v11  ;;  %1185 = vmatmul.mubr.bf16.gmra.mrb[56].mxu1 %v2542_v12 }
  0xb8   : > { %1064 = vmatprep.mubr.bf16.mxu0 %v2543_v13  ;;  %1192 = vmatprep.mubr.bf16.mxu1 %v2545_v14 }
  0xbf   : > { %1065 = vmatmul.mubr.bf16.gmra.mrb[60].mxu0 %v2547_v15  ;;  %1193 = vmatmul.mubr.bf16.gmra.mrb[60].mxu1 %v2548_v16 }
 0x11a   : > { %v946_v18 = vpop.f32.mrb[0].mxu0  ;;  %v1074_v19 = vpop.f32.mrb[0].mxu1 }
 0x11b   : > { %v1403_v20 = vadd.f32 %v2767_v17, %v946_v18  ;;  %v1435_v21 = vadd.f32 %v2767_v17, %v1074_v19  ;;  %v948_v22 = vpop.f32.mrb[1].mxu0  ;;  %v1076_v23 = vpop.f32.mrb[1].mxu1 }
 0x11c   : > { %v949_v24 = vpop.f32.mrb[2].mxu0  ;;  %v1077_v25 = vpop.f32.mrb[2].mxu1 }
 0x11d   : > { %v1404_v26 = vadd.f32 %v2767_v17, %v949_v24  ;;  %v1436_v27 = vadd.f32 %v2767_v17, %v1077_v25  ;;  %v951_v28 = vpop.f32.mrb[3].mxu0  ;;  %v1079_v29 = vpop.f32.mrb[3].mxu1  ;;  %v1467_v30 = vmax.f32 %v1403_v20, 0.0  ;;  %v1499_v31 = vmax.f32 %v1435_v21, 0.0 }
 0x11f   : > { %v1468_v32 = vmax.f32 %v1404_v26, 0.0  ;;  %v1500_v33 = vmax.f32 %v1436_v27, 0.0 }
 0x121   : > { %v2192_v34 = vpack.c.bf16 %v1468_v32, %v1467_v30  ;;  %v2272_v35 = vpack.c.bf16 %v1500_v33, %v1499_v31 }
 0x122   : > { %v954_v36 = vpop.f32.mrb[4].mxu0  ;;  %v1082_v37 = vpop.f32.mrb[4].mxu1 }
 0x123   : > { %2193 = vst [vmem:[%s2777_s8] sm:$0xff] %v2192_v34   ;;  %2364 = vst [vmem:[%s2777_s8 + $0x80] sm:$0xff] %v2272_v35   ;;  %v1405_v38 = vadd.f32 %v2767_v17, %v954_v36  ;;  %v1437_v39 = vadd.f32 %v2767_v17, %v1082_v37  ;;  %v956_v40 = vpop.f32.mrb[5].mxu0  ;;  %v1084_v41 = vpop.f32.mrb[5].mxu1 }
 0x124   : > { %v957_v42 = vpop.f32.mrb[6].mxu0  ;;  %v1085_v43 = vpop.f32.mrb[6].mxu1 }
 0x125   : > { %v1406_v44 = vadd.f32 %v2767_v17, %v957_v42  ;;  %v1438_v45 = vadd.f32 %v2767_v17, %v1085_v43  ;;  %v959_v46 = vpop.f32.mrb[7].mxu0  ;;  %v1087_v47 = vpop.f32.mrb[7].mxu1  ;;  %v1469_v48 = vmax.f32 %v1405_v38, 0.0  ;;  %v1501_v49 = vmax.f32 %v1437_v39, 0.0 }
 0x127   : > { %v1470_v50 = vmax.f32 %v1406_v44, 0.0  ;;  %v1502_v51 = vmax.f32 %v1438_v45, 0.0 }
 0x129   : > { %v2197_v52 = vpack.c.bf16 %v1470_v50, %v1469_v48  ;;  %v2277_v53 = vpack.c.bf16 %v1502_v51, %v1501_v49 }
 0x12a   : > { %v962_v54 = vpop.f32.mrb[8].mxu0  ;;  %v1090_v55 = vpop.f32.mrb[8].mxu1 }
 0x12b   : > { %2349 = vst [vmem:[%s2777_s8 + $0x8] sm:$0xff] %v2197_v52   ;;  %2365 = vst [vmem:[%s2777_s8 + $0x88] sm:$0xff] %v2277_v53   ;;  %v1407_v56 = vadd.f32 %v2767_v17, %v962_v54  ;;  %v1439_v57 = vadd.f32 %v2767_v17, %v1090_v55  ;;  %v964_v58 = vpop.f32.mrb[9].mxu0  ;;  %v1092_v59 = vpop.f32.mrb[9].mxu1 }
 0x12c   : > { %v965_v60 = vpop.f32.mrb[10].mxu0  ;;  %v1093_v61 = vpop.f32.mrb[10].mxu1 }
 0x12d   : > { %v1408_v62 = vadd.f32 %v2767_v17, %v965_v60  ;;  %v1440_v63 = vadd.f32 %v2767_v17, %v1093_v61  ;;  %v967_v0 = vpop.f32.mrb[11].mxu0  ;;  %v1095_v1 = vpop.f32.mrb[11].mxu1  ;;  %v1471_v2 = vmax.f32 %v1407_v56, 0.0  ;;  %v1503_v3 = vmax.f32 %v1439_v57, 0.0 }
 0x12f   : > { %v1472_v4 = vmax.f32 %v1408_v62, 0.0  ;;  %v1504_v5 = vmax.f32 %v1440_v63, 0.0 }
 0x131   : > { %v2202_v6 = vpack.c.bf16 %v1472_v4, %v1471_v2  ;;  %v2282_v7 = vpack.c.bf16 %v1504_v5, %v1503_v3 }
 0x132   : > { %v970_v8 = vpop.f32.mrb[12].mxu0  ;;  %v1098_v9 = vpop.f32.mrb[12].mxu1 }
 0x133   : > { %2350 = vst [vmem:[%s2777_s8 + $0x10] sm:$0xff] %v2202_v6   ;;  %2366 = vst [vmem:[%s2777_s8 + $0x90] sm:$0xff] %v2282_v7   ;;  %v1409_v10 = vadd.f32 %v2767_v17, %v970_v8  ;;  %v1441_v11 = vadd.f32 %v2767_v17, %v1098_v9  ;;  %v972_v12 = vpop.f32.mrb[13].mxu0  ;;  %v1100_v13 = vpop.f32.mrb[13].mxu1 }
 0x134   : > { %v973_v14 = vpop.f32.mrb[14].mxu0  ;;  %v1101_v15 = vpop.f32.mrb[14].mxu1 }
 0x135   : > { %v1410_v16 = vadd.f32 %v2767_v17, %v973_v14  ;;  %v1442_v18 = vadd.f32 %v2767_v17, %v1101_v15  ;;  %v975_v19 = vpop.f32.mrb[15].mxu0  ;;  %v1103_v20 = vpop.f32.mrb[15].mxu1  ;;  %v1473_v21 = vmax.f32 %v1409_v10, 0.0  ;;  %v1505_v22 = vmax.f32 %v1441_v11, 0.0 }
 0x137   : > { %v1474_v23 = vmax.f32 %v1410_v16, 0.0  ;;  %v1506_v24 = vmax.f32 %v1442_v18, 0.0 }
 0x139   : > { %v2207_v25 = vpack.c.bf16 %v1474_v23, %v1473_v21  ;;  %v2287_v26 = vpack.c.bf16 %v1506_v24, %v1505_v22 }
 0x13a   : > { %v978_v27 = vpop.f32.mrb[16].mxu0  ;;  %v1106_v28 = vpop.f32.mrb[16].mxu1 }
 0x13b   : > { %2351 = vst [vmem:[%s2777_s8 + $0x18] sm:$0xff] %v2207_v25   ;;  %2367 = vst [vmem:[%s2777_s8 + $0x98] sm:$0xff] %v2287_v26   ;;  %v1411_v29 = vadd.f32 %v2767_v17, %v978_v27  ;;  %v1443_v30 = vadd.f32 %v2767_v17, %v1106_v28  ;;  %v980_v31 = vpop.f32.mrb[17].mxu0  ;;  %v1108_v32 = vpop.f32.mrb[17].mxu1 }
 0x13c   : > { %v981_v33 = vpop.f32.mrb[18].mxu0  ;;  %v1109_v34 = vpop.f32.mrb[18].mxu1 }
 0x13d   : > { %v1412_v35 = vadd.f32 %v2767_v17, %v981_v33  ;;  %v1444_v36 = vadd.f32 %v2767_v17, %v1109_v34  ;;  %v983_v37 = vpop.f32.mrb[19].mxu0  ;;  %v1111_v38 = vpop.f32.mrb[19].mxu1  ;;  %v1475_v39 = vmax.f32 %v1411_v29, 0.0  ;;  %v1507_v40 = vmax.f32 %v1443_v30, 0.0 }
 0x13f   : > { %v1476_v41 = vmax.f32 %v1412_v35, 0.0  ;;  %v1508_v42 = vmax.f32 %v1444_v36, 0.0 }
 0x141   : > { %v2212_v43 = vpack.c.bf16 %v1476_v41, %v1475_v39  ;;  %v2292_v44 = vpack.c.bf16 %v1508_v42, %v1507_v40 }
 0x142   : > { %v986_v45 = vpop.f32.mrb[20].mxu0  ;;  %v1114_v46 = vpop.f32.mrb[20].mxu1 }
 0x143   : > { %2352 = vst [vmem:[%s2777_s8 + $0x20] sm:$0xff] %v2212_v43   ;;  %2368 = vst [vmem:[%s2777_s8 + $0xa0] sm:$0xff] %v2292_v44   ;;  %v1413_v47 = vadd.f32 %v2767_v17, %v986_v45  ;;  %v1445_v48 = vadd.f32 %v2767_v17, %v1114_v46  ;;  %v988_v49 = vpop.f32.mrb[21].mxu0  ;;  %v1116_v50 = vpop.f32.mrb[21].mxu1 }
 0x144   : > { %v989_v51 = vpop.f32.mrb[22].mxu0  ;;  %v1117_v52 = vpop.f32.mrb[22].mxu1 }
 0x145   : > { %v1414_v53 = vadd.f32 %v2767_v17, %v989_v51  ;;  %v1446_v54 = vadd.f32 %v2767_v17, %v1117_v52  ;;  %v991_v55 = vpop.f32.mrb[23].mxu0  ;;  %v1119_v56 = vpop.f32.mrb[23].mxu1  ;;  %v1477_v57 = vmax.f32 %v1413_v47, 0.0  ;;  %v1509_v58 = vmax.f32 %v1445_v48, 0.0 }
 0x147   : > { %v1478_v59 = vmax.f32 %v1414_v53, 0.0  ;;  %v1510_v60 = vmax.f32 %v1446_v54, 0.0 }
 0x149   : > { %v2217_v61 = vpack.c.bf16 %v1478_v59, %v1477_v57  ;;  %v2297_v62 = vpack.c.bf16 %v1510_v60, %v1509_v58 }
 0x14a   : > { %v994_v63 = vpop.f32.mrb[24].mxu0  ;;  %v1122_v0 = vpop.f32.mrb[24].mxu1 }
 0x14b   : > { %2353 = vst [vmem:[%s2777_s8 + $0x28] sm:$0xff] %v2217_v61   ;;  %2369 = vst [vmem:[%s2777_s8 + $0xa8] sm:$0xff] %v2297_v62   ;;  %v1415_v1 = vadd.f32 %v2767_v17, %v994_v63  ;;  %v1447_v2 = vadd.f32 %v2767_v17, %v1122_v0  ;;  %v996_v3 = vpop.f32.mrb[25].mxu0  ;;  %v1124_v4 = vpop.f32.mrb[25].mxu1 }
 0x14c   : > { %v997_v5 = vpop.f32.mrb[26].mxu0  ;;  %v1125_v6 = vpop.f32.mrb[26].mxu1 }
 0x14d   : > { %v1416_v7 = vadd.f32 %v2767_v17, %v997_v5  ;;  %v1448_v8 = vadd.f32 %v2767_v17, %v1125_v6  ;;  %v999_v9 = vpop.f32.mrb[27].mxu0  ;;  %v1127_v10 = vpop.f32.mrb[27].mxu1  ;;  %v1479_v11 = vmax.f32 %v1415_v1, 0.0  ;;  %v1511_v12 = vmax.f32 %v1447_v2, 0.0 }
 0x14f   : > { %v1480_v13 = vmax.f32 %v1416_v7, 0.0  ;;  %v1512_v14 = vmax.f32 %v1448_v8, 0.0 }
 0x151   : > { %v2222_v15 = vpack.c.bf16 %v1480_v13, %v1479_v11  ;;  %v2302_v16 = vpack.c.bf16 %v1512_v14, %v1511_v12 }
 0x152   : > { %v1002_v18 = vpop.f32.mrb[28].mxu0  ;;  %v1130_v19 = vpop.f32.mrb[28].mxu1 }
 0x153   : > { %2354 = vst [vmem:[%s2777_s8 + $0x30] sm:$0xff] %v2222_v15   ;;  %2370 = vst [vmem:[%s2777_s8 + $0xb0] sm:$0xff] %v2302_v16   ;;  %v1417_v20 = vadd.f32 %v2767_v17, %v1002_v18  ;;  %v1449_v21 = vadd.f32 %v2767_v17, %v1130_v19  ;;  %v1004_v22 = vpop.f32.mrb[29].mxu0  ;;  %v1132_v23 = vpop.f32.mrb[29].mxu1 }
 0x154   : > { %v1005_v24 = vpop.f32.mrb[30].mxu0  ;;  %v1133_v25 = vpop.f32.mrb[30].mxu1 }
 0x155   : > { %v1418_v26 = vadd.f32 %v2767_v17, %v1005_v24  ;;  %v1450_v27 = vadd.f32 %v2767_v17, %v1133_v25  ;;  %v1007_v28 = vpop.f32.mrb[31].mxu0  ;;  %v1135_v29 = vpop.f32.mrb[31].mxu1  ;;  %v1481_v30 = vmax.f32 %v1417_v20, 0.0  ;;  %v1513_v31 = vmax.f32 %v1449_v21, 0.0 }
 0x157   : > { %v1482_v32 = vmax.f32 %v1418_v26, 0.0  ;;  %v1514_v33 = vmax.f32 %v1450_v27, 0.0 }
 0x159   : > { %v2227_v34 = vpack.c.bf16 %v1482_v32, %v1481_v30  ;;  %v2307_v35 = vpack.c.bf16 %v1514_v33, %v1513_v31 }
 0x15a   : > { %v1010_v36 = vpop.f32.mrb[32].mxu0  ;;  %v1138_v37 = vpop.f32.mrb[32].mxu1 }
 0x15b   : > { %2355 = vst [vmem:[%s2777_s8 + $0x38] sm:$0xff] %v2227_v34   ;;  %2371 = vst [vmem:[%s2777_s8 + $0xb8] sm:$0xff] %v2307_v35   ;;  %v1419_v38 = vadd.f32 %v2767_v17, %v1010_v36  ;;  %v1451_v39 = vadd.f32 %v2767_v17, %v1138_v37  ;;  %v1012_v40 = vpop.f32.mrb[33].mxu0  ;;  %v1140_v41 = vpop.f32.mrb[33].mxu1 }
 0x15c   : > { %v1013_v42 = vpop.f32.mrb[34].mxu0  ;;  %v1141_v43 = vpop.f32.mrb[34].mxu1 }
 0x15d   : > { %v1420_v44 = vadd.f32 %v2767_v17, %v1013_v42  ;;  %v1452_v45 = vadd.f32 %v2767_v17, %v1141_v43  ;;  %v1015_v46 = vpop.f32.mrb[35].mxu0  ;;  %v1143_v47 = vpop.f32.mrb[35].mxu1  ;;  %v1483_v48 = vmax.f32 %v1419_v38, 0.0  ;;  %v1515_v49 = vmax.f32 %v1451_v39, 0.0 }
 0x15f   : > { %v1484_v50 = vmax.f32 %v1420_v44, 0.0  ;;  %v1516_v51 = vmax.f32 %v1452_v45, 0.0 }
 0x161   : > { %v2232_v52 = vpack.c.bf16 %v1484_v50, %v1483_v48  ;;  %v2312_v53 = vpack.c.bf16 %v1516_v51, %v1515_v49 }
 0x162   : > { %v1018_v54 = vpop.f32.mrb[36].mxu0  ;;  %v1146_v55 = vpop.f32.mrb[36].mxu1 }
 0x163   : > { %2356 = vst [vmem:[%s2777_s8 + $0x40] sm:$0xff] %v2232_v52   ;;  %2372 = vst [vmem:[%s2777_s8 + $0xc0] sm:$0xff] %v2312_v53   ;;  %v1421_v56 = vadd.f32 %v2767_v17, %v1018_v54  ;;  %v1453_v57 = vadd.f32 %v2767_v17, %v1146_v55  ;;  %v1020_v58 = vpop.f32.mrb[37].mxu0  ;;  %v1148_v59 = vpop.f32.mrb[37].mxu1 }
 0x164   : > { %v1021_v60 = vpop.f32.mrb[38].mxu0  ;;  %v1149_v61 = vpop.f32.mrb[38].mxu1 }
 0x165   : > { %v1422_v62 = vadd.f32 %v2767_v17, %v1021_v60  ;;  %v1454_v63 = vadd.f32 %v2767_v17, %v1149_v61  ;;  %v1023_v0 = vpop.f32.mrb[39].mxu0  ;;  %v1151_v1 = vpop.f32.mrb[39].mxu1  ;;  %v1485_v2 = vmax.f32 %v1421_v56, 0.0  ;;  %v1517_v3 = vmax.f32 %v1453_v57, 0.0 }
 0x167   : > { %v1486_v4 = vmax.f32 %v1422_v62, 0.0  ;;  %v1518_v5 = vmax.f32 %v1454_v63, 0.0 }
 0x169   : > { %v2237_v6 = vpack.c.bf16 %v1486_v4, %v1485_v2  ;;  %v2317_v7 = vpack.c.bf16 %v1518_v5, %v1517_v3 }
 0x16a   : > { %v1026_v8 = vpop.f32.mrb[40].mxu0  ;;  %v1154_v9 = vpop.f32.mrb[40].mxu1 }
 0x16b   : > { %2357 = vst [vmem:[%s2777_s8 + $0x48] sm:$0xff] %v2237_v6   ;;  %2373 = vst [vmem:[%s2777_s8 + $0xc8] sm:$0xff] %v2317_v7   ;;  %v1423_v10 = vadd.f32 %v2767_v17, %v1026_v8  ;;  %v1455_v11 = vadd.f32 %v2767_v17, %v1154_v9  ;;  %v1028_v12 = vpop.f32.mrb[41].mxu0  ;;  %v1156_v13 = vpop.f32.mrb[41].mxu1 }
 0x16c   : > { %v1029_v14 = vpop.f32.mrb[42].mxu0  ;;  %v1157_v15 = vpop.f32.mrb[42].mxu1 }
 0x16d   : > { %v1424_v16 = vadd.f32 %v2767_v17, %v1029_v14  ;;  %v1456_v18 = vadd.f32 %v2767_v17, %v1157_v15  ;;  %v1031_v19 = vpop.f32.mrb[43].mxu0  ;;  %v1159_v20 = vpop.f32.mrb[43].mxu1  ;;  %v1487_v21 = vmax.f32 %v1423_v10, 0.0  ;;  %v1519_v22 = vmax.f32 %v1455_v11, 0.0 }
 0x16f   : > { %v1488_v23 = vmax.f32 %v1424_v16, 0.0  ;;  %v1520_v24 = vmax.f32 %v1456_v18, 0.0 }
 0x171   : > { %v2242_v25 = vpack.c.bf16 %v1488_v23, %v1487_v21  ;;  %v2322_v26 = vpack.c.bf16 %v1520_v24, %v1519_v22 }
 0x172   : > { %v1034_v27 = vpop.f32.mrb[44].mxu0  ;;  %v1162_v28 = vpop.f32.mrb[44].mxu1 }
 0x173   : > { %2358 = vst [vmem:[%s2777_s8 + $0x50] sm:$0xff] %v2242_v25   ;;  %2374 = vst [vmem:[%s2777_s8 + $0xd0] sm:$0xff] %v2322_v26   ;;  %v1425_v29 = vadd.f32 %v2767_v17, %v1034_v27  ;;  %v1457_v30 = vadd.f32 %v2767_v17, %v1162_v28  ;;  %v1036_v31 = vpop.f32.mrb[45].mxu0  ;;  %v1164_v32 = vpop.f32.mrb[45].mxu1 }
 0x174   : > { %v1037_v33 = vpop.f32.mrb[46].mxu0  ;;  %v1165_v34 = vpop.f32.mrb[46].mxu1 }
 0x175   : > { %v1426_v35 = vadd.f32 %v2767_v17, %v1037_v33  ;;  %v1458_v36 = vadd.f32 %v2767_v17, %v1165_v34  ;;  %v1039_v37 = vpop.f32.mrb[47].mxu0  ;;  %v1167_v38 = vpop.f32.mrb[47].mxu1  ;;  %v1489_v39 = vmax.f32 %v1425_v29, 0.0  ;;  %v1521_v40 = vmax.f32 %v1457_v30, 0.0 }
 0x177   : > { %v1490_v41 = vmax.f32 %v1426_v35, 0.0  ;;  %v1522_v42 = vmax.f32 %v1458_v36, 0.0 }
 0x179   : > { %v2247_v43 = vpack.c.bf16 %v1490_v41, %v1489_v39  ;;  %v2327_v44 = vpack.c.bf16 %v1522_v42, %v1521_v40 }
 0x17a   : > { %v1042_v45 = vpop.f32.mrb[48].mxu0  ;;  %v1170_v46 = vpop.f32.mrb[48].mxu1 }
 0x17b   : > { %2359 = vst [vmem:[%s2777_s8 + $0x58] sm:$0xff] %v2247_v43   ;;  %2375 = vst [vmem:[%s2777_s8 + $0xd8] sm:$0xff] %v2327_v44   ;;  %v1427_v47 = vadd.f32 %v2767_v17, %v1042_v45  ;;  %v1459_v48 = vadd.f32 %v2767_v17, %v1170_v46  ;;  %v1044_v49 = vpop.f32.mrb[49].mxu0  ;;  %v1172_v50 = vpop.f32.mrb[49].mxu1 }
 0x17c   : > { %v1045_v51 = vpop.f32.mrb[50].mxu0  ;;  %v1173_v52 = vpop.f32.mrb[50].mxu1 }
 0x17d   : > { %v1428_v53 = vadd.f32 %v2767_v17, %v1045_v51  ;;  %v1460_v54 = vadd.f32 %v2767_v17, %v1173_v52  ;;  %v1047_v55 = vpop.f32.mrb[51].mxu0  ;;  %v1175_v56 = vpop.f32.mrb[51].mxu1  ;;  %v1491_v57 = vmax.f32 %v1427_v47, 0.0  ;;  %v1523_v58 = vmax.f32 %v1459_v48, 0.0 }
 0x17f   : > { %v1492_v59 = vmax.f32 %v1428_v53, 0.0  ;;  %v1524_v60 = vmax.f32 %v1460_v54, 0.0 }
 0x181   : > { %v2252_v61 = vpack.c.bf16 %v1492_v59, %v1491_v57  ;;  %v2332_v62 = vpack.c.bf16 %v1524_v60, %v1523_v58 }
 0x182   : > { %v1050_v63 = vpop.f32.mrb[52].mxu0  ;;  %v1178_v0 = vpop.f32.mrb[52].mxu1 }
 0x183   : > { %2360 = vst [vmem:[%s2777_s8 + $0x60] sm:$0xff] %v2252_v61   ;;  %2376 = vst [vmem:[%s2777_s8 + $0xe0] sm:$0xff] %v2332_v62   ;;  %v1429_v1 = vadd.f32 %v2767_v17, %v1050_v63  ;;  %v1461_v2 = vadd.f32 %v2767_v17, %v1178_v0  ;;  %v1052_v3 = vpop.f32.mrb[53].mxu0  ;;  %v1180_v4 = vpop.f32.mrb[53].mxu1 }
 0x184   : > { %v1053_v5 = vpop.f32.mrb[54].mxu0  ;;  %v1181_v6 = vpop.f32.mrb[54].mxu1 }
 0x185   : > { %v1430_v7 = vadd.f32 %v2767_v17, %v1053_v5  ;;  %v1462_v8 = vadd.f32 %v2767_v17, %v1181_v6  ;;  %v1055_v9 = vpop.f32.mrb[55].mxu0  ;;  %v1183_v10 = vpop.f32.mrb[55].mxu1  ;;  %v1493_v11 = vmax.f32 %v1429_v1, 0.0  ;;  %v1525_v12 = vmax.f32 %v1461_v2, 0.0 }
 0x187   : > { %v1494_v13 = vmax.f32 %v1430_v7, 0.0  ;;  %v1526_v14 = vmax.f32 %v1462_v8, 0.0 }
 0x189   : > { %v2257_v15 = vpack.c.bf16 %v1494_v13, %v1493_v11  ;;  %v2337_v16 = vpack.c.bf16 %v1526_v14, %v1525_v12 }
 0x18a   : > { %v1058_v18 = vpop.f32.mrb[56].mxu0  ;;  %v1186_v19 = vpop.f32.mrb[56].mxu1 }
 0x18b   : > { %2361 = vst [vmem:[%s2777_s8 + $0x68] sm:$0xff] %v2257_v15   ;;  %2377 = vst [vmem:[%s2777_s8 + $0xe8] sm:$0xff] %v2337_v16   ;;  %v1431_v20 = vadd.f32 %v2767_v17, %v1058_v18  ;;  %v1463_v21 = vadd.f32 %v2767_v17, %v1186_v19  ;;  %v1060_v22 = vpop.f32.mrb[57].mxu0  ;;  %v1188_v23 = vpop.f32.mrb[57].mxu1 }
 0x18c   : > { %v1061_v24 = vpop.f32.mrb[58].mxu0  ;;  %v1189_v25 = vpop.f32.mrb[58].mxu1 }
 0x18d   : > { %v1432_v26 = vadd.f32 %v2767_v17, %v1061_v24  ;;  %v1464_v27 = vadd.f32 %v2767_v17, %v1189_v25  ;;  %v1063_v28 = vpop.f32.mrb[59].mxu0  ;;  %v1191_v29 = vpop.f32.mrb[59].mxu1  ;;  %v1495_v30 = vmax.f32 %v1431_v20, 0.0  ;;  %v1527_v31 = vmax.f32 %v1463_v21, 0.0 }
 0x18f   : > { %v1496_v32 = vmax.f32 %v1432_v26, 0.0  ;;  %v1528_v33 = vmax.f32 %v1464_v27, 0.0 }
 0x191   : > { %v2262_v34 = vpack.c.bf16 %v1496_v32, %v1495_v30  ;;  %v2342_v35 = vpack.c.bf16 %v1528_v33, %v1527_v31 }
 0x192   : > { %v1066_v36 = vpop.f32.mrb[60].mxu0  ;;  %v1194_v37 = vpop.f32.mrb[60].mxu1 }
 0x193   : > { %2362 = vst [vmem:[%s2777_s8 + $0x70] sm:$0xff] %v2262_v34   ;;  %2378 = vst [vmem:[%s2777_s8 + $0xf0] sm:$0xff] %v2342_v35   ;;  %v1433_v38 = vadd.f32 %v2767_v17, %v1066_v36  ;;  %v1465_v39 = vadd.f32 %v2767_v17, %v1194_v37  ;;  %v1068_v40 = vpop.f32.mrb[61].mxu0  ;;  %v1196_v41 = vpop.f32.mrb[61].mxu1 }
 0x194   : > { %v1069_v42 = vpop.f32.mrb[62].mxu0  ;;  %v1197_v43 = vpop.f32.mrb[62].mxu1 }
 0x195   : > { %v1434_v44 = vadd.f32 %v2767_v17, %v1069_v42  ;;  %v1466_v45 = vadd.f32 %v2767_v17, %v1197_v43  ;;  %v1071_v46 = vpop.f32.mrb[63].mxu0  ;;  %v1199_v47 = vpop.f32.mrb[63].mxu1  ;;  %v1497_v48 = vmax.f32 %v1433_v38, 0.0  ;;  %v1529_v49 = vmax.f32 %v1465_v39, 0.0 }
 0x197   : > { %v1498_v50 = vmax.f32 %v1434_v44, 0.0  ;;  %v1530_v51 = vmax.f32 %v1466_v45, 0.0 }
 0x199   : > { %v2267_v52 = vpack.c.bf16 %v1498_v50, %v1497_v48  ;;  %v2347_v53 = vpack.c.bf16 %v1530_v51, %v1529_v49 }
 0x19b   : > { %2363 = vst [vmem:[%s2777_s8 + $0x78] sm:$0xff] %v2267_v52   ;;  %2379 = vst [vmem:[%s2777_s8 + $0xf8] sm:$0xff] %v2347_v53  }
 0x19c PF: > { %s13_s14 = sadd.s32 1, %s2571_s14   ;;  %s2884_s12 = smov %s2567_s13 }
 0x19d   : > { %p10_p5 = scmp.ge.s32.totalorder %s13_s14, 6   ;;  %s2885_s13 = smov %s2887_s15 }
 0x19f   :  { %12 = sbr.rel (!%p10_p5) target bundleno = 2 (0x2), region = 76 }

// kernel: _stem_impl.3
= control target key start
LH: loop header
LB: loop body
LE: loop exit
PB: predicated region body
PF: predicated region fallthrough
CT: control target
= control target key end

     0   :  { %vm586_vm0 = vcmask 1043456   ;;  %s5487_s0 = inlined_call_operand.vmem [shape: bf16[9,512,128], index: 0, kind: input, shape index: {}]   ;;  %s5488_s1 = inlined_call_operand.hbm [shape: bf16[512,128], index: 1, kind: output, shape index: {}]  }
   0x1   :  { %v10_v0 = vld [vmem:[%s5487_s0] sm:$0xf]  ;;  %v11_v3 = vld [vmem:[%s5487_s0 + $0x4] sm:$0xf]  ;;  %v12_v37 = vld [vmem:[%s5487_s0 + $0x8] sm:$0xf] }
   0x2   :  { %v74_v1 = vld [vmem:[%s5487_s0 + $0x100] sm:$0xf]  ;;  %v75_v4 = vld [vmem:[%s5487_s0 + $0x104] sm:$0xf]  ;;  %v589_v7 = vsel %vm586_vm0, %v10_v0, 4286644096 }
   0x3   :  { %v138_v2 = vld [vmem:[%s5487_s0 + $0x200] sm:$0xf]  ;;  %v139_v5 = vld [vmem:[%s5487_s0 + $0x204] sm:$0xf]  ;;  %v592_v8 = vsel %vm586_vm0, %v74_v1, 4286644096 }
   0x4   :  { %v202_v6 = vld [vmem:[%s5487_s0 + $0x300] sm:$0xf]  ;;  %v596_v9 = vsel %vm586_vm0, %v138_v2, 4286644096  ;;  %v594_v11 = vmax.bf16 %v592_v8, %v589_v7  ;;  %v203_v12 = vld [vmem:[%s5487_s0 + $0x304] sm:$0xf] }
   0x5   :  { %v266_v10 = vld [vmem:[%s5487_s0 + $0x400] sm:$0xf]  ;;  %v600_v14 = vsel %vm586_vm0, %v202_v6, 4286644096  ;;  %v624_v16 = vsel %vm586_vm0, %v11_v3, 4286644096 }
   0x6   :  { %v330_v13 = vld [vmem:[%s5487_s0 + $0x500] sm:$0xf]  ;;  %v598_v15 = vmax.bf16 %v596_v9, %v594_v11  ;;  %v627_v17 = vsel %vm586_vm0, %v75_v4, 4286644096  ;;  %v631_v18 = vsel %vm586_vm0, %v139_v5, 4286644096 }
   0x7   :  { %v267_v19 = vld [vmem:[%s5487_s0 + $0x404] sm:$0xf]  ;;  %v604_v20 = vsel %vm586_vm0, %v266_v10, 4286644096  ;;  %v629_v21 = vmax.bf16 %v627_v17, %v624_v16  ;;  %v394_v22 = vld [vmem:[%s5487_s0 + $0x600] sm:$0xf] }
   0x8   :  { %v602_v23 = vmax.bf16 %v600_v14, %v598_v15  ;;  %v635_v24 = vsel %vm586_vm0, %v203_v12, 4286644096  ;;  %v331_v25 = vld [vmem:[%s5487_s0 + $0x504] sm:$0xf]  ;;  %v458_v26 = vld [vmem:[%s5487_s0 + $0x700] sm:$0xf] }
   0x9   :  { %v608_v27 = vsel %vm586_vm0, %v330_v13, 4286644096  ;;  %v633_v28 = vmax.bf16 %v631_v18, %v629_v21  ;;  %v395_v29 = vld [vmem:[%s5487_s0 + $0x604] sm:$0xf]  ;;  %v522_v30 = vld [vmem:[%s5487_s0 + $0x800] sm:$0xf] }
   0xa   :  { %v606_v31 = vmax.bf16 %v604_v20, %v602_v23  ;;  %v639_v32 = vsel %vm586_vm0, %v267_v19, 4286644096  ;;  %v459_v33 = vld [vmem:[%s5487_s0 + $0x704] sm:$0xf]  ;;  %v612_v35 = vsel %vm586_vm0, %v394_v22, 4286644096 }
   0xb   :  { %v523_v34 = vld [vmem:[%s5487_s0 + $0x804] sm:$0xf]  ;;  %v637_v36 = vmax.bf16 %v635_v24, %v633_v28  ;;  %v76_v38 = vld [vmem:[%s5487_s0 + $0x108] sm:$0xf]  ;;  %v616_v40 = vsel %vm586_vm0, %v458_v26, 4286644096 }
   0xc   :  { %v610_v39 = vmax.bf16 %v608_v27, %v606_v31  ;;  %v643_v41 = vsel %vm586_vm0, %v331_v25, 4286644096  ;;  %v140_v42 = vld [vmem:[%s5487_s0 + $0x208] sm:$0xf]  ;;  %v620_v43 = vsel %vm586_vm0, %v522_v30, 4286644096 }
   0xd   :  { %v641_v44 = vmax.bf16 %v639_v32, %v637_v36  ;;  %v647_v45 = vsel %vm586_vm0, %v395_v29, 4286644096  ;;  %v13_v46 = vld [vmem:[%s5487_s0 + $0xc] sm:$0xf]  ;;  %v204_v47 = vld [vmem:[%s5487_s0 + $0x308] sm:$0xf] }
   0xe   :  { %v614_v48 = vmax.bf16 %v612_v35, %v610_v39  ;;  %v268_v49 = vld [vmem:[%s5487_s0 + $0x408] sm:$0xf]  ;;  %v659_v50 = vsel %vm586_vm0, %v12_v37, 4286644096  ;;  %v662_v51 = vsel %vm586_vm0, %v76_v38, 4286644096 }
   0xf   :  { %v645_v52 = vmax.bf16 %v643_v41, %v641_v44  ;;  %v77_v53 = vld [vmem:[%s5487_s0 + $0x10c] sm:$0xf]  ;;  %v664_v55 = vmax.bf16 %v662_v51, %v659_v50  ;;  %v666_v56 = vsel %vm586_vm0, %v140_v42, 4286644096  ;;  %v651_v58 = vsel %vm586_vm0, %v459_v33, 4286644096 }
  0x10   :  { %v141_v54 = vld [vmem:[%s5487_s0 + $0x20c] sm:$0xf]  ;;  %v618_v57 = vmax.bf16 %v616_v40, %v614_v48  ;;  %v655_v59 = vsel %vm586_vm0, %v523_v34, 4286644096  ;;  %v670_v60 = vsel %vm586_vm0, %v204_v47, 4286644096 }
  0x11   :  { %v649_v61 = vmax.bf16 %v647_v45, %v645_v52  ;;  %v205_v62 = vld [vmem:[%s5487_s0 + $0x30c] sm:$0xf]  ;;  %v332_v63 = vld [vmem:[%s5487_s0 + $0x508] sm:$0xf]  ;;  %v668_v0 = vmax.bf16 %v666_v56, %v664_v55  ;;  %v674_v1 = vsel %vm586_vm0, %v268_v49, 4286644096 }
  0x12   :  { %v694_v2 = vsel %vm586_vm0, %v13_v46, 4286644096  ;;  %v697_v3 = vsel %vm586_vm0, %v77_v53, 4286644096  ;;  %v701_v4 = vsel %vm586_vm0, %v141_v54, 4286644096  ;;  %v622_v5 = vmax.bf16 %v620_v43, %v618_v57 }
  0x13   :  { %v653_v6 = vmax.bf16 %v651_v58, %v649_v61  ;;  %v269_v7 = vld [vmem:[%s5487_s0 + $0x40c] sm:$0xf]  ;;  %v396_v8 = vld [vmem:[%s5487_s0 + $0x608] sm:$0xf]  ;;  %v672_v9 = vmax.bf16 %v670_v60, %v668_v0  ;;  %v699_v10 = vmax.bf16 %v697_v3, %v694_v2  ;;  %v678_v11 = vsel %vm586_vm0, %v332_v63, 4286644096 }
  0x14   :  { %v705_v12 = vsel %vm586_vm0, %v205_v62, 4286644096  ;;  %v333_v14 = vld [vmem:[%s5487_s0 + $0x50c] sm:$0xf]  ;;  %v460_v16 = vld [vmem:[%s5487_s0 + $0x708] sm:$0xf] }
  0x15   :  { %v657_v13 = vmax.bf16 %v655_v59, %v653_v6  ;;  %v397_v15 = vld [vmem:[%s5487_s0 + $0x60c] sm:$0xf]  ;;  %v676_v17 = vmax.bf16 %v674_v1, %v672_v9  ;;  %v703_v18 = vmax.bf16 %v701_v4, %v699_v10  ;;  %v524_v19 = vld [vmem:[%s5487_s0 + $0x808] sm:$0xf]  ;;  %v682_v20 = vsel %vm586_vm0, %v396_v8, 4286644096 }
  0x16   :  { %v709_v21 = vsel %vm586_vm0, %v269_v7, 4286644096  ;;  %v461_v23 = vld [vmem:[%s5487_s0 + $0x70c] sm:$0xf]  ;;  %v14_v26 = vld [vmem:[%s5487_s0 + $0x10] sm:$0xf] }
  0x17   :  { %v3068_v22 = vcombine.low %v622_v5, %v657_v13  ;;  %v680_v24 = vmax.bf16 %v678_v11, %v676_v17  ;;  %v707_v25 = vmax.bf16 %v705_v12, %v703_v18  ;;  %v78_v27 = vld [vmem:[%s5487_s0 + $0x110] sm:$0xf]  ;;  %v525_v28 = vld [vmem:[%s5487_s0 + $0x80c] sm:$0xf]  ;;  %v686_v29 = vsel %vm586_vm0, %v460_v16, 4286644096 }
  0x18   :  { %v713_v30 = vsel %vm586_vm0, %v333_v14, 4286644096  ;;  %v142_v31 = vld [vmem:[%s5487_s0 + $0x210] sm:$0xf]  ;;  %v690_v33 = vsel %vm586_vm0, %v524_v19, 4286644096 }
  0x19   :  { %2912 = vst [vmem:[#allocation2] sm:$0xff] %v3068_v22   ;;  %v684_v32 = vmax.bf16 %v682_v20, %v680_v24  ;;  %v711_v34 = vmax.bf16 %v709_v21, %v707_v25  ;;  %v15_v35 = vld [vmem:[%s5487_s0 + $0x14] sm:$0xf]  ;;  %v206_v36 = vld [vmem:[%s5487_s0 + $0x310] sm:$0xf] }
  0x1a   :  { %v717_v37 = vsel %vm586_vm0, %v397_v15, 4286644096  ;;  %v729_v38 = vsel %vm586_vm0, %v14_v26, 4286644096  ;;  %v732_v39 = vsel %vm586_vm0, %v78_v27, 4286644096 }
  0x1b   :  { %v688_v40 = vmax.bf16 %v686_v29, %v684_v32  ;;  %v715_v41 = vmax.bf16 %v713_v30, %v711_v34  ;;  %v79_v42 = vld [vmem:[%s5487_s0 + $0x114] sm:$0xf]  ;;  %v270_v43 = vld [vmem:[%s5487_s0 + $0x410] sm:$0xf]  ;;  %v734_v44 = vmax.bf16 %v732_v39, %v729_v38  ;;  %v736_v45 = vsel %vm586_vm0, %v142_v31, 4286644096 }
  0x1c   :  { %v721_v46 = vsel %vm586_vm0, %v461_v23, 4286644096  ;;  %v143_v47 = vld [vmem:[%s5487_s0 + $0x214] sm:$0xf]  ;;  %v740_v48 = vsel %vm586_vm0, %v206_v36, 4286644096 }
  0x1d   :  { %v719_v49 = vmax.bf16 %v717_v37, %v715_v41  ;;  %v725_v50 = vsel %vm586_vm0, %v525_v28, 4286644096  ;;  %v334_v51 = vld [vmem:[%s5487_s0 + $0x510] sm:$0xf]  ;;  %v738_v52 = vmax.bf16 %v736_v45, %v734_v44  ;;  %v692_v53 = vmax.bf16 %v690_v33, %v688_v40  ;;  %v207_v54 = vld [vmem:[%s5487_s0 + $0x314] sm:$0xf] }
  0x1e   :  { %v744_v55 = vsel %vm586_vm0, %v270_v43, 4286644096  ;;  %v764_v56 = vsel %vm586_vm0, %v15_v35, 4286644096  ;;  %v398_v58 = vld [vmem:[%s5487_s0 + $0x610] sm:$0xf] }
  0x1f   :  { %v723_v57 = vmax.bf16 %v721_v46, %v719_v49  ;;  %v742_v59 = vmax.bf16 %v740_v48, %v738_v52  ;;  %v767_v60 = vsel %vm586_vm0, %v79_v42, 4286644096  ;;  %v771_v61 = vsel %vm586_vm0, %v143_v47, 4286644096  ;;  %v271_v62 = vld [vmem:[%s5487_s0 + $0x414] sm:$0xf] }
  0x20   :  { %v748_v63 = vsel %vm586_vm0, %v334_v51, 4286644096  ;;  %v769_v0 = vmax.bf16 %v767_v60, %v764_v56  ;;  %v335_v2 = vld [vmem:[%s5487_s0 + $0x514] sm:$0xf]  ;;  %v462_v3 = vld [vmem:[%s5487_s0 + $0x710] sm:$0xf] }
  0x21   :  { %v727_v1 = vmax.bf16 %v725_v50, %v723_v57  ;;  %v746_v4 = vmax.bf16 %v744_v55, %v742_v59  ;;  %v775_v5 = vsel %vm586_vm0, %v207_v54, 4286644096  ;;  %v399_v6 = vld [vmem:[%s5487_s0 + $0x614] sm:$0xf]  ;;  %v526_v7 = vld [vmem:[%s5487_s0 + $0x810] sm:$0xf] }
  0x22   :  { %v752_v8 = vsel %vm586_vm0, %v398_v58, 4286644096  ;;  %v773_v9 = vmax.bf16 %v771_v61, %v769_v0  ;;  %v779_v12 = vsel %vm586_vm0, %v271_v62, 4286644096  ;;  %v16_v13 = vld [vmem:[%s5487_s0 + $0x18] sm:$0xf] }
  0x23   :  { %v3069_v10 = vcombine.low %v692_v53, %v727_v1  ;;  %v750_v11 = vmax.bf16 %v748_v63, %v746_v4  ;;  %v80_v14 = vld [vmem:[%s5487_s0 + $0x118] sm:$0xf]  ;;  %v463_v15 = vld [vmem:[%s5487_s0 + $0x714] sm:$0xf]  ;;  %v756_v16 = vsel %vm586_vm0, %v462_v3, 4286644096 }
  0x24   :  { %v777_v17 = vmax.bf16 %v775_v5, %v773_v9  ;;  %v144_v18 = vld [vmem:[%s5487_s0 + $0x218] sm:$0xf]  ;;  %v760_v20 = vsel %vm586_vm0, %v526_v7, 4286644096  ;;  %v783_v21 = vsel %vm586_vm0, %v335_v2, 4286644096 }
  0x25   :  { %3070 = vst [vmem:[#allocation2 + $0x8] sm:$0xff] %v3069_v10   ;;  %v754_v19 = vmax.bf16 %v752_v8, %v750_v11  ;;  %v17_v22 = vld [vmem:[%s5487_s0 + $0x1c] sm:$0xf]  ;;  %v208_v24 = vld [vmem:[%s5487_s0 + $0x318] sm:$0xf] }
  0x26   :  { %v81_v23 = vld [vmem:[%s5487_s0 + $0x11c] sm:$0xf]  ;;  %v781_v25 = vmax.bf16 %v779_v12, %v777_v17  ;;  %v272_v26 = vld [vmem:[%s5487_s0 + $0x418] sm:$0xf]  ;;  %v799_v27 = vsel %vm586_vm0, %v16_v13, 4286644096 }
  0x27   :  { %v802_v28 = vsel %vm586_vm0, %v80_v14, 4286644096  ;;  %v787_v29 = vsel %vm586_vm0, %v399_v6, 4286644096  ;;  %v145_v30 = vld [vmem:[%s5487_s0 + $0x21c] sm:$0xf]  ;;  %v758_v34 = vmax.bf16 %v756_v16, %v754_v19 }
  0x28   :  { %v804_v31 = vmax.bf16 %v802_v28, %v799_v27  ;;  %v806_v32 = vsel %vm586_vm0, %v144_v18, 4286644096  ;;  %v527_v33 = vld [vmem:[%s5487_s0 + $0x814] sm:$0xf]  ;;  %v785_v35 = vmax.bf16 %v783_v21, %v781_v25  ;;  %v791_v36 = vsel %vm586_vm0, %v463_v15, 4286644096 }
  0x29   :  { %v810_v37 = vsel %vm586_vm0, %v208_v24, 4286644096  ;;  %v209_v38 = vld [vmem:[%s5487_s0 + $0x31c] sm:$0xf]  ;;  %v336_v39 = vld [vmem:[%s5487_s0 + $0x518] sm:$0xf]  ;;  %v762_v51 = vmax.bf16 %v760_v20, %v758_v34 }
  0x2a   :  { %v808_v40 = vmax.bf16 %v806_v32, %v804_v31  ;;  %v814_v41 = vsel %vm586_vm0, %v272_v26, 4286644096  ;;  %v789_v42 = vmax.bf16 %v787_v29, %v785_v35  ;;  %v834_v43 = vsel %vm586_vm0, %v17_v22, 4286644096  ;;  %v273_v47 = vld [vmem:[%s5487_s0 + $0x41c] sm:$0xf] }
  0x2b   :  { %v837_v44 = vsel %vm586_vm0, %v81_v23, 4286644096  ;;  %v841_v45 = vsel %vm586_vm0, %v145_v30, 4286644096  ;;  %v795_v46 = vsel %vm586_vm0, %v527_v33, 4286644096 }
  0x2c   :  { %v400_v48 = vld [vmem:[%s5487_s0 + $0x618] sm:$0xf]  ;;  %v812_v49 = vmax.bf16 %v810_v37, %v808_v40  ;;  %v839_v50 = vmax.bf16 %v837_v44, %v834_v43  ;;  %v793_v52 = vmax.bf16 %v791_v36, %v789_v42  ;;  %v818_v53 = vsel %vm586_vm0, %v336_v39, 4286644096  ;;  %v337_v55 = vld [vmem:[%s5487_s0 + $0x51c] sm:$0xf] }
  0x2d   :  { %v845_v54 = vsel %vm586_vm0, %v209_v38, 4286644096  ;;  %v401_v56 = vld [vmem:[%s5487_s0 + $0x61c] sm:$0xf]  ;;  %v464_v57 = vld [vmem:[%s5487_s0 + $0x718] sm:$0xf] }
  0x2e   :  { %v816_v58 = vmax.bf16 %v814_v41, %v812_v49  ;;  %v843_v59 = vmax.bf16 %v841_v45, %v839_v50  ;;  %v797_v60 = vmax.bf16 %v795_v46, %v793_v52  ;;  %v528_v61 = vld [vmem:[%s5487_s0 + $0x818] sm:$0xf]  ;;  %v822_v62 = vsel %vm586_vm0, %v400_v48, 4286644096  ;;  %v465_v0 = vld [vmem:[%s5487_s0 + $0x71c] sm:$0xf] }
  0x2f   :  { %v849_v63 = vsel %vm586_vm0, %v273_v47, 4286644096  ;;  %v18_v3 = vld [vmem:[%s5487_s0 + $0x20] sm:$0xf]  ;;  %v529_v6 = vld [vmem:[%s5487_s0 + $0x81c] sm:$0xf] }
  0x30   :  { %v820_v1 = vmax.bf16 %v818_v53, %v816_v58  ;;  %v847_v2 = vmax.bf16 %v845_v54, %v843_v59  ;;  %v82_v4 = vld [vmem:[%s5487_s0 + $0x120] sm:$0xf]  ;;  %v3071_v5 = vcombine.low %v762_v51, %v797_v60  ;;  %v826_v7 = vsel %vm586_vm0, %v464_v57, 4286644096  ;;  %v19_v20 = vld [vmem:[%s5487_s0 + $0x24] sm:$0xf] }
  0x31   :  { %v853_v8 = vsel %vm586_vm0, %v337_v55, 4286644096  ;;  %v146_v9 = vld [vmem:[%s5487_s0 + $0x220] sm:$0xf]  ;;  %v830_v11 = vsel %vm586_vm0, %v528_v61, 4286644096 }
  0x32   :  { %v824_v10 = vmax.bf16 %v822_v62, %v820_v1  ;;  %v851_v12 = vmax.bf16 %v849_v63, %v847_v2  ;;  %v857_v13 = vsel %vm586_vm0, %v401_v56, 4286644096  ;;  %v210_v14 = vld [vmem:[%s5487_s0 + $0x320] sm:$0xf]  ;;  %3072 = vst [vmem:[#allocation2 + $0x10] sm:$0xff] %v3071_v5  }
  0x33   :  { %v861_v15 = vsel %vm586_vm0, %v465_v0, 4286644096  ;;  %v869_v16 = vsel %vm586_vm0, %v18_v3, 4286644096  ;;  %v872_v17 = vsel %vm586_vm0, %v82_v4, 4286644096 }
  0x34   :  { %v828_v18 = vmax.bf16 %v826_v7, %v824_v10  ;;  %v855_v19 = vmax.bf16 %v853_v8, %v851_v12  ;;  %v274_v21 = vld [vmem:[%s5487_s0 + $0x420] sm:$0xf]  ;;  %v874_v22 = vmax.bf16 %v872_v17, %v869_v16  ;;  %v876_v23 = vsel %vm586_vm0, %v146_v9, 4286644096  ;;  %v83_v24 = vld [vmem:[%s5487_s0 + $0x124] sm:$0xf] }
  0x35   :  { %v147_v25 = vld [vmem:[%s5487_s0 + $0x224] sm:$0xf]  ;;  %v880_v26 = vsel %vm586_vm0, %v210_v14, 4286644096  ;;  %v865_v28 = vsel %vm586_vm0, %v529_v6, 4286644096 }
  0x36   :  { %v859_v27 = vmax.bf16 %v857_v13, %v855_v19  ;;  %v338_v29 = vld [vmem:[%s5487_s0 + $0x520] sm:$0xf]  ;;  %v878_v30 = vmax.bf16 %v876_v23, %v874_v22  ;;  %v832_v31 = vmax.bf16 %v830_v11, %v828_v18  ;;  %v211_v32 = vld [vmem:[%s5487_s0 + $0x324] sm:$0xf]  ;;  %v884_v33 = vsel %vm586_vm0, %v274_v21, 4286644096 }
  0x37   :  { %v904_v34 = vsel %vm586_vm0, %v19_v20, 4286644096  ;;  %v402_v36 = vld [vmem:[%s5487_s0 + $0x620] sm:$0xf]  ;;  %v907_v38 = vsel %vm586_vm0, %v83_v24, 4286644096 }
  0x38   :  { %v863_v35 = vmax.bf16 %v861_v15, %v859_v27  ;;  %v882_v37 = vmax.bf16 %v880_v26, %v878_v30  ;;  %v911_v39 = vsel %vm586_vm0, %v147_v25, 4286644096  ;;  %v275_v40 = vld [vmem:[%s5487_s0 + $0x424] sm:$0xf]  ;;  %v888_v41 = vsel %vm586_vm0, %v338_v29, 4286644096 }
  0x39   :  { %v909_v42 = vmax.bf16 %v907_v38, %v904_v34  ;;  %v339_v44 = vld [vmem:[%s5487_s0 + $0x524] sm:$0xf]  ;;  %v466_v45 = vld [vmem:[%s5487_s0 + $0x720] sm:$0xf]  ;;  %v915_v47 = vsel %vm586_vm0, %v211_v32, 4286644096 }
  0x3a   :  { %v867_v43 = vmax.bf16 %v865_v28, %v863_v35  ;;  %v886_v46 = vmax.bf16 %v884_v33, %v882_v37  ;;  %v403_v48 = vld [vmem:[%s5487_s0 + $0x624] sm:$0xf]  ;;  %v530_v49 = vld [vmem:[%s5487_s0 + $0x820] sm:$0xf]  ;;  %v892_v50 = vsel %vm586_vm0, %v402_v36, 4286644096 }
  0x3b   :  { %v913_v51 = vmax.bf16 %v911_v39, %v909_v42  ;;  %v919_v54 = vsel %vm586_vm0, %v275_v40, 4286644096  ;;  %v20_v55 = vld [vmem:[%s5487_s0 + $0x28] sm:$0xf]  ;;  %v467_v57 = vld [vmem:[%s5487_s0 + $0x724] sm:$0xf] }
  0x3c   :  { %v3073_v52 = vcombine.low %v832_v31, %v867_v43  ;;  %v890_v53 = vmax.bf16 %v888_v41, %v886_v46  ;;  %v84_v56 = vld [vmem:[%s5487_s0 + $0x128] sm:$0xf]  ;;  %v896_v58 = vsel %vm586_vm0, %v466_v45, 4286644096  ;;  %v900_v62 = vsel %vm586_vm0, %v530_v49, 4286644096 }
  0x3d   :  { %v917_v59 = vmax.bf16 %v915_v47, %v913_v51  ;;  %v148_v60 = vld [vmem:[%s5487_s0 + $0x228] sm:$0xf]  ;;  %v923_v63 = vsel %vm586_vm0, %v339_v44, 4286644096  ;;  %v21_v0 = vld [vmem:[%s5487_s0 + $0x2c] sm:$0xf] }
  0x3e   :  { %3074 = vst [vmem:[#allocation2 + $0x18] sm:$0xff] %v3073_v52   ;;  %v894_v61 = vmax.bf16 %v892_v50, %v890_v53  ;;  %v85_v1 = vld [vmem:[%s5487_s0 + $0x12c] sm:$0xf]  ;;  %v212_v2 = vld [vmem:[%s5487_s0 + $0x328] sm:$0xf] }
  0x3f   :  { %v921_v3 = vmax.bf16 %v919_v54, %v917_v59  ;;  %v276_v4 = vld [vmem:[%s5487_s0 + $0x428] sm:$0xf]  ;;  %v939_v5 = vsel %vm586_vm0, %v20_v55, 4286644096  ;;  %v942_v6 = vsel %vm586_vm0, %v84_v56, 4286644096 }
  0x40   :  { %v927_v7 = vsel %vm586_vm0, %v403_v48, 4286644096  ;;  %v149_v8 = vld [vmem:[%s5487_s0 + $0x22c] sm:$0xf]  ;;  %v944_v9 = vmax.bf16 %v942_v6, %v939_v5  ;;  %v946_v10 = vsel %vm586_vm0, %v148_v60, 4286644096  ;;  %v898_v12 = vmax.bf16 %v896_v58, %v894_v61 }
  0x41   :  { %v531_v11 = vld [vmem:[%s5487_s0 + $0x824] sm:$0xf]  ;;  %v925_v13 = vmax.bf16 %v923_v63, %v921_v3  ;;  %v931_v14 = vsel %vm586_vm0, %v467_v57, 4286644096  ;;  %v950_v15 = vsel %vm586_vm0, %v212_v2, 4286644096 }
  0x42   :  { %v213_v16 = vld [vmem:[%s5487_s0 + $0x32c] sm:$0xf]  ;;  %v340_v17 = vld [vmem:[%s5487_s0 + $0x528] sm:$0xf]  ;;  %v948_v18 = vmax.bf16 %v946_v10, %v944_v9  ;;  %v954_v19 = vsel %vm586_vm0, %v276_v4, 4286644096  ;;  %v902_v29 = vmax.bf16 %v900_v62, %v898_v12 }
  0x43   :  { %v929_v20 = vmax.bf16 %v927_v7, %v925_v13  ;;  %v974_v21 = vsel %vm586_vm0, %v21_v0, 4286644096  ;;  %v977_v22 = vsel %vm586_vm0, %v85_v1, 4286644096  ;;  %v981_v23 = vsel %vm586_vm0, %v149_v8, 4286644096 }
  0x44   :  { %v935_v24 = vsel %vm586_vm0, %v531_v11, 4286644096  ;;  %v277_v25 = vld [vmem:[%s5487_s0 + $0x42c] sm:$0xf]  ;;  %v404_v26 = vld [vmem:[%s5487_s0 + $0x628] sm:$0xf]  ;;  %v952_v27 = vmax.bf16 %v950_v15, %v948_v18  ;;  %v979_v28 = vmax.bf16 %v977_v22, %v974_v21 }
  0x45   :  { %v933_v30 = vmax.bf16 %v931_v14, %v929_v20  ;;  %v958_v31 = vsel %vm586_vm0, %v340_v17, 4286644096  ;;  %v985_v32 = vsel %vm586_vm0, %v213_v16, 4286644096  ;;  %v341_v33 = vld [vmem:[%s5487_s0 + $0x52c] sm:$0xf] }
  0x46   :  { %v405_v34 = vld [vmem:[%s5487_s0 + $0x62c] sm:$0xf]  ;;  %v468_v35 = vld [vmem:[%s5487_s0 + $0x728] sm:$0xf]  ;;  %v956_v36 = vmax.bf16 %v954_v19, %v952_v27  ;;  %v983_v37 = vmax.bf16 %v981_v23, %v979_v28  ;;  %v962_v40 = vsel %vm586_vm0, %v404_v26, 4286644096 }
  0x47   :  { %v937_v38 = vmax.bf16 %v935_v24, %v933_v30  ;;  %v532_v39 = vld [vmem:[%s5487_s0 + $0x828] sm:$0xf]  ;;  %v989_v41 = vsel %vm586_vm0, %v277_v25, 4286644096  ;;  %v469_v42 = vld [vmem:[%s5487_s0 + $0x72c] sm:$0xf] }
  0x48   :  { %v960_v43 = vmax.bf16 %v958_v31, %v956_v36  ;;  %v987_v44 = vmax.bf16 %v985_v32, %v983_v37  ;;  %v22_v45 = vld [vmem:[%s5487_s0 + $0x30] sm:$0xf]  ;;  %v533_v48 = vld [vmem:[%s5487_s0 + $0x82c] sm:$0xf]  ;;  %v966_v49 = vsel %vm586_vm0, %v468_v35, 4286644096 }
  0x49   :  { %v86_v46 = vld [vmem:[%s5487_s0 + $0x130] sm:$0xf]  ;;  %v3075_v47 = vcombine.low %v902_v29, %v937_v38  ;;  %v993_v50 = vsel %vm586_vm0, %v341_v33, 4286644096  ;;  %v970_v53 = vsel %vm586_vm0, %v532_v39, 4286644096 }
  0x4a   :  { %v150_v51 = vld [vmem:[%s5487_s0 + $0x230] sm:$0xf]  ;;  %v964_v52 = vmax.bf16 %v962_v40, %v960_v43  ;;  %v991_v54 = vmax.bf16 %v989_v41, %v987_v44  ;;  %v997_v55 = vsel %vm586_vm0, %v405_v34, 4286644096  ;;  %v1001_v57 = vsel %vm586_vm0, %v469_v42, 4286644096 }
  0x4b   :  { %v214_v56 = vld [vmem:[%s5487_s0 + $0x330] sm:$0xf]  ;;  %3076 = vst [vmem:[#allocation2 + $0x20] sm:$0xff] %v3075_v47   ;;  %v1009_v58 = vsel %vm586_vm0, %v22_v45, 4286644096 }
  0x4c   :  { %v1012_v59 = vsel %vm586_vm0, %v86_v46, 4286644096  ;;  %v968_v60 = vmax.bf16 %v966_v49, %v964_v52  ;;  %v995_v61 = vmax.bf16 %v993_v50, %v991_v54  ;;  %v23_v62 = vld [vmem:[%s5487_s0 + $0x34] sm:$0xf]  ;;  %v278_v63 = vld [vmem:[%s5487_s0 + $0x430] sm:$0xf] }
  0x4d   :  { %v1014_v0 = vmax.bf16 %v1012_v59, %v1009_v58  ;;  %v1016_v1 = vsel %vm586_vm0, %v150_v51, 4286644096  ;;  %v87_v2 = vld [vmem:[%s5487_s0 + $0x134] sm:$0xf]  ;;  %v1020_v4 = vsel %vm586_vm0, %v214_v56, 4286644096 }
  0x4e   :  { %v151_v3 = vld [vmem:[%s5487_s0 + $0x234] sm:$0xf]  ;;  %v999_v5 = vmax.bf16 %v997_v55, %v995_v61  ;;  %v1005_v6 = vsel %vm586_vm0, %v533_v48, 4286644096  ;;  %v342_v7 = vld [vmem:[%s5487_s0 + $0x530] sm:$0xf]  ;;  %v972_v9 = vmax.bf16 %v970_v53, %v968_v60 }
  0x4f   :  { %v1018_v8 = vmax.bf16 %v1016_v1, %v1014_v0  ;;  %v215_v10 = vld [vmem:[%s5487_s0 + $0x334] sm:$0xf]  ;;  %v1024_v11 = vsel %vm586_vm0, %v278_v63, 4286644096  ;;  %v1044_v12 = vsel %vm586_vm0, %v23_v62, 4286644096 }
  0x50   :  { %v1003_v13 = vmax.bf16 %v1001_v57, %v999_v5  ;;  %v406_v14 = vld [vmem:[%s5487_s0 + $0x630] sm:$0xf]  ;;  %v1047_v16 = vsel %vm586_vm0, %v87_v2, 4286644096  ;;  %v1051_v17 = vsel %vm586_vm0, %v151_v3, 4286644096 }
  0x51   :  { %v1022_v15 = vmax.bf16 %v1020_v4, %v1018_v8  ;;  %v279_v18 = vld [vmem:[%s5487_s0 + $0x434] sm:$0xf]  ;;  %v1028_v19 = vsel %vm586_vm0, %v342_v7, 4286644096  ;;  %v1049_v20 = vmax.bf16 %v1047_v16, %v1044_v12  ;;  %v470_v23 = vld [vmem:[%s5487_s0 + $0x730] sm:$0xf] }
  0x52   :  { %v1007_v21 = vmax.bf16 %v1005_v6, %v1003_v13  ;;  %v343_v22 = vld [vmem:[%s5487_s0 + $0x534] sm:$0xf]  ;;  %v1055_v25 = vsel %vm586_vm0, %v215_v10, 4286644096  ;;  %v534_v27 = vld [vmem:[%s5487_s0 + $0x830] sm:$0xf] }
  0x53   :  { %v1026_v24 = vmax.bf16 %v1024_v11, %v1022_v15  ;;  %v407_v26 = vld [vmem:[%s5487_s0 + $0x634] sm:$0xf]  ;;  %v1032_v28 = vsel %vm586_vm0, %v406_v14, 4286644096  ;;  %v1053_v29 = vmax.bf16 %v1051_v17, %v1049_v20  ;;  %v1059_v32 = vsel %vm586_vm0, %v279_v18, 4286644096 }
  0x54   :  { %v3077_v30 = vcombine.low %v972_v9, %v1007_v21  ;;  %v24_v33 = vld [vmem:[%s5487_s0 + $0x38] sm:$0xf]  ;;  %v471_v35 = vld [vmem:[%s5487_s0 + $0x734] sm:$0xf]  ;;  %v1036_v36 = vsel %vm586_vm0, %v470_v23, 4286644096 }
  0x55   :  { %v1030_v31 = vmax.bf16 %v1028_v19, %v1026_v24  ;;  %v88_v34 = vld [vmem:[%s5487_s0 + $0x138] sm:$0xf]  ;;  %v1057_v37 = vmax.bf16 %v1055_v25, %v1053_v29  ;;  %v1040_v40 = vsel %vm586_vm0, %v534_v27, 4286644096  ;;  %v1063_v41 = vsel %vm586_vm0, %v343_v22, 4286644096 }
  0x56   :  { %v152_v38 = vld [vmem:[%s5487_s0 + $0x238] sm:$0xf]  ;;  %3078 = vst [vmem:[#allocation2 + $0x28] sm:$0xff] %v3077_v30   ;;  %v25_v42 = vld [vmem:[%s5487_s0 + $0x3c] sm:$0xf] }
  0x57   :  { %v1034_v39 = vmax.bf16 %v1032_v28, %v1030_v31  ;;  %v89_v43 = vld [vmem:[%s5487_s0 + $0x13c] sm:$0xf]  ;;  %v216_v44 = vld [vmem:[%s5487_s0 + $0x338] sm:$0xf]  ;;  %v1061_v45 = vmax.bf16 %v1059_v32, %v1057_v37  ;;  %v1079_v47 = vsel %vm586_vm0, %v24_v33, 4286644096 }
  0x58   :  { %v280_v46 = vld [vmem:[%s5487_s0 + $0x438] sm:$0xf]  ;;  %v1082_v48 = vsel %vm586_vm0, %v88_v34, 4286644096  ;;  %v1067_v49 = vsel %vm586_vm0, %v407_v26, 4286644096 }
  0x59   :  { %v153_v50 = vld [vmem:[%s5487_s0 + $0x23c] sm:$0xf]  ;;  %v1084_v51 = vmax.bf16 %v1082_v48, %v1079_v47  ;;  %v1086_v52 = vsel %vm586_vm0, %v152_v38, 4286644096  ;;  %v535_v53 = vld [vmem:[%s5487_s0 + $0x834] sm:$0xf]  ;;  %v1038_v54 = vmax.bf16 %v1036_v36, %v1034_v39  ;;  %v1065_v55 = vmax.bf16 %v1063_v41, %v1061_v45 }
  0x5a   :  { %v1071_v56 = vsel %vm586_vm0, %v471_v35, 4286644096  ;;  %v1090_v57 = vsel %vm586_vm0, %v216_v44, 4286644096  ;;  %v217_v58 = vld [vmem:[%s5487_s0 + $0x33c] sm:$0xf] }
  0x5b   :  { %v344_v59 = vld [vmem:[%s5487_s0 + $0x538] sm:$0xf]  ;;  %v1088_v60 = vmax.bf16 %v1086_v52, %v1084_v51  ;;  %v1094_v61 = vsel %vm586_vm0, %v280_v46, 4286644096  ;;  %v1069_v62 = vmax.bf16 %v1067_v49, %v1065_v55  ;;  %v1114_v63 = vsel %vm586_vm0, %v25_v42, 4286644096 }
  0x5c   :  { %v1117_v0 = vsel %vm586_vm0, %v89_v43, 4286644096  ;;  %v1121_v1 = vsel %vm586_vm0, %v153_v50, 4286644096  ;;  %v1075_v2 = vsel %vm586_vm0, %v535_v53, 4286644096  ;;  %v1042_v7 = vmax.bf16 %v1040_v40, %v1038_v54 }
  0x5d   :  { %v281_v3 = vld [vmem:[%s5487_s0 + $0x43c] sm:$0xf]  ;;  %v408_v4 = vld [vmem:[%s5487_s0 + $0x638] sm:$0xf]  ;;  %v1092_v5 = vmax.bf16 %v1090_v57, %v1088_v60  ;;  %v1119_v6 = vmax.bf16 %v1117_v0, %v1114_v63  ;;  %v1073_v8 = vmax.bf16 %v1071_v56, %v1069_v62  ;;  %v1098_v9 = vsel %vm586_vm0, %v344_v59, 4286644096 }
  0x5e   :  { %v1125_v10 = vsel %vm586_vm0, %v217_v58, 4286644096  ;;  %v345_v11 = vld [vmem:[%s5487_s0 + $0x53c] sm:$0xf]  ;;  %v472_v13 = vld [vmem:[%s5487_s0 + $0x738] sm:$0xf] }
  0x5f   :  { %v409_v12 = vld [vmem:[%s5487_s0 + $0x63c] sm:$0xf]  ;;  %v1096_v14 = vmax.bf16 %v1094_v61, %v1092_v5  ;;  %v1123_v15 = vmax.bf16 %v1121_v1, %v1119_v6  ;;  %v1077_v16 = vmax.bf16 %v1075_v2, %v1073_v8  ;;  %v536_v17 = vld [vmem:[%s5487_s0 + $0x838] sm:$0xf]  ;;  %v1102_v18 = vsel %vm586_vm0, %v408_v4, 4286644096 }
  0x60   :  { %v1129_v19 = vsel %vm586_vm0, %v281_v3, 4286644096  ;;  %v473_v20 = vld [vmem:[%s5487_s0 + $0x73c] sm:$0xf]  ;;  %v26_v23 = vld [vmem:[%s5487_s0 + $0x40] sm:$0xf] }
  0x61   :  { %v1100_v21 = vmax.bf16 %v1098_v9, %v1096_v14  ;;  %v1127_v22 = vmax.bf16 %v1125_v10, %v1123_v15  ;;  %v90_v24 = vld [vmem:[%s5487_s0 + $0x140] sm:$0xf]  ;;  %v3079_v25 = vcombine.low %v1042_v7, %v1077_v16  ;;  %v537_v26 = vld [vmem:[%s5487_s0 + $0x83c] sm:$0xf]  ;;  %v1106_v27 = vsel %vm586_vm0, %v472_v13, 4286644096 }
  0x62   :  { %v1133_v28 = vsel %vm586_vm0, %v345_v11, 4286644096  ;;  %v154_v29 = vld [vmem:[%s5487_s0 + $0x240] sm:$0xf]  ;;  %v1110_v31 = vsel %vm586_vm0, %v536_v17, 4286644096 }
  0x63   :  { %v1104_v30 = vmax.bf16 %v1102_v18, %v1100_v21  ;;  %v1131_v32 = vmax.bf16 %v1129_v19, %v1127_v22  ;;  %v1137_v33 = vsel %vm586_vm0, %v409_v12, 4286644096  ;;  %v218_v34 = vld [vmem:[%s5487_s0 + $0x340] sm:$0xf]  ;;  %3080 = vst [vmem:[#allocation2 + $0x30] sm:$0xff] %v3079_v25  }
  0x64   :  { %v1141_v35 = vsel %vm586_vm0, %v473_v20, 4286644096  ;;  %v1149_v36 = vsel %vm586_vm0, %v26_v23, 4286644096  ;;  %v1152_v37 = vsel %vm586_vm0, %v90_v24, 4286644096 }
  0x65   :  { %v1108_v38 = vmax.bf16 %v1106_v27, %v1104_v30  ;;  %v1135_v39 = vmax.bf16 %v1133_v28, %v1131_v32  ;;  %v27_v40 = vld [vmem:[%s5487_s0 + $0x44] sm:$0xf]  ;;  %v282_v41 = vld [vmem:[%s5487_s0 + $0x440] sm:$0xf]  ;;  %v1154_v42 = vmax.bf16 %v1152_v37, %v1149_v36  ;;  %v1156_v43 = vsel %vm586_vm0, %v154_v29, 4286644096 }
  0x66   :  { %v91_v44 = vld [vmem:[%s5487_s0 + $0x144] sm:$0xf]  ;;  %v1160_v46 = vsel %vm586_vm0, %v218_v34, 4286644096  ;;  %v1145_v48 = vsel %vm586_vm0, %v537_v26, 4286644096 }
  0x67   :  { %v155_v45 = vld [vmem:[%s5487_s0 + $0x244] sm:$0xf]  ;;  %v1139_v47 = vmax.bf16 %v1137_v33, %v1135_v39  ;;  %v346_v49 = vld [vmem:[%s5487_s0 + $0x540] sm:$0xf]  ;;  %v1158_v50 = vmax.bf16 %v1156_v43, %v1154_v42  ;;  %v1112_v51 = vmax.bf16 %v1110_v31, %v1108_v38  ;;  %v1164_v53 = vsel %vm586_vm0, %v282_v41, 4286644096 }
  0x68   :  { %v219_v52 = vld [vmem:[%s5487_s0 + $0x344] sm:$0xf]  ;;  %v1184_v54 = vsel %vm586_vm0, %v27_v40, 4286644096  ;;  %v410_v56 = vld [vmem:[%s5487_s0 + $0x640] sm:$0xf] }
  0x69   :  { %v1143_v55 = vmax.bf16 %v1141_v35, %v1139_v47  ;;  %v1162_v57 = vmax.bf16 %v1160_v46, %v1158_v50  ;;  %v1187_v58 = vsel %vm586_vm0, %v91_v44, 4286644096  ;;  %v1191_v59 = vsel %vm586_vm0, %v155_v45, 4286644096  ;;  %v283_v60 = vld [vmem:[%s5487_s0 + $0x444] sm:$0xf] }
  0x6a   :  { %v1168_v61 = vsel %vm586_vm0, %v346_v49, 4286644096  ;;  %v1189_v62 = vmax.bf16 %v1187_v58, %v1184_v54  ;;  %v347_v0 = vld [vmem:[%s5487_s0 + $0x544] sm:$0xf]  ;;  %v474_v1 = vld [vmem:[%s5487_s0 + $0x740] sm:$0xf] }
  0x6b   :  { %v1147_v63 = vmax.bf16 %v1145_v48, %v1143_v55  ;;  %v1166_v2 = vmax.bf16 %v1164_v53, %v1162_v57  ;;  %v1195_v3 = vsel %vm586_vm0, %v219_v52, 4286644096  ;;  %v411_v4 = vld [vmem:[%s5487_s0 + $0x644] sm:$0xf]  ;;  %v538_v5 = vld [vmem:[%s5487_s0 + $0x840] sm:$0xf] }
  0x6c   :  { %v1172_v6 = vsel %vm586_vm0, %v410_v56, 4286644096  ;;  %v1193_v7 = vmax.bf16 %v1191_v59, %v1189_v62  ;;  %v1199_v10 = vsel %vm586_vm0, %v283_v60, 4286644096  ;;  %v28_v11 = vld [vmem:[%s5487_s0 + $0x48] sm:$0xf] }
  0x6d   :  { %v3081_v8 = vcombine.low %v1112_v51, %v1147_v63  ;;  %v1170_v9 = vmax.bf16 %v1168_v61, %v1166_v2  ;;  %v92_v12 = vld [vmem:[%s5487_s0 + $0x148] sm:$0xf]  ;;  %v475_v13 = vld [vmem:[%s5487_s0 + $0x744] sm:$0xf]  ;;  %v1176_v14 = vsel %vm586_vm0, %v474_v1, 4286644096 }
  0x6e   :  { %v1197_v15 = vmax.bf16 %v1195_v3, %v1193_v7  ;;  %v156_v16 = vld [vmem:[%s5487_s0 + $0x248] sm:$0xf]  ;;  %v1180_v18 = vsel %vm586_vm0, %v538_v5, 4286644096  ;;  %v1203_v19 = vsel %vm586_vm0, %v347_v0, 4286644096 }
  0x6f   :  { %3082 = vst [vmem:[#allocation2 + $0x38] sm:$0xff] %v3081_v8   ;;  %v1174_v17 = vmax.bf16 %v1172_v6, %v1170_v9  ;;  %v29_v20 = vld [vmem:[%s5487_s0 + $0x4c] sm:$0xf]  ;;  %v220_v22 = vld [vmem:[%s5487_s0 + $0x348] sm:$0xf] }
  0x70   :  { %v93_v21 = vld [vmem:[%s5487_s0 + $0x14c] sm:$0xf]  ;;  %v1201_v23 = vmax.bf16 %v1199_v10, %v1197_v15  ;;  %v284_v24 = vld [vmem:[%s5487_s0 + $0x448] sm:$0xf]  ;;  %v1219_v25 = vsel %vm586_vm0, %v28_v11, 4286644096 }
  0x71   :  { %v1222_v26 = vsel %vm586_vm0, %v92_v12, 4286644096  ;;  %v1207_v27 = vsel %vm586_vm0, %v411_v4, 4286644096  ;;  %v157_v28 = vld [vmem:[%s5487_s0 + $0x24c] sm:$0xf]  ;;  %v1178_v32 = vmax.bf16 %v1176_v14, %v1174_v17 }
  0x72   :  { %v1224_v29 = vmax.bf16 %v1222_v26, %v1219_v25  ;;  %v1226_v30 = vsel %vm586_vm0, %v156_v16, 4286644096  ;;  %v539_v31 = vld [vmem:[%s5487_s0 + $0x844] sm:$0xf]  ;;  %v1205_v33 = vmax.bf16 %v1203_v19, %v1201_v23  ;;  %v1211_v34 = vsel %vm586_vm0, %v475_v13, 4286644096 }
  0x73   :  { %v1230_v35 = vsel %vm586_vm0, %v220_v22, 4286644096  ;;  %v221_v36 = vld [vmem:[%s5487_s0 + $0x34c] sm:$0xf]  ;;  %v348_v37 = vld [vmem:[%s5487_s0 + $0x548] sm:$0xf]  ;;  %v1182_v49 = vmax.bf16 %v1180_v18, %v1178_v32 }
  0x74   :  { %v1228_v38 = vmax.bf16 %v1226_v30, %v1224_v29  ;;  %v1234_v39 = vsel %vm586_vm0, %v284_v24, 4286644096  ;;  %v1209_v40 = vmax.bf16 %v1207_v27, %v1205_v33  ;;  %v1254_v41 = vsel %vm586_vm0, %v29_v20, 4286644096  ;;  %v285_v45 = vld [vmem:[%s5487_s0 + $0x44c] sm:$0xf] }
  0x75   :  { %v1257_v42 = vsel %vm586_vm0, %v93_v21, 4286644096  ;;  %v1261_v43 = vsel %vm586_vm0, %v157_v28, 4286644096  ;;  %v1215_v44 = vsel %vm586_vm0, %v539_v31, 4286644096 }
  0x76   :  { %v412_v46 = vld [vmem:[%s5487_s0 + $0x648] sm:$0xf]  ;;  %v1232_v47 = vmax.bf16 %v1230_v35, %v1228_v38  ;;  %v1259_v48 = vmax.bf16 %v1257_v42, %v1254_v41  ;;  %v1213_v50 = vmax.bf16 %v1211_v34, %v1209_v40  ;;  %v1238_v51 = vsel %vm586_vm0, %v348_v37, 4286644096  ;;  %v349_v53 = vld [vmem:[%s5487_s0 + $0x54c] sm:$0xf] }
  0x77   :  { %v1265_v52 = vsel %vm586_vm0, %v221_v36, 4286644096  ;;  %v413_v54 = vld [vmem:[%s5487_s0 + $0x64c] sm:$0xf]  ;;  %v476_v55 = vld [vmem:[%s5487_s0 + $0x748] sm:$0xf] }
  0x78   :  { %v1236_v56 = vmax.bf16 %v1234_v39, %v1232_v47  ;;  %v1263_v57 = vmax.bf16 %v1261_v43, %v1259_v48  ;;  %v1217_v58 = vmax.bf16 %v1215_v44, %v1213_v50  ;;  %v540_v59 = vld [vmem:[%s5487_s0 + $0x848] sm:$0xf]  ;;  %v1242_v60 = vsel %vm586_vm0, %v412_v46, 4286644096  ;;  %v477_v62 = vld [vmem:[%s5487_s0 + $0x74c] sm:$0xf] }
  0x79   :  { %v1269_v61 = vsel %vm586_vm0, %v285_v45, 4286644096  ;;  %v30_v1 = vld [vmem:[%s5487_s0 + $0x50] sm:$0xf]  ;;  %v541_v4 = vld [vmem:[%s5487_s0 + $0x84c] sm:$0xf] }
  0x7a   :  { %v1240_v63 = vmax.bf16 %v1238_v51, %v1236_v56  ;;  %v1267_v0 = vmax.bf16 %v1265_v52, %v1263_v57  ;;  %v94_v2 = vld [vmem:[%s5487_s0 + $0x150] sm:$0xf]  ;;  %v3083_v3 = vcombine.low %v1182_v49, %v1217_v58  ;;  %v1246_v5 = vsel %vm586_vm0, %v476_v55, 4286644096  ;;  %v31_v18 = vld [vmem:[%s5487_s0 + $0x54] sm:$0xf] }
  0x7b   :  { %v1273_v6 = vsel %vm586_vm0, %v349_v53, 4286644096  ;;  %v158_v7 = vld [vmem:[%s5487_s0 + $0x250] sm:$0xf]  ;;  %v1250_v9 = vsel %vm586_vm0, %v540_v59, 4286644096 }
  0x7c   :  { %v1244_v8 = vmax.bf16 %v1242_v60, %v1240_v63  ;;  %v1271_v10 = vmax.bf16 %v1269_v61, %v1267_v0  ;;  %v1277_v11 = vsel %vm586_vm0, %v413_v54, 4286644096  ;;  %v222_v12 = vld [vmem:[%s5487_s0 + $0x350] sm:$0xf]  ;;  %3084 = vst [vmem:[#allocation2 + $0x40] sm:$0xff] %v3083_v3  }
  0x7d   :  { %v1281_v13 = vsel %vm586_vm0, %v477_v62, 4286644096  ;;  %v1289_v14 = vsel %vm586_vm0, %v30_v1, 4286644096  ;;  %v1292_v15 = vsel %vm586_vm0, %v94_v2, 4286644096 }
  0x7e   :  { %v1248_v16 = vmax.bf16 %v1246_v5, %v1244_v8  ;;  %v1275_v17 = vmax.bf16 %v1273_v6, %v1271_v10  ;;  %v286_v19 = vld [vmem:[%s5487_s0 + $0x450] sm:$0xf]  ;;  %v1294_v20 = vmax.bf16 %v1292_v15, %v1289_v14  ;;  %v1296_v21 = vsel %vm586_vm0, %v158_v7, 4286644096  ;;  %v95_v22 = vld [vmem:[%s5487_s0 + $0x154] sm:$0xf] }
  0x7f   :  { %v159_v23 = vld [vmem:[%s5487_s0 + $0x254] sm:$0xf]  ;;  %v1300_v24 = vsel %vm586_vm0, %v222_v12, 4286644096  ;;  %v1285_v26 = vsel %vm586_vm0, %v541_v4, 4286644096 }
  0x80   :  { %v1279_v25 = vmax.bf16 %v1277_v11, %v1275_v17  ;;  %v350_v27 = vld [vmem:[%s5487_s0 + $0x550] sm:$0xf]  ;;  %v1298_v28 = vmax.bf16 %v1296_v21, %v1294_v20  ;;  %v1252_v29 = vmax.bf16 %v1250_v9, %v1248_v16  ;;  %v223_v30 = vld [vmem:[%s5487_s0 + $0x354] sm:$0xf]  ;;  %v1304_v31 = vsel %vm586_vm0, %v286_v19, 4286644096 }
  0x81   :  { %v1324_v32 = vsel %vm586_vm0, %v31_v18, 4286644096  ;;  %v414_v34 = vld [vmem:[%s5487_s0 + $0x650] sm:$0xf]  ;;  %v1327_v36 = vsel %vm586_vm0, %v95_v22, 4286644096 }
  0x82   :  { %v1283_v33 = vmax.bf16 %v1281_v13, %v1279_v25  ;;  %v1302_v35 = vmax.bf16 %v1300_v24, %v1298_v28  ;;  %v1331_v37 = vsel %vm586_vm0, %v159_v23, 4286644096  ;;  %v287_v38 = vld [vmem:[%s5487_s0 + $0x454] sm:$0xf]  ;;  %v1308_v39 = vsel %vm586_vm0, %v350_v27, 4286644096 }
  0x83   :  { %v1329_v40 = vmax.bf16 %v1327_v36, %v1324_v32  ;;  %v351_v42 = vld [vmem:[%s5487_s0 + $0x554] sm:$0xf]  ;;  %v478_v43 = vld [vmem:[%s5487_s0 + $0x750] sm:$0xf]  ;;  %v1335_v45 = vsel %vm586_vm0, %v223_v30, 4286644096 }
  0x84   :  { %v1287_v41 = vmax.bf16 %v1285_v26, %v1283_v33  ;;  %v1306_v44 = vmax.bf16 %v1304_v31, %v1302_v35  ;;  %v415_v46 = vld [vmem:[%s5487_s0 + $0x654] sm:$0xf]  ;;  %v542_v47 = vld [vmem:[%s5487_s0 + $0x850] sm:$0xf]  ;;  %v1312_v48 = vsel %vm586_vm0, %v414_v34, 4286644096 }
  0x85   :  { %v1333_v49 = vmax.bf16 %v1331_v37, %v1329_v40  ;;  %v1339_v52 = vsel %vm586_vm0, %v287_v38, 4286644096  ;;  %v32_v53 = vld [vmem:[%s5487_s0 + $0x58] sm:$0xf]  ;;  %v479_v55 = vld [vmem:[%s5487_s0 + $0x754] sm:$0xf] }
  0x86   :  { %v3085_v50 = vcombine.low %v1252_v29, %v1287_v41  ;;  %v1310_v51 = vmax.bf16 %v1308_v39, %v1306_v44  ;;  %v96_v54 = vld [vmem:[%s5487_s0 + $0x158] sm:$0xf]  ;;  %v1316_v56 = vsel %vm586_vm0, %v478_v43, 4286644096  ;;  %v1320_v60 = vsel %vm586_vm0, %v542_v47, 4286644096 }
  0x87   :  { %v1337_v57 = vmax.bf16 %v1335_v45, %v1333_v49  ;;  %v160_v58 = vld [vmem:[%s5487_s0 + $0x258] sm:$0xf]  ;;  %v1343_v61 = vsel %vm586_vm0, %v351_v42, 4286644096  ;;  %v33_v62 = vld [vmem:[%s5487_s0 + $0x5c] sm:$0xf] }
  0x88   :  { %3086 = vst [vmem:[#allocation2 + $0x48] sm:$0xff] %v3085_v50   ;;  %v1314_v59 = vmax.bf16 %v1312_v48, %v1310_v51  ;;  %v97_v63 = vld [vmem:[%s5487_s0 + $0x15c] sm:$0xf]  ;;  %v224_v0 = vld [vmem:[%s5487_s0 + $0x358] sm:$0xf] }
  0x89   :  { %v1341_v1 = vmax.bf16 %v1339_v52, %v1337_v57  ;;  %v288_v2 = vld [vmem:[%s5487_s0 + $0x458] sm:$0xf]  ;;  %v1359_v3 = vsel %vm586_vm0, %v32_v53, 4286644096  ;;  %v1362_v4 = vsel %vm586_vm0, %v96_v54, 4286644096 }
  0x8a   :  { %v1347_v5 = vsel %vm586_vm0, %v415_v46, 4286644096  ;;  %v161_v6 = vld [vmem:[%s5487_s0 + $0x25c] sm:$0xf]  ;;  %v1364_v7 = vmax.bf16 %v1362_v4, %v1359_v3  ;;  %v1366_v8 = vsel %vm586_vm0, %v160_v58, 4286644096  ;;  %v1318_v10 = vmax.bf16 %v1316_v56, %v1314_v59 }
  0x8b   :  { %v543_v9 = vld [vmem:[%s5487_s0 + $0x854] sm:$0xf]  ;;  %v1345_v11 = vmax.bf16 %v1343_v61, %v1341_v1  ;;  %v1351_v12 = vsel %vm586_vm0, %v479_v55, 4286644096  ;;  %v1370_v13 = vsel %vm586_vm0, %v224_v0, 4286644096 }
  0x8c   :  { %v225_v14 = vld [vmem:[%s5487_s0 + $0x35c] sm:$0xf]  ;;  %v352_v15 = vld [vmem:[%s5487_s0 + $0x558] sm:$0xf]  ;;  %v1368_v16 = vmax.bf16 %v1366_v8, %v1364_v7  ;;  %v1374_v17 = vsel %vm586_vm0, %v288_v2, 4286644096  ;;  %v1322_v27 = vmax.bf16 %v1320_v60, %v1318_v10 }
  0x8d   :  { %v1349_v18 = vmax.bf16 %v1347_v5, %v1345_v11  ;;  %v1394_v19 = vsel %vm586_vm0, %v33_v62, 4286644096  ;;  %v1397_v20 = vsel %vm586_vm0, %v97_v63, 4286644096  ;;  %v1401_v21 = vsel %vm586_vm0, %v161_v6, 4286644096 }
  0x8e   :  { %v1355_v22 = vsel %vm586_vm0, %v543_v9, 4286644096  ;;  %v289_v23 = vld [vmem:[%s5487_s0 + $0x45c] sm:$0xf]  ;;  %v416_v24 = vld [vmem:[%s5487_s0 + $0x658] sm:$0xf]  ;;  %v1372_v25 = vmax.bf16 %v1370_v13, %v1368_v16  ;;  %v1399_v26 = vmax.bf16 %v1397_v20, %v1394_v19 }
  0x8f   :  { %v1353_v28 = vmax.bf16 %v1351_v12, %v1349_v18  ;;  %v1378_v29 = vsel %vm586_vm0, %v352_v15, 4286644096  ;;  %v1405_v30 = vsel %vm586_vm0, %v225_v14, 4286644096  ;;  %v353_v31 = vld [vmem:[%s5487_s0 + $0x55c] sm:$0xf] }
  0x90   :  { %v417_v32 = vld [vmem:[%s5487_s0 + $0x65c] sm:$0xf]  ;;  %v480_v33 = vld [vmem:[%s5487_s0 + $0x758] sm:$0xf]  ;;  %v1376_v34 = vmax.bf16 %v1374_v17, %v1372_v25  ;;  %v1403_v35 = vmax.bf16 %v1401_v21, %v1399_v26  ;;  %v1382_v38 = vsel %vm586_vm0, %v416_v24, 4286644096 }
  0x91   :  { %v1357_v36 = vmax.bf16 %v1355_v22, %v1353_v28  ;;  %v544_v37 = vld [vmem:[%s5487_s0 + $0x858] sm:$0xf]  ;;  %v1409_v39 = vsel %vm586_vm0, %v289_v23, 4286644096  ;;  %v481_v40 = vld [vmem:[%s5487_s0 + $0x75c] sm:$0xf] }
  0x92   :  { %v1380_v41 = vmax.bf16 %v1378_v29, %v1376_v34  ;;  %v1407_v42 = vmax.bf16 %v1405_v30, %v1403_v35  ;;  %v34_v43 = vld [vmem:[%s5487_s0 + $0x60] sm:$0xf]  ;;  %v545_v46 = vld [vmem:[%s5487_s0 + $0x85c] sm:$0xf]  ;;  %v1386_v47 = vsel %vm586_vm0, %v480_v33, 4286644096 }
  0x93   :  { %v98_v44 = vld [vmem:[%s5487_s0 + $0x160] sm:$0xf]  ;;  %v3087_v45 = vcombine.low %v1322_v27, %v1357_v36  ;;  %v1413_v48 = vsel %vm586_vm0, %v353_v31, 4286644096  ;;  %v1390_v51 = vsel %vm586_vm0, %v544_v37, 4286644096 }
  0x94   :  { %v162_v49 = vld [vmem:[%s5487_s0 + $0x260] sm:$0xf]  ;;  %v1384_v50 = vmax.bf16 %v1382_v38, %v1380_v41  ;;  %v1411_v52 = vmax.bf16 %v1409_v39, %v1407_v42  ;;  %v1417_v53 = vsel %vm586_vm0, %v417_v32, 4286644096  ;;  %v1421_v55 = vsel %vm586_vm0, %v481_v40, 4286644096 }
  0x95   :  { %v226_v54 = vld [vmem:[%s5487_s0 + $0x360] sm:$0xf]  ;;  %3088 = vst [vmem:[#allocation2 + $0x50] sm:$0xff] %v3087_v45   ;;  %v1429_v56 = vsel %vm586_vm0, %v34_v43, 4286644096 }
  0x96   :  { %v1432_v57 = vsel %vm586_vm0, %v98_v44, 4286644096  ;;  %v1388_v58 = vmax.bf16 %v1386_v47, %v1384_v50  ;;  %v1415_v59 = vmax.bf16 %v1413_v48, %v1411_v52  ;;  %v35_v60 = vld [vmem:[%s5487_s0 + $0x64] sm:$0xf]  ;;  %v290_v61 = vld [vmem:[%s5487_s0 + $0x460] sm:$0xf] }
  0x97   :  { %v1434_v62 = vmax.bf16 %v1432_v57, %v1429_v56  ;;  %v1436_v63 = vsel %vm586_vm0, %v162_v49, 4286644096  ;;  %v99_v0 = vld [vmem:[%s5487_s0 + $0x164] sm:$0xf]  ;;  %v1440_v2 = vsel %vm586_vm0, %v226_v54, 4286644096 }
  0x98   :  { %v163_v1 = vld [vmem:[%s5487_s0 + $0x264] sm:$0xf]  ;;  %v1419_v3 = vmax.bf16 %v1417_v53, %v1415_v59  ;;  %v1425_v4 = vsel %vm586_vm0, %v545_v46, 4286644096  ;;  %v354_v5 = vld [vmem:[%s5487_s0 + $0x560] sm:$0xf]  ;;  %v1392_v7 = vmax.bf16 %v1390_v51, %v1388_v58 }
  0x99   :  { %v1438_v6 = vmax.bf16 %v1436_v63, %v1434_v62  ;;  %v227_v8 = vld [vmem:[%s5487_s0 + $0x364] sm:$0xf]  ;;  %v1444_v9 = vsel %vm586_vm0, %v290_v61, 4286644096  ;;  %v1464_v10 = vsel %vm586_vm0, %v35_v60, 4286644096 }
  0x9a   :  { %v1423_v11 = vmax.bf16 %v1421_v55, %v1419_v3  ;;  %v418_v12 = vld [vmem:[%s5487_s0 + $0x660] sm:$0xf]  ;;  %v1467_v14 = vsel %vm586_vm0, %v99_v0, 4286644096  ;;  %v1471_v15 = vsel %vm586_vm0, %v163_v1, 4286644096 }
  0x9b   :  { %v1442_v13 = vmax.bf16 %v1440_v2, %v1438_v6  ;;  %v291_v16 = vld [vmem:[%s5487_s0 + $0x464] sm:$0xf]  ;;  %v1448_v17 = vsel %vm586_vm0, %v354_v5, 4286644096  ;;  %v1469_v18 = vmax.bf16 %v1467_v14, %v1464_v10  ;;  %v482_v21 = vld [vmem:[%s5487_s0 + $0x760] sm:$0xf] }
  0x9c   :  { %v1427_v19 = vmax.bf16 %v1425_v4, %v1423_v11  ;;  %v355_v20 = vld [vmem:[%s5487_s0 + $0x564] sm:$0xf]  ;;  %v1475_v23 = vsel %vm586_vm0, %v227_v8, 4286644096  ;;  %v546_v25 = vld [vmem:[%s5487_s0 + $0x860] sm:$0xf] }
  0x9d   :  { %v1446_v22 = vmax.bf16 %v1444_v9, %v1442_v13  ;;  %v419_v24 = vld [vmem:[%s5487_s0 + $0x664] sm:$0xf]  ;;  %v1452_v26 = vsel %vm586_vm0, %v418_v12, 4286644096  ;;  %v1473_v27 = vmax.bf16 %v1471_v15, %v1469_v18  ;;  %v1479_v30 = vsel %vm586_vm0, %v291_v16, 4286644096 }
  0x9e   :  { %v3089_v28 = vcombine.low %v1392_v7, %v1427_v19  ;;  %v36_v31 = vld [vmem:[%s5487_s0 + $0x68] sm:$0xf]  ;;  %v483_v33 = vld [vmem:[%s5487_s0 + $0x764] sm:$0xf]  ;;  %v1456_v34 = vsel %vm586_vm0, %v482_v21, 4286644096 }
  0x9f   :  { %v1450_v29 = vmax.bf16 %v1448_v17, %v1446_v22  ;;  %v100_v32 = vld [vmem:[%s5487_s0 + $0x168] sm:$0xf]  ;;  %v1477_v35 = vmax.bf16 %v1475_v23, %v1473_v27  ;;  %v1460_v38 = vsel %vm586_vm0, %v546_v25, 4286644096  ;;  %v1483_v39 = vsel %vm586_vm0, %v355_v20, 4286644096 }
  0xa0   :  { %v164_v36 = vld [vmem:[%s5487_s0 + $0x268] sm:$0xf]  ;;  %3090 = vst [vmem:[#allocation2 + $0x58] sm:$0xff] %v3089_v28   ;;  %v37_v40 = vld [vmem:[%s5487_s0 + $0x6c] sm:$0xf] }
  0xa1   :  { %v1454_v37 = vmax.bf16 %v1452_v26, %v1450_v29  ;;  %v101_v41 = vld [vmem:[%s5487_s0 + $0x16c] sm:$0xf]  ;;  %v228_v42 = vld [vmem:[%s5487_s0 + $0x368] sm:$0xf]  ;;  %v1481_v43 = vmax.bf16 %v1479_v30, %v1477_v35  ;;  %v1499_v45 = vsel %vm586_vm0, %v36_v31, 4286644096 }
  0xa2   :  { %v292_v44 = vld [vmem:[%s5487_s0 + $0x468] sm:$0xf]  ;;  %v1502_v46 = vsel %vm586_vm0, %v100_v32, 4286644096  ;;  %v1487_v47 = vsel %vm586_vm0, %v419_v24, 4286644096 }
  0xa3   :  { %v165_v48 = vld [vmem:[%s5487_s0 + $0x26c] sm:$0xf]  ;;  %v1504_v49 = vmax.bf16 %v1502_v46, %v1499_v45  ;;  %v1506_v50 = vsel %vm586_vm0, %v164_v36, 4286644096  ;;  %v547_v51 = vld [vmem:[%s5487_s0 + $0x864] sm:$0xf]  ;;  %v1458_v52 = vmax.bf16 %v1456_v34, %v1454_v37  ;;  %v1485_v53 = vmax.bf16 %v1483_v39, %v1481_v43 }
  0xa4   :  { %v1491_v54 = vsel %vm586_vm0, %v483_v33, 4286644096  ;;  %v1510_v55 = vsel %vm586_vm0, %v228_v42, 4286644096  ;;  %v229_v56 = vld [vmem:[%s5487_s0 + $0x36c] sm:$0xf] }
  0xa5   :  { %v356_v57 = vld [vmem:[%s5487_s0 + $0x568] sm:$0xf]  ;;  %v1508_v58 = vmax.bf16 %v1506_v50, %v1504_v49  ;;  %v1514_v59 = vsel %vm586_vm0, %v292_v44, 4286644096  ;;  %v1489_v60 = vmax.bf16 %v1487_v47, %v1485_v53  ;;  %v1534_v61 = vsel %vm586_vm0, %v37_v40, 4286644096 }
  0xa6   :  { %v1537_v62 = vsel %vm586_vm0, %v101_v41, 4286644096  ;;  %v1541_v63 = vsel %vm586_vm0, %v165_v48, 4286644096  ;;  %v1495_v0 = vsel %vm586_vm0, %v547_v51, 4286644096  ;;  %v1462_v5 = vmax.bf16 %v1460_v38, %v1458_v52 }
  0xa7   :  { %v293_v1 = vld [vmem:[%s5487_s0 + $0x46c] sm:$0xf]  ;;  %v420_v2 = vld [vmem:[%s5487_s0 + $0x668] sm:$0xf]  ;;  %v1512_v3 = vmax.bf16 %v1510_v55, %v1508_v58  ;;  %v1539_v4 = vmax.bf16 %v1537_v62, %v1534_v61  ;;  %v1493_v6 = vmax.bf16 %v1491_v54, %v1489_v60  ;;  %v1518_v7 = vsel %vm586_vm0, %v356_v57, 4286644096 }
  0xa8   :  { %v1545_v8 = vsel %vm586_vm0, %v229_v56, 4286644096  ;;  %v357_v9 = vld [vmem:[%s5487_s0 + $0x56c] sm:$0xf]  ;;  %v484_v11 = vld [vmem:[%s5487_s0 + $0x768] sm:$0xf] }
  0xa9   :  { %v421_v10 = vld [vmem:[%s5487_s0 + $0x66c] sm:$0xf]  ;;  %v1516_v12 = vmax.bf16 %v1514_v59, %v1512_v3  ;;  %v1543_v13 = vmax.bf16 %v1541_v63, %v1539_v4  ;;  %v1497_v14 = vmax.bf16 %v1495_v0, %v1493_v6  ;;  %v548_v15 = vld [vmem:[%s5487_s0 + $0x868] sm:$0xf]  ;;  %v1522_v16 = vsel %vm586_vm0, %v420_v2, 4286644096 }
  0xaa   :  { %v1549_v17 = vsel %vm586_vm0, %v293_v1, 4286644096  ;;  %v485_v18 = vld [vmem:[%s5487_s0 + $0x76c] sm:$0xf]  ;;  %v38_v21 = vld [vmem:[%s5487_s0 + $0x70] sm:$0xf] }
  0xab   :  { %v1520_v19 = vmax.bf16 %v1518_v7, %v1516_v12  ;;  %v1547_v20 = vmax.bf16 %v1545_v8, %v1543_v13  ;;  %v102_v22 = vld [vmem:[%s5487_s0 + $0x170] sm:$0xf]  ;;  %v3091_v23 = vcombine.low %v1462_v5, %v1497_v14  ;;  %v549_v24 = vld [vmem:[%s5487_s0 + $0x86c] sm:$0xf]  ;;  %v1526_v25 = vsel %vm586_vm0, %v484_v11, 4286644096 }
  0xac   :  { %v1553_v26 = vsel %vm586_vm0, %v357_v9, 4286644096  ;;  %v166_v27 = vld [vmem:[%s5487_s0 + $0x270] sm:$0xf]  ;;  %v1530_v29 = vsel %vm586_vm0, %v548_v15, 4286644096 }
  0xad   :  { %v1524_v28 = vmax.bf16 %v1522_v16, %v1520_v19  ;;  %v1551_v30 = vmax.bf16 %v1549_v17, %v1547_v20  ;;  %v1557_v31 = vsel %vm586_vm0, %v421_v10, 4286644096  ;;  %v230_v32 = vld [vmem:[%s5487_s0 + $0x370] sm:$0xf]  ;;  %3092 = vst [vmem:[#allocation2 + $0x60] sm:$0xff] %v3091_v23  }
  0xae   :  { %v1561_v33 = vsel %vm586_vm0, %v485_v18, 4286644096  ;;  %v1569_v34 = vsel %vm586_vm0, %v38_v21, 4286644096  ;;  %v1572_v35 = vsel %vm586_vm0, %v102_v22, 4286644096 }
  0xaf   :  { %v1528_v36 = vmax.bf16 %v1526_v25, %v1524_v28  ;;  %v1555_v37 = vmax.bf16 %v1553_v26, %v1551_v30  ;;  %v39_v38 = vld [vmem:[%s5487_s0 + $0x74] sm:$0xf]  ;;  %v294_v39 = vld [vmem:[%s5487_s0 + $0x470] sm:$0xf]  ;;  %v1574_v40 = vmax.bf16 %v1572_v35, %v1569_v34  ;;  %v1576_v41 = vsel %vm586_vm0, %v166_v27, 4286644096 }
  0xb0   :  { %v103_v42 = vld [vmem:[%s5487_s0 + $0x174] sm:$0xf]  ;;  %v1580_v44 = vsel %vm586_vm0, %v230_v32, 4286644096  ;;  %v1565_v46 = vsel %vm586_vm0, %v549_v24, 4286644096 }
  0xb1   :  { %v167_v43 = vld [vmem:[%s5487_s0 + $0x274] sm:$0xf]  ;;  %v1559_v45 = vmax.bf16 %v1557_v31, %v1555_v37  ;;  %v358_v47 = vld [vmem:[%s5487_s0 + $0x570] sm:$0xf]  ;;  %v1578_v48 = vmax.bf16 %v1576_v41, %v1574_v40  ;;  %v1532_v49 = vmax.bf16 %v1530_v29, %v1528_v36  ;;  %v1584_v51 = vsel %vm586_vm0, %v294_v39, 4286644096 }
  0xb2   :  { %v231_v50 = vld [vmem:[%s5487_s0 + $0x374] sm:$0xf]  ;;  %v1604_v52 = vsel %vm586_vm0, %v39_v38, 4286644096  ;;  %v422_v54 = vld [vmem:[%s5487_s0 + $0x670] sm:$0xf] }
  0xb3   :  { %v1563_v53 = vmax.bf16 %v1561_v33, %v1559_v45  ;;  %v1582_v55 = vmax.bf16 %v1580_v44, %v1578_v48  ;;  %v1607_v56 = vsel %vm586_vm0, %v103_v42, 4286644096  ;;  %v1611_v57 = vsel %vm586_vm0, %v167_v43, 4286644096  ;;  %v295_v58 = vld [vmem:[%s5487_s0 + $0x474] sm:$0xf] }
  0xb4   :  { %v1588_v59 = vsel %vm586_vm0, %v358_v47, 4286644096  ;;  %v1609_v60 = vmax.bf16 %v1607_v56, %v1604_v52  ;;  %v359_v62 = vld [vmem:[%s5487_s0 + $0x574] sm:$0xf]  ;;  %v486_v63 = vld [vmem:[%s5487_s0 + $0x770] sm:$0xf] }
  0xb5   :  { %v1567_v61 = vmax.bf16 %v1565_v46, %v1563_v53  ;;  %v1586_v0 = vmax.bf16 %v1584_v51, %v1582_v55  ;;  %v1615_v1 = vsel %vm586_vm0, %v231_v50, 4286644096  ;;  %v423_v2 = vld [vmem:[%s5487_s0 + $0x674] sm:$0xf]  ;;  %v550_v3 = vld [vmem:[%s5487_s0 + $0x870] sm:$0xf] }
  0xb6   :  { %v1592_v4 = vsel %vm586_vm0, %v422_v54, 4286644096  ;;  %v1613_v5 = vmax.bf16 %v1611_v57, %v1609_v60  ;;  %v1619_v8 = vsel %vm586_vm0, %v295_v58, 4286644096  ;;  %v40_v9 = vld [vmem:[%s5487_s0 + $0x78] sm:$0xf] }
  0xb7   :  { %v3093_v6 = vcombine.low %v1532_v49, %v1567_v61  ;;  %v1590_v7 = vmax.bf16 %v1588_v59, %v1586_v0  ;;  %v104_v10 = vld [vmem:[%s5487_s0 + $0x178] sm:$0xf]  ;;  %v487_v11 = vld [vmem:[%s5487_s0 + $0x774] sm:$0xf]  ;;  %v1596_v12 = vsel %vm586_vm0, %v486_v63, 4286644096 }
  0xb8   :  { %v1617_v13 = vmax.bf16 %v1615_v1, %v1613_v5  ;;  %v168_v14 = vld [vmem:[%s5487_s0 + $0x278] sm:$0xf]  ;;  %v1600_v16 = vsel %vm586_vm0, %v550_v3, 4286644096  ;;  %v1623_v17 = vsel %vm586_vm0, %v359_v62, 4286644096 }
  0xb9   :  { %3094 = vst [vmem:[#allocation2 + $0x68] sm:$0xff] %v3093_v6   ;;  %v1594_v15 = vmax.bf16 %v1592_v4, %v1590_v7  ;;  %v41_v18 = vld [vmem:[%s5487_s0 + $0x7c] sm:$0xf]  ;;  %v232_v20 = vld [vmem:[%s5487_s0 + $0x378] sm:$0xf] }
  0xba   :  { %v105_v19 = vld [vmem:[%s5487_s0 + $0x17c] sm:$0xf]  ;;  %v1621_v21 = vmax.bf16 %v1619_v8, %v1617_v13  ;;  %v296_v22 = vld [vmem:[%s5487_s0 + $0x478] sm:$0xf]  ;;  %v1639_v23 = vsel %vm586_vm0, %v40_v9, 4286644096 }
  0xbb   :  { %v1642_v24 = vsel %vm586_vm0, %v104_v10, 4286644096  ;;  %v1627_v25 = vsel %vm586_vm0, %v423_v2, 4286644096  ;;  %v169_v26 = vld [vmem:[%s5487_s0 + $0x27c] sm:$0xf]  ;;  %v1598_v30 = vmax.bf16 %v1596_v12, %v1594_v15 }
  0xbc   :  { %v1644_v27 = vmax.bf16 %v1642_v24, %v1639_v23  ;;  %v1646_v28 = vsel %vm586_vm0, %v168_v14, 4286644096  ;;  %v551_v29 = vld [vmem:[%s5487_s0 + $0x874] sm:$0xf]  ;;  %v1625_v31 = vmax.bf16 %v1623_v17, %v1621_v21  ;;  %v1631_v32 = vsel %vm586_vm0, %v487_v11, 4286644096 }
  0xbd   :  { %v1650_v33 = vsel %vm586_vm0, %v232_v20, 4286644096  ;;  %v233_v34 = vld [vmem:[%s5487_s0 + $0x37c] sm:$0xf]  ;;  %v360_v35 = vld [vmem:[%s5487_s0 + $0x578] sm:$0xf]  ;;  %v1602_v47 = vmax.bf16 %v1600_v16, %v1598_v30 }
  0xbe   :  { %v1648_v36 = vmax.bf16 %v1646_v28, %v1644_v27  ;;  %v1654_v37 = vsel %vm586_vm0, %v296_v22, 4286644096  ;;  %v1629_v38 = vmax.bf16 %v1627_v25, %v1625_v31  ;;  %v1674_v39 = vsel %vm586_vm0, %v41_v18, 4286644096  ;;  %v297_v43 = vld [vmem:[%s5487_s0 + $0x47c] sm:$0xf] }
  0xbf   :  { %v1677_v40 = vsel %vm586_vm0, %v105_v19, 4286644096  ;;  %v1681_v41 = vsel %vm586_vm0, %v169_v26, 4286644096  ;;  %v1635_v42 = vsel %vm586_vm0, %v551_v29, 4286644096 }
  0xc0   :  { %v424_v44 = vld [vmem:[%s5487_s0 + $0x678] sm:$0xf]  ;;  %v1652_v45 = vmax.bf16 %v1650_v33, %v1648_v36  ;;  %v1679_v46 = vmax.bf16 %v1677_v40, %v1674_v39  ;;  %v1633_v48 = vmax.bf16 %v1631_v32, %v1629_v38  ;;  %v1658_v49 = vsel %vm586_vm0, %v360_v35, 4286644096  ;;  %v361_v51 = vld [vmem:[%s5487_s0 + $0x57c] sm:$0xf] }
  0xc1   :  { %v1685_v50 = vsel %vm586_vm0, %v233_v34, 4286644096  ;;  %v425_v52 = vld [vmem:[%s5487_s0 + $0x67c] sm:$0xf]  ;;  %v488_v53 = vld [vmem:[%s5487_s0 + $0x778] sm:$0xf] }
  0xc2   :  { %v1656_v54 = vmax.bf16 %v1654_v37, %v1652_v45  ;;  %v1683_v55 = vmax.bf16 %v1681_v41, %v1679_v46  ;;  %v1637_v56 = vmax.bf16 %v1635_v42, %v1633_v48  ;;  %v552_v57 = vld [vmem:[%s5487_s0 + $0x878] sm:$0xf]  ;;  %v1662_v58 = vsel %vm586_vm0, %v424_v44, 4286644096  ;;  %v489_v60 = vld [vmem:[%s5487_s0 + $0x77c] sm:$0xf] }
  0xc3   :  { %v1689_v59 = vsel %vm586_vm0, %v297_v43, 4286644096  ;;  %v42_v63 = vld [vmem:[%s5487_s0 + $0x80] sm:$0xf]  ;;  %v553_v2 = vld [vmem:[%s5487_s0 + $0x87c] sm:$0xf] }
  0xc4   :  { %v1660_v61 = vmax.bf16 %v1658_v49, %v1656_v54  ;;  %v1687_v62 = vmax.bf16 %v1685_v50, %v1683_v55  ;;  %v106_v0 = vld [vmem:[%s5487_s0 + $0x180] sm:$0xf]  ;;  %v3095_v1 = vcombine.low %v1602_v47, %v1637_v56  ;;  %v1666_v3 = vsel %vm586_vm0, %v488_v53, 4286644096  ;;  %v43_v16 = vld [vmem:[%s5487_s0 + $0x84] sm:$0xf] }
  0xc5   :  { %v1693_v4 = vsel %vm586_vm0, %v361_v51, 4286644096  ;;  %v170_v5 = vld [vmem:[%s5487_s0 + $0x280] sm:$0xf]  ;;  %v1670_v7 = vsel %vm586_vm0, %v552_v57, 4286644096 }
  0xc6   :  { %v1664_v6 = vmax.bf16 %v1662_v58, %v1660_v61  ;;  %v1691_v8 = vmax.bf16 %v1689_v59, %v1687_v62  ;;  %v1697_v9 = vsel %vm586_vm0, %v425_v52, 4286644096  ;;  %v234_v10 = vld [vmem:[%s5487_s0 + $0x380] sm:$0xf]  ;;  %3096 = vst [vmem:[#allocation2 + $0x70] sm:$0xff] %v3095_v1  }
  0xc7   :  { %v1701_v11 = vsel %vm586_vm0, %v489_v60, 4286644096  ;;  %v1709_v12 = vsel %vm586_vm0, %v42_v63, 4286644096  ;;  %v1712_v13 = vsel %vm586_vm0, %v106_v0, 4286644096 }
  0xc8   :  { %v1668_v14 = vmax.bf16 %v1666_v3, %v1664_v6  ;;  %v1695_v15 = vmax.bf16 %v1693_v4, %v1691_v8  ;;  %v298_v17 = vld [vmem:[%s5487_s0 + $0x480] sm:$0xf]  ;;  %v1714_v18 = vmax.bf16 %v1712_v13, %v1709_v12  ;;  %v1716_v19 = vsel %vm586_vm0, %v170_v5, 4286644096  ;;  %v107_v20 = vld [vmem:[%s5487_s0 + $0x184] sm:$0xf] }
  0xc9   :  { %v171_v21 = vld [vmem:[%s5487_s0 + $0x284] sm:$0xf]  ;;  %v1720_v22 = vsel %vm586_vm0, %v234_v10, 4286644096  ;;  %v1705_v24 = vsel %vm586_vm0, %v553_v2, 4286644096 }
  0xca   :  { %v1699_v23 = vmax.bf16 %v1697_v9, %v1695_v15  ;;  %v362_v25 = vld [vmem:[%s5487_s0 + $0x580] sm:$0xf]  ;;  %v1718_v26 = vmax.bf16 %v1716_v19, %v1714_v18  ;;  %v1672_v27 = vmax.bf16 %v1670_v7, %v1668_v14  ;;  %v235_v28 = vld [vmem:[%s5487_s0 + $0x384] sm:$0xf]  ;;  %v1724_v29 = vsel %vm586_vm0, %v298_v17, 4286644096 }
  0xcb   :  { %v1744_v30 = vsel %vm586_vm0, %v43_v16, 4286644096  ;;  %v426_v32 = vld [vmem:[%s5487_s0 + $0x680] sm:$0xf]  ;;  %v1747_v34 = vsel %vm586_vm0, %v107_v20, 4286644096 }
  0xcc   :  { %v1703_v31 = vmax.bf16 %v1701_v11, %v1699_v23  ;;  %v1722_v33 = vmax.bf16 %v1720_v22, %v1718_v26  ;;  %v1751_v35 = vsel %vm586_vm0, %v171_v21, 4286644096  ;;  %v299_v36 = vld [vmem:[%s5487_s0 + $0x484] sm:$0xf]  ;;  %v1728_v37 = vsel %vm586_vm0, %v362_v25, 4286644096 }
  0xcd   :  { %v1749_v38 = vmax.bf16 %v1747_v34, %v1744_v30  ;;  %v363_v40 = vld [vmem:[%s5487_s0 + $0x584] sm:$0xf]  ;;  %v490_v41 = vld [vmem:[%s5487_s0 + $0x780] sm:$0xf]  ;;  %v1755_v43 = vsel %vm586_vm0, %v235_v28, 4286644096 }
  0xce   :  { %v1707_v39 = vmax.bf16 %v1705_v24, %v1703_v31  ;;  %v1726_v42 = vmax.bf16 %v1724_v29, %v1722_v33  ;;  %v427_v44 = vld [vmem:[%s5487_s0 + $0x684] sm:$0xf]  ;;  %v554_v45 = vld [vmem:[%s5487_s0 + $0x880] sm:$0xf]  ;;  %v1732_v46 = vsel %vm586_vm0, %v426_v32, 4286644096 }
  0xcf   :  { %v1753_v47 = vmax.bf16 %v1751_v35, %v1749_v38  ;;  %v1759_v50 = vsel %vm586_vm0, %v299_v36, 4286644096  ;;  %v44_v51 = vld [vmem:[%s5487_s0 + $0x88] sm:$0xf]  ;;  %v491_v53 = vld [vmem:[%s5487_s0 + $0x784] sm:$0xf] }
  0xd0   :  { %v3097_v48 = vcombine.low %v1672_v27, %v1707_v39  ;;  %v1730_v49 = vmax.bf16 %v1728_v37, %v1726_v42  ;;  %v108_v52 = vld [vmem:[%s5487_s0 + $0x188] sm:$0xf]  ;;  %v1736_v54 = vsel %vm586_vm0, %v490_v41, 4286644096  ;;  %v1740_v58 = vsel %vm586_vm0, %v554_v45, 4286644096 }
  0xd1   :  { %v1757_v55 = vmax.bf16 %v1755_v43, %v1753_v47  ;;  %v172_v56 = vld [vmem:[%s5487_s0 + $0x288] sm:$0xf]  ;;  %v1763_v59 = vsel %vm586_vm0, %v363_v40, 4286644096  ;;  %v45_v60 = vld [vmem:[%s5487_s0 + $0x8c] sm:$0xf] }
  0xd2   :  { %3098 = vst [vmem:[#allocation2 + $0x78] sm:$0xff] %v3097_v48   ;;  %v1734_v57 = vmax.bf16 %v1732_v46, %v1730_v49  ;;  %v109_v61 = vld [vmem:[%s5487_s0 + $0x18c] sm:$0xf]  ;;  %v236_v62 = vld [vmem:[%s5487_s0 + $0x388] sm:$0xf] }
  0xd3   :  { %v1761_v63 = vmax.bf16 %v1759_v50, %v1757_v55  ;;  %v300_v0 = vld [vmem:[%s5487_s0 + $0x488] sm:$0xf]  ;;  %v1779_v1 = vsel %vm586_vm0, %v44_v51, 4286644096  ;;  %v1782_v2 = vsel %vm586_vm0, %v108_v52, 4286644096 }
  0xd4   :  { %v1767_v3 = vsel %vm586_vm0, %v427_v44, 4286644096  ;;  %v173_v4 = vld [vmem:[%s5487_s0 + $0x28c] sm:$0xf]  ;;  %v1784_v5 = vmax.bf16 %v1782_v2, %v1779_v1  ;;  %v1786_v6 = vsel %vm586_vm0, %v172_v56, 4286644096  ;;  %v1738_v8 = vmax.bf16 %v1736_v54, %v1734_v57 }
  0xd5   :  { %v555_v7 = vld [vmem:[%s5487_s0 + $0x884] sm:$0xf]  ;;  %v1765_v9 = vmax.bf16 %v1763_v59, %v1761_v63  ;;  %v1771_v10 = vsel %vm586_vm0, %v491_v53, 4286644096  ;;  %v1790_v11 = vsel %vm586_vm0, %v236_v62, 4286644096 }
  0xd6   :  { %v237_v12 = vld [vmem:[%s5487_s0 + $0x38c] sm:$0xf]  ;;  %v364_v13 = vld [vmem:[%s5487_s0 + $0x588] sm:$0xf]  ;;  %v1788_v14 = vmax.bf16 %v1786_v6, %v1784_v5  ;;  %v1794_v15 = vsel %vm586_vm0, %v300_v0, 4286644096  ;;  %v1742_v25 = vmax.bf16 %v1740_v58, %v1738_v8 }
  0xd7   :  { %v1769_v16 = vmax.bf16 %v1767_v3, %v1765_v9  ;;  %v1814_v17 = vsel %vm586_vm0, %v45_v60, 4286644096  ;;  %v1817_v18 = vsel %vm586_vm0, %v109_v61, 4286644096  ;;  %v1821_v19 = vsel %vm586_vm0, %v173_v4, 4286644096 }
  0xd8   :  { %v1775_v20 = vsel %vm586_vm0, %v555_v7, 4286644096  ;;  %v301_v21 = vld [vmem:[%s5487_s0 + $0x48c] sm:$0xf]  ;;  %v428_v22 = vld [vmem:[%s5487_s0 + $0x688] sm:$0xf]  ;;  %v1792_v23 = vmax.bf16 %v1790_v11, %v1788_v14  ;;  %v1819_v24 = vmax.bf16 %v1817_v18, %v1814_v17 }
  0xd9   :  { %v1773_v26 = vmax.bf16 %v1771_v10, %v1769_v16  ;;  %v1798_v27 = vsel %vm586_vm0, %v364_v13, 4286644096  ;;  %v1825_v28 = vsel %vm586_vm0, %v237_v12, 4286644096  ;;  %v365_v29 = vld [vmem:[%s5487_s0 + $0x58c] sm:$0xf] }
  0xda   :  { %v429_v30 = vld [vmem:[%s5487_s0 + $0x68c] sm:$0xf]  ;;  %v492_v31 = vld [vmem:[%s5487_s0 + $0x788] sm:$0xf]  ;;  %v1796_v32 = vmax.bf16 %v1794_v15, %v1792_v23  ;;  %v1823_v33 = vmax.bf16 %v1821_v19, %v1819_v24  ;;  %v1802_v36 = vsel %vm586_vm0, %v428_v22, 4286644096 }
  0xdb   :  { %v1777_v34 = vmax.bf16 %v1775_v20, %v1773_v26  ;;  %v556_v35 = vld [vmem:[%s5487_s0 + $0x888] sm:$0xf]  ;;  %v1829_v37 = vsel %vm586_vm0, %v301_v21, 4286644096  ;;  %v493_v38 = vld [vmem:[%s5487_s0 + $0x78c] sm:$0xf] }
  0xdc   :  { %v1800_v39 = vmax.bf16 %v1798_v27, %v1796_v32  ;;  %v1827_v40 = vmax.bf16 %v1825_v28, %v1823_v33  ;;  %v46_v41 = vld [vmem:[%s5487_s0 + $0x90] sm:$0xf]  ;;  %v557_v44 = vld [vmem:[%s5487_s0 + $0x88c] sm:$0xf]  ;;  %v1806_v45 = vsel %vm586_vm0, %v492_v31, 4286644096 }
  0xdd   :  { %v110_v42 = vld [vmem:[%s5487_s0 + $0x190] sm:$0xf]  ;;  %v3099_v43 = vcombine.low %v1742_v25, %v1777_v34  ;;  %v1833_v46 = vsel %vm586_vm0, %v365_v29, 4286644096  ;;  %v1810_v49 = vsel %vm586_vm0, %v556_v35, 4286644096 }
  0xde   :  { %v174_v47 = vld [vmem:[%s5487_s0 + $0x290] sm:$0xf]  ;;  %v1804_v48 = vmax.bf16 %v1802_v36, %v1800_v39  ;;  %v1831_v50 = vmax.bf16 %v1829_v37, %v1827_v40  ;;  %v1837_v51 = vsel %vm586_vm0, %v429_v30, 4286644096  ;;  %v1841_v53 = vsel %vm586_vm0, %v493_v38, 4286644096 }
  0xdf   :  { %v238_v52 = vld [vmem:[%s5487_s0 + $0x390] sm:$0xf]  ;;  %3100 = vst [vmem:[#allocation2 + $0x80] sm:$0xff] %v3099_v43   ;;  %v1849_v54 = vsel %vm586_vm0, %v46_v41, 4286644096 }
  0xe0   :  { %v1852_v55 = vsel %vm586_vm0, %v110_v42, 4286644096  ;;  %v1808_v56 = vmax.bf16 %v1806_v45, %v1804_v48  ;;  %v1835_v57 = vmax.bf16 %v1833_v46, %v1831_v50  ;;  %v47_v58 = vld [vmem:[%s5487_s0 + $0x94] sm:$0xf]  ;;  %v302_v59 = vld [vmem:[%s5487_s0 + $0x490] sm:$0xf] }
  0xe1   :  { %v1854_v60 = vmax.bf16 %v1852_v55, %v1849_v54  ;;  %v1856_v61 = vsel %vm586_vm0, %v174_v47, 4286644096  ;;  %v111_v62 = vld [vmem:[%s5487_s0 + $0x194] sm:$0xf]  ;;  %v1860_v0 = vsel %vm586_vm0, %v238_v52, 4286644096 }
  0xe2   :  { %v175_v63 = vld [vmem:[%s5487_s0 + $0x294] sm:$0xf]  ;;  %v1839_v1 = vmax.bf16 %v1837_v51, %v1835_v57  ;;  %v1845_v2 = vsel %vm586_vm0, %v557_v44, 4286644096  ;;  %v366_v3 = vld [vmem:[%s5487_s0 + $0x590] sm:$0xf]  ;;  %v1812_v5 = vmax.bf16 %v1810_v49, %v1808_v56 }
  0xe3   :  { %v1858_v4 = vmax.bf16 %v1856_v61, %v1854_v60  ;;  %v239_v6 = vld [vmem:[%s5487_s0 + $0x394] sm:$0xf]  ;;  %v1864_v7 = vsel %vm586_vm0, %v302_v59, 4286644096  ;;  %v1884_v8 = vsel %vm586_vm0, %v47_v58, 4286644096 }
  0xe4   :  { %v1843_v9 = vmax.bf16 %v1841_v53, %v1839_v1  ;;  %v430_v10 = vld [vmem:[%s5487_s0 + $0x690] sm:$0xf]  ;;  %v1887_v12 = vsel %vm586_vm0, %v111_v62, 4286644096  ;;  %v1891_v13 = vsel %vm586_vm0, %v175_v63, 4286644096 }
  0xe5   :  { %v1862_v11 = vmax.bf16 %v1860_v0, %v1858_v4  ;;  %v303_v14 = vld [vmem:[%s5487_s0 + $0x494] sm:$0xf]  ;;  %v1868_v15 = vsel %vm586_vm0, %v366_v3, 4286644096  ;;  %v1889_v16 = vmax.bf16 %v1887_v12, %v1884_v8  ;;  %v494_v19 = vld [vmem:[%s5487_s0 + $0x790] sm:$0xf] }
  0xe6   :  { %v1847_v17 = vmax.bf16 %v1845_v2, %v1843_v9  ;;  %v367_v18 = vld [vmem:[%s5487_s0 + $0x594] sm:$0xf]  ;;  %v1895_v21 = vsel %vm586_vm0, %v239_v6, 4286644096  ;;  %v558_v23 = vld [vmem:[%s5487_s0 + $0x890] sm:$0xf] }
  0xe7   :  { %v1866_v20 = vmax.bf16 %v1864_v7, %v1862_v11  ;;  %v431_v22 = vld [vmem:[%s5487_s0 + $0x694] sm:$0xf]  ;;  %v1872_v24 = vsel %vm586_vm0, %v430_v10, 4286644096  ;;  %v1893_v25 = vmax.bf16 %v1891_v13, %v1889_v16  ;;  %v1899_v28 = vsel %vm586_vm0, %v303_v14, 4286644096 }
  0xe8   :  { %v3101_v26 = vcombine.low %v1812_v5, %v1847_v17  ;;  %v48_v29 = vld [vmem:[%s5487_s0 + $0x98] sm:$0xf]  ;;  %v495_v31 = vld [vmem:[%s5487_s0 + $0x794] sm:$0xf]  ;;  %v1876_v32 = vsel %vm586_vm0, %v494_v19, 4286644096 }
  0xe9   :  { %v1870_v27 = vmax.bf16 %v1868_v15, %v1866_v20  ;;  %v112_v30 = vld [vmem:[%s5487_s0 + $0x198] sm:$0xf]  ;;  %v1897_v33 = vmax.bf16 %v1895_v21, %v1893_v25  ;;  %v1880_v36 = vsel %vm586_vm0, %v558_v23, 4286644096  ;;  %v1903_v37 = vsel %vm586_vm0, %v367_v18, 4286644096 }
  0xea   :  { %v176_v34 = vld [vmem:[%s5487_s0 + $0x298] sm:$0xf]  ;;  %3102 = vst [vmem:[#allocation2 + $0x88] sm:$0xff] %v3101_v26   ;;  %v49_v38 = vld [vmem:[%s5487_s0 + $0x9c] sm:$0xf] }
  0xeb   :  { %v1874_v35 = vmax.bf16 %v1872_v24, %v1870_v27  ;;  %v113_v39 = vld [vmem:[%s5487_s0 + $0x19c] sm:$0xf]  ;;  %v240_v40 = vld [vmem:[%s5487_s0 + $0x398] sm:$0xf]  ;;  %v1901_v41 = vmax.bf16 %v1899_v28, %v1897_v33  ;;  %v1919_v43 = vsel %vm586_vm0, %v48_v29, 4286644096 }
  0xec   :  { %v304_v42 = vld [vmem:[%s5487_s0 + $0x498] sm:$0xf]  ;;  %v1922_v44 = vsel %vm586_vm0, %v112_v30, 4286644096  ;;  %v1907_v45 = vsel %vm586_vm0, %v431_v22, 4286644096 }
  0xed   :  { %v177_v46 = vld [vmem:[%s5487_s0 + $0x29c] sm:$0xf]  ;;  %v1924_v47 = vmax.bf16 %v1922_v44, %v1919_v43  ;;  %v1926_v48 = vsel %vm586_vm0, %v176_v34, 4286644096  ;;  %v559_v49 = vld [vmem:[%s5487_s0 + $0x894] sm:$0xf]  ;;  %v1878_v50 = vmax.bf16 %v1876_v32, %v1874_v35  ;;  %v1905_v51 = vmax.bf16 %v1903_v37, %v1901_v41 }
  0xee   :  { %v1911_v52 = vsel %vm586_vm0, %v495_v31, 4286644096  ;;  %v1930_v53 = vsel %vm586_vm0, %v240_v40, 4286644096  ;;  %v241_v54 = vld [vmem:[%s5487_s0 + $0x39c] sm:$0xf] }
  0xef   :  { %v368_v55 = vld [vmem:[%s5487_s0 + $0x598] sm:$0xf]  ;;  %v1928_v56 = vmax.bf16 %v1926_v48, %v1924_v47  ;;  %v1934_v57 = vsel %vm586_vm0, %v304_v42, 4286644096  ;;  %v1909_v58 = vmax.bf16 %v1907_v45, %v1905_v51  ;;  %v1954_v59 = vsel %vm586_vm0, %v49_v38, 4286644096 }
  0xf0   :  { %v1957_v60 = vsel %vm586_vm0, %v113_v39, 4286644096  ;;  %v1961_v61 = vsel %vm586_vm0, %v177_v46, 4286644096  ;;  %v1915_v62 = vsel %vm586_vm0, %v559_v49, 4286644096  ;;  %v1882_v3 = vmax.bf16 %v1880_v36, %v1878_v50 }
  0xf1   :  { %v305_v63 = vld [vmem:[%s5487_s0 + $0x49c] sm:$0xf]  ;;  %v432_v0 = vld [vmem:[%s5487_s0 + $0x698] sm:$0xf]  ;;  %v1932_v1 = vmax.bf16 %v1930_v53, %v1928_v56  ;;  %v1959_v2 = vmax.bf16 %v1957_v60, %v1954_v59  ;;  %v1913_v4 = vmax.bf16 %v1911_v52, %v1909_v58  ;;  %v1938_v5 = vsel %vm586_vm0, %v368_v55, 4286644096 }
  0xf2   :  { %v1965_v6 = vsel %vm586_vm0, %v241_v54, 4286644096  ;;  %v369_v7 = vld [vmem:[%s5487_s0 + $0x59c] sm:$0xf]  ;;  %v496_v9 = vld [vmem:[%s5487_s0 + $0x798] sm:$0xf] }
  0xf3   :  { %v433_v8 = vld [vmem:[%s5487_s0 + $0x69c] sm:$0xf]  ;;  %v1936_v10 = vmax.bf16 %v1934_v57, %v1932_v1  ;;  %v1963_v11 = vmax.bf16 %v1961_v61, %v1959_v2  ;;  %v1917_v12 = vmax.bf16 %v1915_v62, %v1913_v4  ;;  %v560_v13 = vld [vmem:[%s5487_s0 + $0x898] sm:$0xf]  ;;  %v1942_v14 = vsel %vm586_vm0, %v432_v0, 4286644096 }
  0xf4   :  { %v1969_v15 = vsel %vm586_vm0, %v305_v63, 4286644096  ;;  %v497_v16 = vld [vmem:[%s5487_s0 + $0x79c] sm:$0xf]  ;;  %v50_v19 = vld [vmem:[%s5487_s0 + $0xa0] sm:$0xf] }
  0xf5   :  { %v1940_v17 = vmax.bf16 %v1938_v5, %v1936_v10  ;;  %v1967_v18 = vmax.bf16 %v1965_v6, %v1963_v11  ;;  %v114_v20 = vld [vmem:[%s5487_s0 + $0x1a0] sm:$0xf]  ;;  %v3103_v21 = vcombine.low %v1882_v3, %v1917_v12  ;;  %v561_v22 = vld [vmem:[%s5487_s0 + $0x89c] sm:$0xf]  ;;  %v1946_v23 = vsel %vm586_vm0, %v496_v9, 4286644096 }
  0xf6   :  { %v1973_v24 = vsel %vm586_vm0, %v369_v7, 4286644096  ;;  %v178_v25 = vld [vmem:[%s5487_s0 + $0x2a0] sm:$0xf]  ;;  %v1950_v27 = vsel %vm586_vm0, %v560_v13, 4286644096 }
  0xf7   :  { %v1944_v26 = vmax.bf16 %v1942_v14, %v1940_v17  ;;  %v1971_v28 = vmax.bf16 %v1969_v15, %v1967_v18  ;;  %v1977_v29 = vsel %vm586_vm0, %v433_v8, 4286644096  ;;  %v242_v30 = vld [vmem:[%s5487_s0 + $0x3a0] sm:$0xf]  ;;  %3104 = vst [vmem:[#allocation2 + $0x90] sm:$0xff] %v3103_v21  }
  0xf8   :  { %v1981_v31 = vsel %vm586_vm0, %v497_v16, 4286644096  ;;  %v1989_v32 = vsel %vm586_vm0, %v50_v19, 4286644096  ;;  %v1992_v33 = vsel %vm586_vm0, %v114_v20, 4286644096 }
  0xf9   :  { %v1948_v34 = vmax.bf16 %v1946_v23, %v1944_v26  ;;  %v1975_v35 = vmax.bf16 %v1973_v24, %v1971_v28  ;;  %v51_v36 = vld [vmem:[%s5487_s0 + $0xa4] sm:$0xf]  ;;  %v306_v37 = vld [vmem:[%s5487_s0 + $0x4a0] sm:$0xf]  ;;  %v1994_v38 = vmax.bf16 %v1992_v33, %v1989_v32  ;;  %v1996_v39 = vsel %vm586_vm0, %v178_v25, 4286644096 }
  0xfa   :  { %v115_v40 = vld [vmem:[%s5487_s0 + $0x1a4] sm:$0xf]  ;;  %v2000_v42 = vsel %vm586_vm0, %v242_v30, 4286644096  ;;  %v1985_v44 = vsel %vm586_vm0, %v561_v22, 4286644096 }
  0xfb   :  { %v179_v41 = vld [vmem:[%s5487_s0 + $0x2a4] sm:$0xf]  ;;  %v1979_v43 = vmax.bf16 %v1977_v29, %v1975_v35  ;;  %v370_v45 = vld [vmem:[%s5487_s0 + $0x5a0] sm:$0xf]  ;;  %v1998_v46 = vmax.bf16 %v1996_v39, %v1994_v38  ;;  %v1952_v47 = vmax.bf16 %v1950_v27, %v1948_v34  ;;  %v2004_v49 = vsel %vm586_vm0, %v306_v37, 4286644096 }
  0xfc   :  { %v243_v48 = vld [vmem:[%s5487_s0 + $0x3a4] sm:$0xf]  ;;  %v2024_v50 = vsel %vm586_vm0, %v51_v36, 4286644096  ;;  %v434_v52 = vld [vmem:[%s5487_s0 + $0x6a0] sm:$0xf] }
  0xfd   :  { %v1983_v51 = vmax.bf16 %v1981_v31, %v1979_v43  ;;  %v2002_v53 = vmax.bf16 %v2000_v42, %v1998_v46  ;;  %v2027_v54 = vsel %vm586_vm0, %v115_v40, 4286644096  ;;  %v2031_v55 = vsel %vm586_vm0, %v179_v41, 4286644096  ;;  %v307_v56 = vld [vmem:[%s5487_s0 + $0x4a4] sm:$0xf] }
  0xfe   :  { %v2008_v57 = vsel %vm586_vm0, %v370_v45, 4286644096  ;;  %v2029_v58 = vmax.bf16 %v2027_v54, %v2024_v50  ;;  %v371_v60 = vld [vmem:[%s5487_s0 + $0x5a4] sm:$0xf]  ;;  %v498_v61 = vld [vmem:[%s5487_s0 + $0x7a0] sm:$0xf] }
  0xff   :  { %v1987_v59 = vmax.bf16 %v1985_v44, %v1983_v51  ;;  %v2006_v62 = vmax.bf16 %v2004_v49, %v2002_v53  ;;  %v2035_v63 = vsel %vm586_vm0, %v243_v48, 4286644096  ;;  %v435_v0 = vld [vmem:[%s5487_s0 + $0x6a4] sm:$0xf]  ;;  %v562_v1 = vld [vmem:[%s5487_s0 + $0x8a0] sm:$0xf] }
 0x100   :  { %v2012_v2 = vsel %vm586_vm0, %v434_v52, 4286644096  ;;  %v2033_v3 = vmax.bf16 %v2031_v55, %v2029_v58  ;;  %v2039_v6 = vsel %vm586_vm0, %v307_v56, 4286644096  ;;  %v52_v7 = vld [vmem:[%s5487_s0 + $0xa8] sm:$0xf] }
 0x101   :  { %v3105_v4 = vcombine.low %v1952_v47, %v1987_v59  ;;  %v2010_v5 = vmax.bf16 %v2008_v57, %v2006_v62  ;;  %v116_v8 = vld [vmem:[%s5487_s0 + $0x1a8] sm:$0xf]  ;;  %v499_v9 = vld [vmem:[%s5487_s0 + $0x7a4] sm:$0xf]  ;;  %v2016_v10 = vsel %vm586_vm0, %v498_v61, 4286644096 }
 0x102   :  { %v2037_v11 = vmax.bf16 %v2035_v63, %v2033_v3  ;;  %v180_v12 = vld [vmem:[%s5487_s0 + $0x2a8] sm:$0xf]  ;;  %v2020_v14 = vsel %vm586_vm0, %v562_v1, 4286644096  ;;  %v2043_v15 = vsel %vm586_vm0, %v371_v60, 4286644096 }
 0x103   :  { %3106 = vst [vmem:[#allocation2 + $0x98] sm:$0xff] %v3105_v4   ;;  %v2014_v13 = vmax.bf16 %v2012_v2, %v2010_v5  ;;  %v53_v16 = vld [vmem:[%s5487_s0 + $0xac] sm:$0xf]  ;;  %v244_v18 = vld [vmem:[%s5487_s0 + $0x3a8] sm:$0xf] }
 0x104   :  { %v117_v17 = vld [vmem:[%s5487_s0 + $0x1ac] sm:$0xf]  ;;  %v2041_v19 = vmax.bf16 %v2039_v6, %v2037_v11  ;;  %v308_v20 = vld [vmem:[%s5487_s0 + $0x4a8] sm:$0xf]  ;;  %v2059_v21 = vsel %vm586_vm0, %v52_v7, 4286644096 }
 0x105   :  { %v2062_v22 = vsel %vm586_vm0, %v116_v8, 4286644096  ;;  %v2047_v23 = vsel %vm586_vm0, %v435_v0, 4286644096  ;;  %v181_v24 = vld [vmem:[%s5487_s0 + $0x2ac] sm:$0xf]  ;;  %v2018_v28 = vmax.bf16 %v2016_v10, %v2014_v13 }
 0x106   :  { %v2064_v25 = vmax.bf16 %v2062_v22, %v2059_v21  ;;  %v2066_v26 = vsel %vm586_vm0, %v180_v12, 4286644096  ;;  %v563_v27 = vld [vmem:[%s5487_s0 + $0x8a4] sm:$0xf]  ;;  %v2045_v29 = vmax.bf16 %v2043_v15, %v2041_v19  ;;  %v2051_v30 = vsel %vm586_vm0, %v499_v9, 4286644096 }
 0x107   :  { %v2070_v31 = vsel %vm586_vm0, %v244_v18, 4286644096  ;;  %v245_v32 = vld [vmem:[%s5487_s0 + $0x3ac] sm:$0xf]  ;;  %v372_v33 = vld [vmem:[%s5487_s0 + $0x5a8] sm:$0xf]  ;;  %v2022_v45 = vmax.bf16 %v2020_v14, %v2018_v28 }
 0x108   :  { %v2068_v34 = vmax.bf16 %v2066_v26, %v2064_v25  ;;  %v2074_v35 = vsel %vm586_vm0, %v308_v20, 4286644096  ;;  %v2049_v36 = vmax.bf16 %v2047_v23, %v2045_v29  ;;  %v2094_v37 = vsel %vm586_vm0, %v53_v16, 4286644096  ;;  %v309_v41 = vld [vmem:[%s5487_s0 + $0x4ac] sm:$0xf] }
 0x109   :  { %v2097_v38 = vsel %vm586_vm0, %v117_v17, 4286644096  ;;  %v2101_v39 = vsel %vm586_vm0, %v181_v24, 4286644096  ;;  %v2055_v40 = vsel %vm586_vm0, %v563_v27, 4286644096 }
 0x10a   :  { %v436_v42 = vld [vmem:[%s5487_s0 + $0x6a8] sm:$0xf]  ;;  %v2072_v43 = vmax.bf16 %v2070_v31, %v2068_v34  ;;  %v2099_v44 = vmax.bf16 %v2097_v38, %v2094_v37  ;;  %v2053_v46 = vmax.bf16 %v2051_v30, %v2049_v36  ;;  %v2078_v47 = vsel %vm586_vm0, %v372_v33, 4286644096  ;;  %v373_v49 = vld [vmem:[%s5487_s0 + $0x5ac] sm:$0xf] }
 0x10b   :  { %v2105_v48 = vsel %vm586_vm0, %v245_v32, 4286644096  ;;  %v437_v50 = vld [vmem:[%s5487_s0 + $0x6ac] sm:$0xf]  ;;  %v500_v51 = vld [vmem:[%s5487_s0 + $0x7a8] sm:$0xf] }
 0x10c   :  { %v2076_v52 = vmax.bf16 %v2074_v35, %v2072_v43  ;;  %v2103_v53 = vmax.bf16 %v2101_v39, %v2099_v44  ;;  %v2057_v54 = vmax.bf16 %v2055_v40, %v2053_v46  ;;  %v564_v55 = vld [vmem:[%s5487_s0 + $0x8a8] sm:$0xf]  ;;  %v2082_v56 = vsel %vm586_vm0, %v436_v42, 4286644096  ;;  %v501_v58 = vld [vmem:[%s5487_s0 + $0x7ac] sm:$0xf] }
 0x10d   :  { %v2109_v57 = vsel %vm586_vm0, %v309_v41, 4286644096  ;;  %v54_v61 = vld [vmem:[%s5487_s0 + $0xb0] sm:$0xf]  ;;  %v565_v0 = vld [vmem:[%s5487_s0 + $0x8ac] sm:$0xf] }
 0x10e   :  { %v2080_v59 = vmax.bf16 %v2078_v47, %v2076_v52  ;;  %v2107_v60 = vmax.bf16 %v2105_v48, %v2103_v53  ;;  %v118_v62 = vld [vmem:[%s5487_s0 + $0x1b0] sm:$0xf]  ;;  %v3107_v63 = vcombine.low %v2022_v45, %v2057_v54  ;;  %v2086_v1 = vsel %vm586_vm0, %v500_v51, 4286644096  ;;  %v55_v14 = vld [vmem:[%s5487_s0 + $0xb4] sm:$0xf] }
 0x10f   :  { %v2113_v2 = vsel %vm586_vm0, %v373_v49, 4286644096  ;;  %v182_v3 = vld [vmem:[%s5487_s0 + $0x2b0] sm:$0xf]  ;;  %v2090_v5 = vsel %vm586_vm0, %v564_v55, 4286644096 }
 0x110   :  { %v2084_v4 = vmax.bf16 %v2082_v56, %v2080_v59  ;;  %v2111_v6 = vmax.bf16 %v2109_v57, %v2107_v60  ;;  %v2117_v7 = vsel %vm586_vm0, %v437_v50, 4286644096  ;;  %v246_v8 = vld [vmem:[%s5487_s0 + $0x3b0] sm:$0xf]  ;;  %3108 = vst [vmem:[#allocation2 + $0xa0] sm:$0xff] %v3107_v63  }
 0x111   :  { %v2121_v9 = vsel %vm586_vm0, %v501_v58, 4286644096  ;;  %v2129_v10 = vsel %vm586_vm0, %v54_v61, 4286644096  ;;  %v2132_v11 = vsel %vm586_vm0, %v118_v62, 4286644096 }
 0x112   :  { %v2088_v12 = vmax.bf16 %v2086_v1, %v2084_v4  ;;  %v2115_v13 = vmax.bf16 %v2113_v2, %v2111_v6  ;;  %v310_v15 = vld [vmem:[%s5487_s0 + $0x4b0] sm:$0xf]  ;;  %v2134_v16 = vmax.bf16 %v2132_v11, %v2129_v10  ;;  %v2136_v17 = vsel %vm586_vm0, %v182_v3, 4286644096  ;;  %v119_v18 = vld [vmem:[%s5487_s0 + $0x1b4] sm:$0xf] }
 0x113   :  { %v183_v19 = vld [vmem:[%s5487_s0 + $0x2b4] sm:$0xf]  ;;  %v2140_v20 = vsel %vm586_vm0, %v246_v8, 4286644096  ;;  %v2125_v22 = vsel %vm586_vm0, %v565_v0, 4286644096 }
 0x114   :  { %v2119_v21 = vmax.bf16 %v2117_v7, %v2115_v13  ;;  %v374_v23 = vld [vmem:[%s5487_s0 + $0x5b0] sm:$0xf]  ;;  %v2138_v24 = vmax.bf16 %v2136_v17, %v2134_v16  ;;  %v2092_v25 = vmax.bf16 %v2090_v5, %v2088_v12  ;;  %v247_v26 = vld [vmem:[%s5487_s0 + $0x3b4] sm:$0xf]  ;;  %v2144_v27 = vsel %vm586_vm0, %v310_v15, 4286644096 }
 0x115   :  { %v2164_v28 = vsel %vm586_vm0, %v55_v14, 4286644096  ;;  %v438_v30 = vld [vmem:[%s5487_s0 + $0x6b0] sm:$0xf]  ;;  %v2167_v32 = vsel %vm586_vm0, %v119_v18, 4286644096 }
 0x116   :  { %v2123_v29 = vmax.bf16 %v2121_v9, %v2119_v21  ;;  %v2142_v31 = vmax.bf16 %v2140_v20, %v2138_v24  ;;  %v2171_v33 = vsel %vm586_vm0, %v183_v19, 4286644096  ;;  %v311_v34 = vld [vmem:[%s5487_s0 + $0x4b4] sm:$0xf]  ;;  %v2148_v35 = vsel %vm586_vm0, %v374_v23, 4286644096 }
 0x117   :  { %v2169_v36 = vmax.bf16 %v2167_v32, %v2164_v28  ;;  %v375_v38 = vld [vmem:[%s5487_s0 + $0x5b4] sm:$0xf]  ;;  %v502_v39 = vld [vmem:[%s5487_s0 + $0x7b0] sm:$0xf]  ;;  %v2175_v41 = vsel %vm586_vm0, %v247_v26, 4286644096 }
 0x118   :  { %v2127_v37 = vmax.bf16 %v2125_v22, %v2123_v29  ;;  %v2146_v40 = vmax.bf16 %v2144_v27, %v2142_v31  ;;  %v439_v42 = vld [vmem:[%s5487_s0 + $0x6b4] sm:$0xf]  ;;  %v566_v43 = vld [vmem:[%s5487_s0 + $0x8b0] sm:$0xf]  ;;  %v2152_v44 = vsel %vm586_vm0, %v438_v30, 4286644096 }
 0x119   :  { %v2173_v45 = vmax.bf16 %v2171_v33, %v2169_v36  ;;  %v2179_v48 = vsel %vm586_vm0, %v311_v34, 4286644096  ;;  %v56_v49 = vld [vmem:[%s5487_s0 + $0xb8] sm:$0xf]  ;;  %v503_v51 = vld [vmem:[%s5487_s0 + $0x7b4] sm:$0xf] }
 0x11a   :  { %v3109_v46 = vcombine.low %v2092_v25, %v2127_v37  ;;  %v2150_v47 = vmax.bf16 %v2148_v35, %v2146_v40  ;;  %v120_v50 = vld [vmem:[%s5487_s0 + $0x1b8] sm:$0xf]  ;;  %v2156_v52 = vsel %vm586_vm0, %v502_v39, 4286644096  ;;  %v2160_v56 = vsel %vm586_vm0, %v566_v43, 4286644096 }
 0x11b   :  { %v2177_v53 = vmax.bf16 %v2175_v41, %v2173_v45  ;;  %v184_v54 = vld [vmem:[%s5487_s0 + $0x2b8] sm:$0xf]  ;;  %v2183_v57 = vsel %vm586_vm0, %v375_v38, 4286644096  ;;  %v57_v58 = vld [vmem:[%s5487_s0 + $0xbc] sm:$0xf] }
 0x11c   :  { %3110 = vst [vmem:[#allocation2 + $0xa8] sm:$0xff] %v3109_v46   ;;  %v2154_v55 = vmax.bf16 %v2152_v44, %v2150_v47  ;;  %v121_v59 = vld [vmem:[%s5487_s0 + $0x1bc] sm:$0xf]  ;;  %v248_v60 = vld [vmem:[%s5487_s0 + $0x3b8] sm:$0xf] }
 0x11d   :  { %v2181_v61 = vmax.bf16 %v2179_v48, %v2177_v53  ;;  %v312_v62 = vld [vmem:[%s5487_s0 + $0x4b8] sm:$0xf]  ;;  %v2199_v63 = vsel %vm586_vm0, %v56_v49, 4286644096  ;;  %v2202_v0 = vsel %vm586_vm0, %v120_v50, 4286644096 }
 0x11e   :  { %v2187_v1 = vsel %vm586_vm0, %v439_v42, 4286644096  ;;  %v185_v2 = vld [vmem:[%s5487_s0 + $0x2bc] sm:$0xf]  ;;  %v2204_v3 = vmax.bf16 %v2202_v0, %v2199_v63  ;;  %v2206_v4 = vsel %vm586_vm0, %v184_v54, 4286644096  ;;  %v2158_v6 = vmax.bf16 %v2156_v52, %v2154_v55 }
 0x11f   :  { %v567_v5 = vld [vmem:[%s5487_s0 + $0x8b4] sm:$0xf]  ;;  %v2185_v7 = vmax.bf16 %v2183_v57, %v2181_v61  ;;  %v2191_v8 = vsel %vm586_vm0, %v503_v51, 4286644096  ;;  %v2210_v9 = vsel %vm586_vm0, %v248_v60, 4286644096 }
 0x120   :  { %v249_v10 = vld [vmem:[%s5487_s0 + $0x3bc] sm:$0xf]  ;;  %v376_v11 = vld [vmem:[%s5487_s0 + $0x5b8] sm:$0xf]  ;;  %v2208_v12 = vmax.bf16 %v2206_v4, %v2204_v3  ;;  %v2214_v13 = vsel %vm586_vm0, %v312_v62, 4286644096  ;;  %v2162_v23 = vmax.bf16 %v2160_v56, %v2158_v6 }
 0x121   :  { %v2189_v14 = vmax.bf16 %v2187_v1, %v2185_v7  ;;  %v2234_v15 = vsel %vm586_vm0, %v57_v58, 4286644096  ;;  %v2237_v16 = vsel %vm586_vm0, %v121_v59, 4286644096  ;;  %v2241_v17 = vsel %vm586_vm0, %v185_v2, 4286644096 }
 0x122   :  { %v2195_v18 = vsel %vm586_vm0, %v567_v5, 4286644096  ;;  %v313_v19 = vld [vmem:[%s5487_s0 + $0x4bc] sm:$0xf]  ;;  %v440_v20 = vld [vmem:[%s5487_s0 + $0x6b8] sm:$0xf]  ;;  %v2212_v21 = vmax.bf16 %v2210_v9, %v2208_v12  ;;  %v2239_v22 = vmax.bf16 %v2237_v16, %v2234_v15 }
 0x123   :  { %v2193_v24 = vmax.bf16 %v2191_v8, %v2189_v14  ;;  %v2218_v25 = vsel %vm586_vm0, %v376_v11, 4286644096  ;;  %v2245_v26 = vsel %vm586_vm0, %v249_v10, 4286644096  ;;  %v377_v27 = vld [vmem:[%s5487_s0 + $0x5bc] sm:$0xf] }
 0x124   :  { %v441_v28 = vld [vmem:[%s5487_s0 + $0x6bc] sm:$0xf]  ;;  %v504_v29 = vld [vmem:[%s5487_s0 + $0x7b8] sm:$0xf]  ;;  %v2216_v30 = vmax.bf16 %v2214_v13, %v2212_v21  ;;  %v2243_v31 = vmax.bf16 %v2241_v17, %v2239_v22  ;;  %v2222_v34 = vsel %vm586_vm0, %v440_v20, 4286644096 }
 0x125   :  { %v2197_v32 = vmax.bf16 %v2195_v18, %v2193_v24  ;;  %v568_v33 = vld [vmem:[%s5487_s0 + $0x8b8] sm:$0xf]  ;;  %v2249_v35 = vsel %vm586_vm0, %v313_v19, 4286644096  ;;  %v505_v36 = vld [vmem:[%s5487_s0 + $0x7bc] sm:$0xf] }
 0x126   :  { %v2220_v37 = vmax.bf16 %v2218_v25, %v2216_v30  ;;  %v2247_v38 = vmax.bf16 %v2245_v26, %v2243_v31  ;;  %v58_v39 = vld [vmem:[%s5487_s0 + $0xc0] sm:$0xf]  ;;  %v569_v42 = vld [vmem:[%s5487_s0 + $0x8bc] sm:$0xf]  ;;  %v2226_v43 = vsel %vm586_vm0, %v504_v29, 4286644096 }
 0x127   :  { %v122_v40 = vld [vmem:[%s5487_s0 + $0x1c0] sm:$0xf]  ;;  %v3111_v41 = vcombine.low %v2162_v23, %v2197_v32  ;;  %v2253_v44 = vsel %vm586_vm0, %v377_v27, 4286644096  ;;  %v2230_v47 = vsel %vm586_vm0, %v568_v33, 4286644096 }
 0x128   :  { %v186_v45 = vld [vmem:[%s5487_s0 + $0x2c0] sm:$0xf]  ;;  %v2224_v46 = vmax.bf16 %v2222_v34, %v2220_v37  ;;  %v2251_v48 = vmax.bf16 %v2249_v35, %v2247_v38  ;;  %v2257_v49 = vsel %vm586_vm0, %v441_v28, 4286644096  ;;  %v2261_v51 = vsel %vm586_vm0, %v505_v36, 4286644096 }
 0x129   :  { %v250_v50 = vld [vmem:[%s5487_s0 + $0x3c0] sm:$0xf]  ;;  %3112 = vst [vmem:[#allocation2 + $0xb0] sm:$0xff] %v3111_v41   ;;  %v2269_v52 = vsel %vm586_vm0, %v58_v39, 4286644096 }
 0x12a   :  { %v2272_v53 = vsel %vm586_vm0, %v122_v40, 4286644096  ;;  %v2228_v54 = vmax.bf16 %v2226_v43, %v2224_v46  ;;  %v2255_v55 = vmax.bf16 %v2253_v44, %v2251_v48  ;;  %v59_v56 = vld [vmem:[%s5487_s0 + $0xc4] sm:$0xf]  ;;  %v314_v57 = vld [vmem:[%s5487_s0 + $0x4c0] sm:$0xf] }
 0x12b   :  { %v2274_v58 = vmax.bf16 %v2272_v53, %v2269_v52  ;;  %v2276_v59 = vsel %vm586_vm0, %v186_v45, 4286644096  ;;  %v123_v60 = vld [vmem:[%s5487_s0 + $0x1c4] sm:$0xf]  ;;  %v2280_v62 = vsel %vm586_vm0, %v250_v50, 4286644096 }
 0x12c   :  { %v187_v61 = vld [vmem:[%s5487_s0 + $0x2c4] sm:$0xf]  ;;  %v2259_v63 = vmax.bf16 %v2257_v49, %v2255_v55  ;;  %v2265_v0 = vsel %vm586_vm0, %v569_v42, 4286644096  ;;  %v378_v1 = vld [vmem:[%s5487_s0 + $0x5c0] sm:$0xf]  ;;  %v2232_v3 = vmax.bf16 %v2230_v47, %v2228_v54 }
 0x12d   :  { %v2278_v2 = vmax.bf16 %v2276_v59, %v2274_v58  ;;  %v251_v4 = vld [vmem:[%s5487_s0 + $0x3c4] sm:$0xf]  ;;  %v2284_v5 = vsel %vm586_vm0, %v314_v57, 4286644096  ;;  %v2304_v6 = vsel %vm586_vm0, %v59_v56, 4286644096 }
 0x12e   :  { %v2263_v7 = vmax.bf16 %v2261_v51, %v2259_v63  ;;  %v442_v8 = vld [vmem:[%s5487_s0 + $0x6c0] sm:$0xf]  ;;  %v2307_v10 = vsel %vm586_vm0, %v123_v60, 4286644096  ;;  %v2311_v11 = vsel %vm586_vm0, %v187_v61, 4286644096 }
 0x12f   :  { %v2282_v9 = vmax.bf16 %v2280_v62, %v2278_v2  ;;  %v315_v12 = vld [vmem:[%s5487_s0 + $0x4c4] sm:$0xf]  ;;  %v2288_v13 = vsel %vm586_vm0, %v378_v1, 4286644096  ;;  %v2309_v14 = vmax.bf16 %v2307_v10, %v2304_v6  ;;  %v506_v17 = vld [vmem:[%s5487_s0 + $0x7c0] sm:$0xf] }
 0x130   :  { %v2267_v15 = vmax.bf16 %v2265_v0, %v2263_v7  ;;  %v379_v16 = vld [vmem:[%s5487_s0 + $0x5c4] sm:$0xf]  ;;  %v2315_v19 = vsel %vm586_vm0, %v251_v4, 4286644096  ;;  %v570_v21 = vld [vmem:[%s5487_s0 + $0x8c0] sm:$0xf] }
 0x131   :  { %v2286_v18 = vmax.bf16 %v2284_v5, %v2282_v9  ;;  %v443_v20 = vld [vmem:[%s5487_s0 + $0x6c4] sm:$0xf]  ;;  %v2292_v22 = vsel %vm586_vm0, %v442_v8, 4286644096  ;;  %v2313_v23 = vmax.bf16 %v2311_v11, %v2309_v14  ;;  %v2319_v26 = vsel %vm586_vm0, %v315_v12, 4286644096 }
 0x132   :  { %v3113_v24 = vcombine.low %v2232_v3, %v2267_v15  ;;  %v60_v27 = vld [vmem:[%s5487_s0 + $0xc8] sm:$0xf]  ;;  %v507_v29 = vld [vmem:[%s5487_s0 + $0x7c4] sm:$0xf]  ;;  %v2296_v30 = vsel %vm586_vm0, %v506_v17, 4286644096 }
 0x133   :  { %v2290_v25 = vmax.bf16 %v2288_v13, %v2286_v18  ;;  %v124_v28 = vld [vmem:[%s5487_s0 + $0x1c8] sm:$0xf]  ;;  %v2317_v31 = vmax.bf16 %v2315_v19, %v2313_v23  ;;  %v2300_v34 = vsel %vm586_vm0, %v570_v21, 4286644096  ;;  %v2323_v35 = vsel %vm586_vm0, %v379_v16, 4286644096 }
 0x134   :  { %v188_v32 = vld [vmem:[%s5487_s0 + $0x2c8] sm:$0xf]  ;;  %3114 = vst [vmem:[#allocation2 + $0xb8] sm:$0xff] %v3113_v24   ;;  %v61_v36 = vld [vmem:[%s5487_s0 + $0xcc] sm:$0xf] }
 0x135   :  { %v2294_v33 = vmax.bf16 %v2292_v22, %v2290_v25  ;;  %v125_v37 = vld [vmem:[%s5487_s0 + $0x1cc] sm:$0xf]  ;;  %v252_v38 = vld [vmem:[%s5487_s0 + $0x3c8] sm:$0xf]  ;;  %v2321_v39 = vmax.bf16 %v2319_v26, %v2317_v31  ;;  %v2339_v41 = vsel %vm586_vm0, %v60_v27, 4286644096 }
 0x136   :  { %v316_v40 = vld [vmem:[%s5487_s0 + $0x4c8] sm:$0xf]  ;;  %v2342_v42 = vsel %vm586_vm0, %v124_v28, 4286644096  ;;  %v2327_v43 = vsel %vm586_vm0, %v443_v20, 4286644096 }
 0x137   :  { %v189_v44 = vld [vmem:[%s5487_s0 + $0x2cc] sm:$0xf]  ;;  %v2344_v45 = vmax.bf16 %v2342_v42, %v2339_v41  ;;  %v2346_v46 = vsel %vm586_vm0, %v188_v32, 4286644096  ;;  %v571_v47 = vld [vmem:[%s5487_s0 + $0x8c4] sm:$0xf]  ;;  %v2298_v48 = vmax.bf16 %v2296_v30, %v2294_v33  ;;  %v2325_v49 = vmax.bf16 %v2323_v35, %v2321_v39 }
 0x138   :  { %v2331_v50 = vsel %vm586_vm0, %v507_v29, 4286644096  ;;  %v2350_v51 = vsel %vm586_vm0, %v252_v38, 4286644096  ;;  %v253_v52 = vld [vmem:[%s5487_s0 + $0x3cc] sm:$0xf] }
 0x139   :  { %v380_v53 = vld [vmem:[%s5487_s0 + $0x5c8] sm:$0xf]  ;;  %v2348_v54 = vmax.bf16 %v2346_v46, %v2344_v45  ;;  %v2354_v55 = vsel %vm586_vm0, %v316_v40, 4286644096  ;;  %v2329_v56 = vmax.bf16 %v2327_v43, %v2325_v49  ;;  %v2374_v57 = vsel %vm586_vm0, %v61_v36, 4286644096 }
 0x13a   :  { %v2377_v58 = vsel %vm586_vm0, %v125_v37, 4286644096  ;;  %v2381_v59 = vsel %vm586_vm0, %v189_v44, 4286644096  ;;  %v2335_v60 = vsel %vm586_vm0, %v571_v47, 4286644096  ;;  %v2302_v1 = vmax.bf16 %v2300_v34, %v2298_v48 }
 0x13b   :  { %v317_v61 = vld [vmem:[%s5487_s0 + $0x4cc] sm:$0xf]  ;;  %v444_v62 = vld [vmem:[%s5487_s0 + $0x6c8] sm:$0xf]  ;;  %v2352_v63 = vmax.bf16 %v2350_v51, %v2348_v54  ;;  %v2379_v0 = vmax.bf16 %v2377_v58, %v2374_v57  ;;  %v2333_v2 = vmax.bf16 %v2331_v50, %v2329_v56  ;;  %v2358_v3 = vsel %vm586_vm0, %v380_v53, 4286644096 }
 0x13c   :  { %v2385_v4 = vsel %vm586_vm0, %v253_v52, 4286644096  ;;  %v381_v5 = vld [vmem:[%s5487_s0 + $0x5cc] sm:$0xf]  ;;  %v508_v7 = vld [vmem:[%s5487_s0 + $0x7c8] sm:$0xf] }
 0x13d   :  { %v445_v6 = vld [vmem:[%s5487_s0 + $0x6cc] sm:$0xf]  ;;  %v2356_v8 = vmax.bf16 %v2354_v55, %v2352_v63  ;;  %v2383_v9 = vmax.bf16 %v2381_v59, %v2379_v0  ;;  %v2337_v10 = vmax.bf16 %v2335_v60, %v2333_v2  ;;  %v572_v11 = vld [vmem:[%s5487_s0 + $0x8c8] sm:$0xf]  ;;  %v2362_v12 = vsel %vm586_vm0, %v444_v62, 4286644096 }
 0x13e   :  { %v2389_v13 = vsel %vm586_vm0, %v317_v61, 4286644096  ;;  %v509_v14 = vld [vmem:[%s5487_s0 + $0x7cc] sm:$0xf]  ;;  %v62_v17 = vld [vmem:[%s5487_s0 + $0xd0] sm:$0xf] }
 0x13f   :  { %v2360_v15 = vmax.bf16 %v2358_v3, %v2356_v8  ;;  %v2387_v16 = vmax.bf16 %v2385_v4, %v2383_v9  ;;  %v126_v18 = vld [vmem:[%s5487_s0 + $0x1d0] sm:$0xf]  ;;  %v3115_v19 = vcombine.low %v2302_v1, %v2337_v10  ;;  %v573_v20 = vld [vmem:[%s5487_s0 + $0x8cc] sm:$0xf]  ;;  %v2366_v21 = vsel %vm586_vm0, %v508_v7, 4286644096 }
 0x140   :  { %v2393_v22 = vsel %vm586_vm0, %v381_v5, 4286644096  ;;  %v190_v23 = vld [vmem:[%s5487_s0 + $0x2d0] sm:$0xf]  ;;  %v2370_v25 = vsel %vm586_vm0, %v572_v11, 4286644096 }
 0x141   :  { %v2364_v24 = vmax.bf16 %v2362_v12, %v2360_v15  ;;  %v2391_v26 = vmax.bf16 %v2389_v13, %v2387_v16  ;;  %v2397_v27 = vsel %vm586_vm0, %v445_v6, 4286644096  ;;  %v254_v28 = vld [vmem:[%s5487_s0 + $0x3d0] sm:$0xf]  ;;  %3116 = vst [vmem:[#allocation2 + $0xc0] sm:$0xff] %v3115_v19  }
 0x142   :  { %v2401_v29 = vsel %vm586_vm0, %v509_v14, 4286644096  ;;  %v2409_v30 = vsel %vm586_vm0, %v62_v17, 4286644096  ;;  %v2412_v31 = vsel %vm586_vm0, %v126_v18, 4286644096 }
 0x143   :  { %v2368_v32 = vmax.bf16 %v2366_v21, %v2364_v24  ;;  %v2395_v33 = vmax.bf16 %v2393_v22, %v2391_v26  ;;  %v63_v34 = vld [vmem:[%s5487_s0 + $0xd4] sm:$0xf]  ;;  %v318_v35 = vld [vmem:[%s5487_s0 + $0x4d0] sm:$0xf]  ;;  %v2414_v36 = vmax.bf16 %v2412_v31, %v2409_v30  ;;  %v2416_v37 = vsel %vm586_vm0, %v190_v23, 4286644096 }
 0x144   :  { %v127_v38 = vld [vmem:[%s5487_s0 + $0x1d4] sm:$0xf]  ;;  %v2420_v40 = vsel %vm586_vm0, %v254_v28, 4286644096  ;;  %v2405_v42 = vsel %vm586_vm0, %v573_v20, 4286644096 }
 0x145   :  { %v191_v39 = vld [vmem:[%s5487_s0 + $0x2d4] sm:$0xf]  ;;  %v2399_v41 = vmax.bf16 %v2397_v27, %v2395_v33  ;;  %v382_v43 = vld [vmem:[%s5487_s0 + $0x5d0] sm:$0xf]  ;;  %v2418_v44 = vmax.bf16 %v2416_v37, %v2414_v36  ;;  %v2372_v45 = vmax.bf16 %v2370_v25, %v2368_v32  ;;  %v2424_v47 = vsel %vm586_vm0, %v318_v35, 4286644096 }
 0x146   :  { %v255_v46 = vld [vmem:[%s5487_s0 + $0x3d4] sm:$0xf]  ;;  %v2444_v48 = vsel %vm586_vm0, %v63_v34, 4286644096  ;;  %v446_v50 = vld [vmem:[%s5487_s0 + $0x6d0] sm:$0xf] }
 0x147   :  { %v2403_v49 = vmax.bf16 %v2401_v29, %v2399_v41  ;;  %v2422_v51 = vmax.bf16 %v2420_v40, %v2418_v44  ;;  %v2447_v52 = vsel %vm586_vm0, %v127_v38, 4286644096  ;;  %v2451_v53 = vsel %vm586_vm0, %v191_v39, 4286644096  ;;  %v319_v54 = vld [vmem:[%s5487_s0 + $0x4d4] sm:$0xf] }
 0x148   :  { %v2428_v55 = vsel %vm586_vm0, %v382_v43, 4286644096  ;;  %v2449_v56 = vmax.bf16 %v2447_v52, %v2444_v48  ;;  %v383_v58 = vld [vmem:[%s5487_s0 + $0x5d4] sm:$0xf]  ;;  %v510_v59 = vld [vmem:[%s5487_s0 + $0x7d0] sm:$0xf] }
 0x149   :  { %v2407_v57 = vmax.bf16 %v2405_v42, %v2403_v49  ;;  %v2426_v60 = vmax.bf16 %v2424_v47, %v2422_v51  ;;  %v2455_v61 = vsel %vm586_vm0, %v255_v46, 4286644096  ;;  %v447_v62 = vld [vmem:[%s5487_s0 + $0x6d4] sm:$0xf]  ;;  %v574_v63 = vld [vmem:[%s5487_s0 + $0x8d0] sm:$0xf] }
 0x14a   :  { %v2432_v0 = vsel %vm586_vm0, %v446_v50, 4286644096  ;;  %v2453_v1 = vmax.bf16 %v2451_v53, %v2449_v56  ;;  %v2459_v4 = vsel %vm586_vm0, %v319_v54, 4286644096  ;;  %v64_v5 = vld [vmem:[%s5487_s0 + $0xd8] sm:$0xf] }
 0x14b   :  { %v3117_v2 = vcombine.low %v2372_v45, %v2407_v57  ;;  %v2430_v3 = vmax.bf16 %v2428_v55, %v2426_v60  ;;  %v128_v6 = vld [vmem:[%s5487_s0 + $0x1d8] sm:$0xf]  ;;  %v511_v7 = vld [vmem:[%s5487_s0 + $0x7d4] sm:$0xf]  ;;  %v2436_v8 = vsel %vm586_vm0, %v510_v59, 4286644096 }
 0x14c   :  { %v2457_v9 = vmax.bf16 %v2455_v61, %v2453_v1  ;;  %v192_v10 = vld [vmem:[%s5487_s0 + $0x2d8] sm:$0xf]  ;;  %v2440_v12 = vsel %vm586_vm0, %v574_v63, 4286644096  ;;  %v2463_v13 = vsel %vm586_vm0, %v383_v58, 4286644096 }
 0x14d   :  { %3118 = vst [vmem:[#allocation2 + $0xc8] sm:$0xff] %v3117_v2   ;;  %v2434_v11 = vmax.bf16 %v2432_v0, %v2430_v3  ;;  %v65_v14 = vld [vmem:[%s5487_s0 + $0xdc] sm:$0xf]  ;;  %v256_v16 = vld [vmem:[%s5487_s0 + $0x3d8] sm:$0xf] }
 0x14e   :  { %v129_v15 = vld [vmem:[%s5487_s0 + $0x1dc] sm:$0xf]  ;;  %v2461_v17 = vmax.bf16 %v2459_v4, %v2457_v9  ;;  %v320_v18 = vld [vmem:[%s5487_s0 + $0x4d8] sm:$0xf]  ;;  %v2479_v19 = vsel %vm586_vm0, %v64_v5, 4286644096 }
 0x14f   :  { %v2482_v20 = vsel %vm586_vm0, %v128_v6, 4286644096  ;;  %v2467_v21 = vsel %vm586_vm0, %v447_v62, 4286644096  ;;  %v193_v22 = vld [vmem:[%s5487_s0 + $0x2dc] sm:$0xf]  ;;  %v2438_v26 = vmax.bf16 %v2436_v8, %v2434_v11 }
 0x150   :  { %v2484_v23 = vmax.bf16 %v2482_v20, %v2479_v19  ;;  %v2486_v24 = vsel %vm586_vm0, %v192_v10, 4286644096  ;;  %v575_v25 = vld [vmem:[%s5487_s0 + $0x8d4] sm:$0xf]  ;;  %v2465_v27 = vmax.bf16 %v2463_v13, %v2461_v17  ;;  %v2471_v28 = vsel %vm586_vm0, %v511_v7, 4286644096 }
 0x151   :  { %v2490_v29 = vsel %vm586_vm0, %v256_v16, 4286644096  ;;  %v257_v30 = vld [vmem:[%s5487_s0 + $0x3dc] sm:$0xf]  ;;  %v384_v31 = vld [vmem:[%s5487_s0 + $0x5d8] sm:$0xf]  ;;  %v2442_v43 = vmax.bf16 %v2440_v12, %v2438_v26 }
 0x152   :  { %v2488_v32 = vmax.bf16 %v2486_v24, %v2484_v23  ;;  %v2494_v33 = vsel %vm586_vm0, %v320_v18, 4286644096  ;;  %v2469_v34 = vmax.bf16 %v2467_v21, %v2465_v27  ;;  %v2514_v35 = vsel %vm586_vm0, %v65_v14, 4286644096  ;;  %v321_v39 = vld [vmem:[%s5487_s0 + $0x4dc] sm:$0xf] }
 0x153   :  { %v2517_v36 = vsel %vm586_vm0, %v129_v15, 4286644096  ;;  %v2521_v37 = vsel %vm586_vm0, %v193_v22, 4286644096  ;;  %v2475_v38 = vsel %vm586_vm0, %v575_v25, 4286644096 }
 0x154   :  { %v448_v40 = vld [vmem:[%s5487_s0 + $0x6d8] sm:$0xf]  ;;  %v2492_v41 = vmax.bf16 %v2490_v29, %v2488_v32  ;;  %v2519_v42 = vmax.bf16 %v2517_v36, %v2514_v35  ;;  %v2473_v44 = vmax.bf16 %v2471_v28, %v2469_v34  ;;  %v2498_v45 = vsel %vm586_vm0, %v384_v31, 4286644096  ;;  %v385_v47 = vld [vmem:[%s5487_s0 + $0x5dc] sm:$0xf] }
 0x155   :  { %v2525_v46 = vsel %vm586_vm0, %v257_v30, 4286644096  ;;  %v449_v48 = vld [vmem:[%s5487_s0 + $0x6dc] sm:$0xf]  ;;  %v512_v49 = vld [vmem:[%s5487_s0 + $0x7d8] sm:$0xf] }
 0x156   :  { %v2496_v50 = vmax.bf16 %v2494_v33, %v2492_v41  ;;  %v2523_v51 = vmax.bf16 %v2521_v37, %v2519_v42  ;;  %v2477_v52 = vmax.bf16 %v2475_v38, %v2473_v44  ;;  %v576_v53 = vld [vmem:[%s5487_s0 + $0x8d8] sm:$0xf]  ;;  %v2502_v54 = vsel %vm586_vm0, %v448_v40, 4286644096  ;;  %v513_v56 = vld [vmem:[%s5487_s0 + $0x7dc] sm:$0xf] }
 0x157   :  { %v2529_v55 = vsel %vm586_vm0, %v321_v39, 4286644096  ;;  %v66_v59 = vld [vmem:[%s5487_s0 + $0xe0] sm:$0xf]  ;;  %v577_v62 = vld [vmem:[%s5487_s0 + $0x8dc] sm:$0xf] }
 0x158   :  { %v2500_v57 = vmax.bf16 %v2498_v45, %v2496_v50  ;;  %v2527_v58 = vmax.bf16 %v2525_v46, %v2523_v51  ;;  %v130_v60 = vld [vmem:[%s5487_s0 + $0x1e0] sm:$0xf]  ;;  %v3119_v61 = vcombine.low %v2442_v43, %v2477_v52  ;;  %v2506_v63 = vsel %vm586_vm0, %v512_v49, 4286644096  ;;  %v67_v12 = vld [vmem:[%s5487_s0 + $0xe4] sm:$0xf] }
 0x159   :  { %v2533_v0 = vsel %vm586_vm0, %v385_v47, 4286644096  ;;  %v194_v1 = vld [vmem:[%s5487_s0 + $0x2e0] sm:$0xf]  ;;  %v2510_v3 = vsel %vm586_vm0, %v576_v53, 4286644096 }
 0x15a   :  { %v2504_v2 = vmax.bf16 %v2502_v54, %v2500_v57  ;;  %v2531_v4 = vmax.bf16 %v2529_v55, %v2527_v58  ;;  %v2537_v5 = vsel %vm586_vm0, %v449_v48, 4286644096  ;;  %v258_v6 = vld [vmem:[%s5487_s0 + $0x3e0] sm:$0xf]  ;;  %3120 = vst [vmem:[#allocation2 + $0xd0] sm:$0xff] %v3119_v61  }
 0x15b   :  { %v2541_v7 = vsel %vm586_vm0, %v513_v56, 4286644096  ;;  %v2549_v8 = vsel %vm586_vm0, %v66_v59, 4286644096  ;;  %v2552_v9 = vsel %vm586_vm0, %v130_v60, 4286644096 }
 0x15c   :  { %v2508_v10 = vmax.bf16 %v2506_v63, %v2504_v2  ;;  %v2535_v11 = vmax.bf16 %v2533_v0, %v2531_v4  ;;  %v322_v13 = vld [vmem:[%s5487_s0 + $0x4e0] sm:$0xf]  ;;  %v2554_v14 = vmax.bf16 %v2552_v9, %v2549_v8  ;;  %v2556_v15 = vsel %vm586_vm0, %v194_v1, 4286644096  ;;  %v131_v16 = vld [vmem:[%s5487_s0 + $0x1e4] sm:$0xf] }
 0x15d   :  { %v195_v17 = vld [vmem:[%s5487_s0 + $0x2e4] sm:$0xf]  ;;  %v2560_v18 = vsel %vm586_vm0, %v258_v6, 4286644096  ;;  %v2545_v20 = vsel %vm586_vm0, %v577_v62, 4286644096 }
 0x15e   :  { %v2539_v19 = vmax.bf16 %v2537_v5, %v2535_v11  ;;  %v386_v21 = vld [vmem:[%s5487_s0 + $0x5e0] sm:$0xf]  ;;  %v2558_v22 = vmax.bf16 %v2556_v15, %v2554_v14  ;;  %v2512_v23 = vmax.bf16 %v2510_v3, %v2508_v10  ;;  %v259_v24 = vld [vmem:[%s5487_s0 + $0x3e4] sm:$0xf]  ;;  %v2564_v25 = vsel %vm586_vm0, %v322_v13, 4286644096 }
 0x15f   :  { %v2584_v26 = vsel %vm586_vm0, %v67_v12, 4286644096  ;;  %v450_v28 = vld [vmem:[%s5487_s0 + $0x6e0] sm:$0xf]  ;;  %v2587_v30 = vsel %vm586_vm0, %v131_v16, 4286644096 }
 0x160   :  { %v2543_v27 = vmax.bf16 %v2541_v7, %v2539_v19  ;;  %v2562_v29 = vmax.bf16 %v2560_v18, %v2558_v22  ;;  %v2591_v31 = vsel %vm586_vm0, %v195_v17, 4286644096  ;;  %v323_v32 = vld [vmem:[%s5487_s0 + $0x4e4] sm:$0xf]  ;;  %v2568_v33 = vsel %vm586_vm0, %v386_v21, 4286644096 }
 0x161   :  { %v2589_v34 = vmax.bf16 %v2587_v30, %v2584_v26  ;;  %v387_v36 = vld [vmem:[%s5487_s0 + $0x5e4] sm:$0xf]  ;;  %v514_v37 = vld [vmem:[%s5487_s0 + $0x7e0] sm:$0xf]  ;;  %v2595_v39 = vsel %vm586_vm0, %v259_v24, 4286644096 }
 0x162   :  { %v2547_v35 = vmax.bf16 %v2545_v20, %v2543_v27  ;;  %v2566_v38 = vmax.bf16 %v2564_v25, %v2562_v29  ;;  %v451_v40 = vld [vmem:[%s5487_s0 + $0x6e4] sm:$0xf]  ;;  %v578_v41 = vld [vmem:[%s5487_s0 + $0x8e0] sm:$0xf]  ;;  %v2572_v42 = vsel %vm586_vm0, %v450_v28, 4286644096 }
 0x163   :  { %v2593_v43 = vmax.bf16 %v2591_v31, %v2589_v34  ;;  %v2599_v46 = vsel %vm586_vm0, %v323_v32, 4286644096  ;;  %v68_v47 = vld [vmem:[%s5487_s0 + $0xe8] sm:$0xf]  ;;  %v515_v49 = vld [vmem:[%s5487_s0 + $0x7e4] sm:$0xf] }
 0x164   :  { %v3121_v44 = vcombine.low %v2512_v23, %v2547_v35  ;;  %v2570_v45 = vmax.bf16 %v2568_v33, %v2566_v38  ;;  %v132_v48 = vld [vmem:[%s5487_s0 + $0x1e8] sm:$0xf]  ;;  %v2576_v50 = vsel %vm586_vm0, %v514_v37, 4286644096  ;;  %v2580_v54 = vsel %vm586_vm0, %v578_v41, 4286644096 }
 0x165   :  { %v2597_v51 = vmax.bf16 %v2595_v39, %v2593_v43  ;;  %v196_v52 = vld [vmem:[%s5487_s0 + $0x2e8] sm:$0xf]  ;;  %v2603_v55 = vsel %vm586_vm0, %v387_v36, 4286644096  ;;  %v69_v56 = vld [vmem:[%s5487_s0 + $0xec] sm:$0xf] }
 0x166   :  { %3122 = vst [vmem:[#allocation2 + $0xd8] sm:$0xff] %v3121_v44   ;;  %v2574_v53 = vmax.bf16 %v2572_v42, %v2570_v45  ;;  %v133_v57 = vld [vmem:[%s5487_s0 + $0x1ec] sm:$0xf]  ;;  %v260_v58 = vld [vmem:[%s5487_s0 + $0x3e8] sm:$0xf] }
 0x167   :  { %v2601_v59 = vmax.bf16 %v2599_v46, %v2597_v51  ;;  %v324_v60 = vld [vmem:[%s5487_s0 + $0x4e8] sm:$0xf]  ;;  %v2619_v61 = vsel %vm586_vm0, %v68_v47, 4286644096  ;;  %v2622_v62 = vsel %vm586_vm0, %v132_v48, 4286644096 }
 0x168   :  { %v2607_v63 = vsel %vm586_vm0, %v451_v40, 4286644096  ;;  %v197_v0 = vld [vmem:[%s5487_s0 + $0x2ec] sm:$0xf]  ;;  %v2624_v1 = vmax.bf16 %v2622_v62, %v2619_v61  ;;  %v2626_v2 = vsel %vm586_vm0, %v196_v52, 4286644096  ;;  %v2578_v4 = vmax.bf16 %v2576_v50, %v2574_v53 }
 0x169   :  { %v579_v3 = vld [vmem:[%s5487_s0 + $0x8e4] sm:$0xf]  ;;  %v2605_v5 = vmax.bf16 %v2603_v55, %v2601_v59  ;;  %v2611_v6 = vsel %vm586_vm0, %v515_v49, 4286644096  ;;  %v2630_v7 = vsel %vm586_vm0, %v260_v58, 4286644096 }
 0x16a   :  { %v261_v8 = vld [vmem:[%s5487_s0 + $0x3ec] sm:$0xf]  ;;  %v388_v9 = vld [vmem:[%s5487_s0 + $0x5e8] sm:$0xf]  ;;  %v2628_v10 = vmax.bf16 %v2626_v2, %v2624_v1  ;;  %v2634_v11 = vsel %vm586_vm0, %v324_v60, 4286644096  ;;  %v2582_v21 = vmax.bf16 %v2580_v54, %v2578_v4 }
 0x16b   :  { %v2609_v12 = vmax.bf16 %v2607_v63, %v2605_v5  ;;  %v2654_v13 = vsel %vm586_vm0, %v69_v56, 4286644096  ;;  %v2657_v14 = vsel %vm586_vm0, %v133_v57, 4286644096  ;;  %v2661_v15 = vsel %vm586_vm0, %v197_v0, 4286644096 }
 0x16c   :  { %v2615_v16 = vsel %vm586_vm0, %v579_v3, 4286644096  ;;  %v325_v17 = vld [vmem:[%s5487_s0 + $0x4ec] sm:$0xf]  ;;  %v452_v18 = vld [vmem:[%s5487_s0 + $0x6e8] sm:$0xf]  ;;  %v2632_v19 = vmax.bf16 %v2630_v7, %v2628_v10  ;;  %v2659_v20 = vmax.bf16 %v2657_v14, %v2654_v13 }
 0x16d   :  { %v2613_v22 = vmax.bf16 %v2611_v6, %v2609_v12  ;;  %v2638_v23 = vsel %vm586_vm0, %v388_v9, 4286644096  ;;  %v2665_v24 = vsel %vm586_vm0, %v261_v8, 4286644096  ;;  %v389_v25 = vld [vmem:[%s5487_s0 + $0x5ec] sm:$0xf] }
 0x16e   :  { %v453_v26 = vld [vmem:[%s5487_s0 + $0x6ec] sm:$0xf]  ;;  %v516_v27 = vld [vmem:[%s5487_s0 + $0x7e8] sm:$0xf]  ;;  %v2636_v28 = vmax.bf16 %v2634_v11, %v2632_v19  ;;  %v2663_v29 = vmax.bf16 %v2661_v15, %v2659_v20  ;;  %v2642_v32 = vsel %vm586_vm0, %v452_v18, 4286644096 }
 0x16f   :  { %v2617_v30 = vmax.bf16 %v2615_v16, %v2613_v22  ;;  %v580_v31 = vld [vmem:[%s5487_s0 + $0x8e8] sm:$0xf]  ;;  %v2669_v33 = vsel %vm586_vm0, %v325_v17, 4286644096  ;;  %v517_v34 = vld [vmem:[%s5487_s0 + $0x7ec] sm:$0xf] }
 0x170   :  { %v2640_v35 = vmax.bf16 %v2638_v23, %v2636_v28  ;;  %v2667_v36 = vmax.bf16 %v2665_v24, %v2663_v29  ;;  %v70_v37 = vld [vmem:[%s5487_s0 + $0xf0] sm:$0xf]  ;;  %v581_v40 = vld [vmem:[%s5487_s0 + $0x8ec] sm:$0xf]  ;;  %v2646_v41 = vsel %vm586_vm0, %v516_v27, 4286644096 }
 0x171   :  { %v134_v38 = vld [vmem:[%s5487_s0 + $0x1f0] sm:$0xf]  ;;  %v3123_v39 = vcombine.low %v2582_v21, %v2617_v30  ;;  %v2673_v42 = vsel %vm586_vm0, %v389_v25, 4286644096  ;;  %v2650_v45 = vsel %vm586_vm0, %v580_v31, 4286644096 }
 0x172   :  { %v198_v43 = vld [vmem:[%s5487_s0 + $0x2f0] sm:$0xf]  ;;  %v2644_v44 = vmax.bf16 %v2642_v32, %v2640_v35  ;;  %v2671_v46 = vmax.bf16 %v2669_v33, %v2667_v36  ;;  %v2677_v47 = vsel %vm586_vm0, %v453_v26, 4286644096  ;;  %v2681_v49 = vsel %vm586_vm0, %v517_v34, 4286644096 }
 0x173   :  { %v262_v48 = vld [vmem:[%s5487_s0 + $0x3f0] sm:$0xf]  ;;  %3124 = vst [vmem:[#allocation2 + $0xe0] sm:$0xff] %v3123_v39   ;;  %v2689_v50 = vsel %vm586_vm0, %v70_v37, 4286644096 }
 0x174   :  { %v2692_v51 = vsel %vm586_vm0, %v134_v38, 4286644096  ;;  %v2648_v52 = vmax.bf16 %v2646_v41, %v2644_v44  ;;  %v2675_v53 = vmax.bf16 %v2673_v42, %v2671_v46  ;;  %v71_v54 = vld [vmem:[%s5487_s0 + $0xf4] sm:$0xf]  ;;  %v326_v55 = vld [vmem:[%s5487_s0 + $0x4f0] sm:$0xf] }
 0x175   :  { %v2694_v56 = vmax.bf16 %v2692_v51, %v2689_v50  ;;  %v2696_v57 = vsel %vm586_vm0, %v198_v43, 4286644096  ;;  %v135_v58 = vld [vmem:[%s5487_s0 + $0x1f4] sm:$0xf]  ;;  %v2700_v60 = vsel %vm586_vm0, %v262_v48, 4286644096 }
 0x176   :  { %v199_v59 = vld [vmem:[%s5487_s0 + $0x2f4] sm:$0xf]  ;;  %v2679_v61 = vmax.bf16 %v2677_v47, %v2675_v53  ;;  %v2685_v62 = vsel %vm586_vm0, %v581_v40, 4286644096  ;;  %v390_v63 = vld [vmem:[%s5487_s0 + $0x5f0] sm:$0xf]  ;;  %v2652_v1 = vmax.bf16 %v2650_v45, %v2648_v52 }
 0x177   :  { %v2698_v0 = vmax.bf16 %v2696_v57, %v2694_v56  ;;  %v263_v2 = vld [vmem:[%s5487_s0 + $0x3f4] sm:$0xf]  ;;  %v2704_v3 = vsel %vm586_vm0, %v326_v55, 4286644096  ;;  %v2724_v4 = vsel %vm586_vm0, %v71_v54, 4286644096 }
 0x178   :  { %v2683_v5 = vmax.bf16 %v2681_v49, %v2679_v61  ;;  %v454_v6 = vld [vmem:[%s5487_s0 + $0x6f0] sm:$0xf]  ;;  %v2727_v8 = vsel %vm586_vm0, %v135_v58, 4286644096  ;;  %v2731_v9 = vsel %vm586_vm0, %v199_v59, 4286644096 }
 0x179   :  { %v2702_v7 = vmax.bf16 %v2700_v60, %v2698_v0  ;;  %v327_v10 = vld [vmem:[%s5487_s0 + $0x4f4] sm:$0xf]  ;;  %v2708_v11 = vsel %vm586_vm0, %v390_v63, 4286644096  ;;  %v2729_v12 = vmax.bf16 %v2727_v8, %v2724_v4  ;;  %v518_v14 = vld [vmem:[%s5487_s0 + $0x7f0] sm:$0xf] }
 0x17a   :  { %v2687_v13 = vmax.bf16 %v2685_v62, %v2683_v5  ;;  %v582_v15 = vld [vmem:[%s5487_s0 + $0x8f0] sm:$0xf]  ;;  %v2735_v17 = vsel %vm586_vm0, %v263_v2, 4286644096  ;;  %v391_v18 = vld [vmem:[%s5487_s0 + $0x5f4] sm:$0xf] }
 0x17b   :  { %v2706_v16 = vmax.bf16 %v2704_v3, %v2702_v7  ;;  %v455_v19 = vld [vmem:[%s5487_s0 + $0x6f4] sm:$0xf]  ;;  %v2712_v20 = vsel %vm586_vm0, %v454_v6, 4286644096  ;;  %v2733_v21 = vmax.bf16 %v2731_v9, %v2729_v12  ;;  %v2739_v25 = vsel %vm586_vm0, %v327_v10, 4286644096 }
 0x17c   :  { %v3125_v22 = vcombine.low %v2652_v1, %v2687_v13  ;;  %v519_v23 = vld [vmem:[%s5487_s0 + $0x7f4] sm:$0xf]  ;;  %v72_v26 = vld [vmem:[%s5487_s0 + $0xf8] sm:$0xf]  ;;  %v2716_v28 = vsel %vm586_vm0, %v518_v14, 4286644096 }
 0x17d   :  { %v2710_v24 = vmax.bf16 %v2708_v11, %v2706_v16  ;;  %v136_v27 = vld [vmem:[%s5487_s0 + $0x1f8] sm:$0xf]  ;;  %v2720_v29 = vsel %vm586_vm0, %v582_v15, 4286644096  ;;  %v2737_v30 = vmax.bf16 %v2735_v17, %v2733_v21  ;;  %v2743_v33 = vsel %vm586_vm0, %v391_v18, 4286644096 }
 0x17e   :  { %v200_v31 = vld [vmem:[%s5487_s0 + $0x2f8] sm:$0xf]  ;;  %3126 = vst [vmem:[#allocation2 + $0xe8] sm:$0xff] %v3125_v22   ;;  %v2747_v34 = vsel %vm586_vm0, %v455_v19, 4286644096 }
 0x17f   :  { %v2714_v32 = vmax.bf16 %v2712_v20, %v2710_v24  ;;  %v73_v35 = vld [vmem:[%s5487_s0 + $0xfc] sm:$0xf]  ;;  %v264_v37 = vld [vmem:[%s5487_s0 + $0x3f8] sm:$0xf]  ;;  %v2741_v38 = vmax.bf16 %v2739_v25, %v2737_v30  ;;  %v2759_v40 = vsel %vm586_vm0, %v72_v26, 4286644096 }
 0x180   :  { %v137_v36 = vld [vmem:[%s5487_s0 + $0x1fc] sm:$0xf]  ;;  %v328_v39 = vld [vmem:[%s5487_s0 + $0x4f8] sm:$0xf]  ;;  %v2762_v41 = vsel %vm586_vm0, %v136_v27, 4286644096 }
 0x181   :  { %v201_v42 = vld [vmem:[%s5487_s0 + $0x2fc] sm:$0xf]  ;;  %v2764_v43 = vmax.bf16 %v2762_v41, %v2759_v40  ;;  %v2766_v44 = vsel %vm586_vm0, %v200_v31, 4286644096 }
 0x182   :  { %6 = vsyncpa [#allocation3], 0  ;;  %v583_v45 = vld [vmem:[%s5487_s0 + $0x8f4] sm:$0xf]  ;;  %v2718_v46 = vmax.bf16 %v2716_v28, %v2714_v32  ;;  %v2745_v47 = vmax.bf16 %v2743_v33, %v2741_v38  ;;  %v2751_v48 = vsel %vm586_vm0, %v519_v23, 4286644096 }
 0x183   :  { %v2770_v49 = vsel %vm586_vm0, %v264_v37, 4286644096  ;;  %v265_v50 = vld [vmem:[%s5487_s0 + $0x3fc] sm:$0xf]  ;;  %v392_v51 = vld [vmem:[%s5487_s0 + $0x5f8] sm:$0xf]  ;;  %v2768_v52 = vmax.bf16 %v2766_v44, %v2764_v43 }
 0x184   :  { %v2774_v53 = vsel %vm586_vm0, %v328_v39, 4286644096  ;;  %v2749_v54 = vmax.bf16 %v2747_v34, %v2745_v47  ;;  %v2794_v55 = vsel %vm586_vm0, %v73_v35, 4286644096  ;;  %v2797_v56 = vsel %vm586_vm0, %v137_v36, 4286644096 }
 0x185   :  { %v2801_v57 = vsel %vm586_vm0, %v201_v42, 4286644096  ;;  %v2755_v58 = vsel %vm586_vm0, %v583_v45, 4286644096  ;;  %v329_v59 = vld [vmem:[%s5487_s0 + $0x4fc] sm:$0xf]  ;;  %v2772_v61 = vmax.bf16 %v2770_v49, %v2768_v52  ;;  %v2799_v62 = vmax.bf16 %v2797_v56, %v2794_v55 }
 0x186   :  { %v456_v60 = vld [vmem:[%s5487_s0 + $0x6f8] sm:$0xf]  ;;  %v2722_v63 = vmax.bf16 %v2720_v29, %v2718_v46  ;;  %v2753_v0 = vmax.bf16 %v2751_v48, %v2749_v54  ;;  %v2778_v1 = vsel %vm586_vm0, %v392_v51, 4286644096  ;;  %v2805_v2 = vsel %vm586_vm0, %v265_v50, 4286644096 }
 0x187   :  { %v393_v3 = vld [vmem:[%s5487_s0 + $0x5fc] sm:$0xf]  ;;  %v520_v4 = vld [vmem:[%s5487_s0 + $0x7f8] sm:$0xf]  ;;  %v2776_v5 = vmax.bf16 %v2774_v53, %v2772_v61  ;;  %v2803_v6 = vmax.bf16 %v2801_v57, %v2799_v62  ;;  %v2782_v8 = vsel %vm586_vm0, %v456_v60, 4286644096 }
 0x188   :  { %v2757_v7 = vmax.bf16 %v2755_v58, %v2753_v0  ;;  %v2809_v9 = vsel %vm586_vm0, %v329_v59, 4286644096  ;;  %v457_v10 = vld [vmem:[%s5487_s0 + $0x6fc] sm:$0xf]  ;;  %v2786_v14 = vsel %vm586_vm0, %v520_v4, 4286644096 }
 0x189   :  { %v2780_v11 = vmax.bf16 %v2778_v1, %v2776_v5  ;;  %v2807_v12 = vmax.bf16 %v2805_v2, %v2803_v6  ;;  %v2813_v15 = vsel %vm586_vm0, %v393_v3, 4286644096  ;;  %v521_v16 = vld [vmem:[%s5487_s0 + $0x7fc] sm:$0xf]  ;;  %v584_v17 = vld [vmem:[%s5487_s0 + $0x8f8] sm:$0xf] }
 0x18a   :  { %v3127_v13 = vcombine.low %v2722_v63, %v2757_v7  ;;  %v2817_v20 = vsel %vm586_vm0, %v457_v10, 4286644096  ;;  %v585_v21 = vld [vmem:[%s5487_s0 + $0x8fc] sm:$0xf]  ;;  %v2790_v24 = vsel %vm586_vm0, %v584_v17, 4286644096 }
 0x18b   :  { %v2784_v18 = vmax.bf16 %v2782_v8, %v2780_v11  ;;  %v2811_v19 = vmax.bf16 %v2809_v9, %v2807_v12  ;;  %v2821_v25 = vsel %vm586_vm0, %v521_v16, 4286644096  ;;  %v2825_v27 = vsel %vm586_vm0, %v585_v21, 4286644096  ;;  %s3158_s27 = smov [#allocation2]  }
 0x18c   :  { %3128 = vst [vmem:[#allocation2 + $0xf0] sm:$0xff] %v3127_v13   ;;  %s2897_s28 = sshll.u32 %s3158_s27, 4  ;;  %s2898_s28 = int_to_ptr.vmem [resolvable:$true] %s2897_s28 }
 0x18d   :  { %v2788_v22 = vmax.bf16 %v2786_v14, %v2784_v18  ;;  %v2815_v23 = vmax.bf16 %v2813_v15, %v2811_v19  ;;  %s3134_s29 = scalar_lea.vmem %s2898_s28, 4096  ;;  %p3139_p1 = scmp.lt.s32.totalorder %s2898_s28, %s2898_s28 }
 0x18e   :  { %p3135_p0 = scmp.ne.s32.totalorder %s2898_s28, %s3134_s29  ;;  %p3140_p2 = scmp.lt.s32.totalorder %s3134_s29, %s3134_s29 }
 0x18f   :  { %v2819_v26 = vmax.bf16 %v2817_v20, %v2815_v23  ;;  %v2792_v28 = vmax.bf16 %v2790_v24, %v2788_v22 }
 0x190   :  { %p3141_p3 = por %p3140_p2, %p3139_p1 }
 0x191   :  { %v2823_v29 = vmax.bf16 %v2821_v25, %v2819_v26 }
 0x192   :  { %p3142_p4 = pnand %p3141_p3, %p3135_p0 }
 0x193   :  { %v2827_v30 = vmax.bf16 %v2825_v27, %v2823_v29 }
 0x195   :  { %v3129_v31 = vcombine.low %v2792_v28, %v2827_v30 }
 0x197   :  { %3130 = vst [vmem:[#allocation2 + $0xf8] sm:$0xff] %v3129_v31  }
 0x198   :  { %3145 = shalt.err (!%p3142_p4)
}
 0x199   :  { %s3146_s2 = scalar_lea.hbm %s5488_s1, 4096 }
 0x19a   :  { %p3147_p5 = scmp.ne.s32.totalorder %s5488_s1, %s3146_s2  ;;  %p3150_p6 = scmp.lt.u32.totalorder %s3146_s2, %s5488_s1 }
 0x19c   :  { %p3152_p7 = pnand %p3150_p6, %p3147_p5 }
 0x19e   :  { %3155 = shalt.err (!%p3152_p7)
}
 0x19f   :  { %s3159_s7 = smov 64   ;;  %s3160_s8 = smov 4  }
 0x1a0   :  { %2903 = dma.vmem_to_hbm [thread:$0]  %s2898_s28, 4096, %s5488_s1, [#allocation3], %s3159_s7, %s3159_s7, %s3160_s8  }
 0x1a1   :  { %3156 = dma.done.wait [#allocation3], 4096  }
 0x1a2   :  { %3157 = vsyncadd [#allocation3], 4294963200 }
 0x1a3   :  { %2907 = vsyncpa [#allocation3], 1 }

</bundles_post_ra>
